<compile_context>
chip_gen: v7x
topology: tpu7x:2x2x1
jax: 0.10.0
libtpu: 0.0.40
codegen_flags: <defaults>
</compile_context>

<pallas_src>
import functools

import jax
import jax.numpy as jnp
from jax.experimental import pallas as pl
from jax.experimental.pallas import tpu as pltpu


# ----------------------------------------------------------------------------
# Kernel 1: M-tiled matmul + bias + relu (im2col GEMM for the conv stem)
# ----------------------------------------------------------------------------
def _matmul_bias_relu_kernel(a_ref, w_ref, b_ref, o_ref):
    acc = jnp.dot(a_ref[...], w_ref[...], preferred_element_type=jnp.float32)
    acc = jnp.maximum(acc + b_ref[...], 0.0)
    o_ref[...] = acc.astype(o_ref.dtype)


def pallas_matmul_bias_relu(a, w, b, tile_m=512):
    """relu(a @ w + b).  a: (M, K) bf16, w: (K, N) bf16, b: (1, N) f32 -> (M, N) bf16."""
    M, K = a.shape
    N = w.shape[1]
    if M % tile_m != 0:
        tile_m = 256 if M % 256 == 0 else M
    return pl.pallas_call(
        _matmul_bias_relu_kernel,
        out_shape=jax.ShapeDtypeStruct((M, N), jnp.bfloat16),
        grid=(M // tile_m,),
        in_specs=[
            pl.BlockSpec((tile_m, K), lambda i: (i, 0)),
            pl.BlockSpec((K, N), lambda i: (0, 0)),
            pl.BlockSpec((1, N), lambda i: (0, 0)),
        ],
        out_specs=pl.BlockSpec((tile_m, N), lambda i: (i, 0)),
        compiler_params=pltpu.CompilerParams(dimension_semantics=("parallel",)),
    )(a, w, b)


# ----------------------------------------------------------------------------
# Kernel 2: fully fused conv2 + residual block + embed/pos + transformer layer
#           + pooling + classifier.  One grid step per batch element.
# ----------------------------------------------------------------------------
def _fused_trsf_trn_kernel(
    p2_ref,                                   # (1, S, 9*C1) conv2 im2col patches (bf16)
    c2w, c2b, rw1, rb1, rw2, rb2,             # conv2 + residual 1x1 convs
    ew, eb, pos,                               # token embed + positional embedding
    ln1g, ln1b, qkvw, qkvb, pw, pb,            # attention block
    ln2g, ln2b, m1w, m1b, m2w, m2b,            # MLP block
    lnfg, lnfb, cw, cb,                        # final LN + classifier
    out_ref,                                   # (1, 1, 2) logits
    *, heads, d_head):

    f32 = jnp.float32
    bf16 = jnp.bfloat16

    def mm(x, w_ref, b_ref, relu=False):
        y = jnp.dot(x.astype(bf16), w_ref[...], preferred_element_type=f32)
        y = y + b_ref[...]
        return jnp.maximum(y, 0.0) if relu else y

    def ln(x, g_ref, b_ref):
        mu = jnp.mean(x, axis=-1, keepdims=True)
        var = jnp.mean(jnp.square(x - mu), axis=-1, keepdims=True)
        return (x - mu) * jax.lax.rsqrt(var + 1e-5) * g_ref[...] + b_ref[...]

    patches = p2_ref[0]                              # (S, 144) bf16

    # conv2 (3x3 s2 as im2col GEMM) + relu                       -> (S, 24)
    x = mm(patches, c2w, c2b, relu=True)
    # residual block (1x1 convs) + relu, residual add fused
    h = mm(x, rw1, rb1, relu=True)
    h = mm(h, rw2, rb2)
    feat = jnp.maximum(x + h, 0.0)                   # resnet features (S, 24)

    # token embedding + positional embedding                      -> (S, 32)
    tok = mm(feat, ew, eb) + pos[...]

    # --- transformer encoder layer (pre-LN) ---
    h1 = ln(tok, ln1g, ln1b)
    qkv = mm(h1, qkvw, qkvb)                         # (S, 3*D)
    d_model = heads * d_head
    scale = 1.0 / (d_head ** 0.5)
    q = qkv[:, 0:d_model] * scale
    k = qkv[:, d_model:2 * d_model]
    v = qkv[:, 2 * d_model:3 * d_model]

    dn = (((1,), (1,)), ((), ()))                    # contract last dims: q @ k^T
    head_outs = []
    for hh in range(heads):
        lo, hi = hh * d_head, (hh + 1) * d_head
        qh = q[:, lo:hi].astype(bf16)
        kh = k[:, lo:hi].astype(bf16)
        vh = v[:, lo:hi].astype(bf16)
        s = jax.lax.dot_general(qh, kh, dn, preferred_element_type=f32)   # (S, S)
        s = s - jnp.max(s, axis=-1, keepdims=True)
        e = jnp.exp(s)
        inv = pl.reciprocal(jnp.sum(e, axis=-1, keepdims=True), approx=True)
        o = jnp.dot(e.astype(bf16), vh, preferred_element_type=f32) * inv  # (S, Dh)
        head_outs.append(o)
    attn = jnp.concatenate(head_outs, axis=-1)       # lane-dense (S, D)

    x2 = tok + mm(attn, pw, pb)                      # residual add (fused)
    h2 = mm(ln(x2, ln2g, ln2b), m1w, m1b, relu=True)
    h2 = mm(h2, m2w, m2b)
    x2 = x2 + h2                                     # residual add (fused)
    xf = ln(x2, lnfg, lnfb)                          # (S, D)

    # TRN-style relation pooling + 2-way classifier (affine commutes with mean)
    logits_tok = mm(xf, cw, cb)                      # (S, 2)
    out_ref[0] = jnp.mean(logits_tok, axis=0, keepdims=True).astype(out_ref.dtype)


def pallas_fused_trsf_trn(patches2, weights, *, heads, d_head):
    B, S, Kc = patches2.shape
    kernel = functools.partial(_fused_trsf_trn_kernel, heads=heads, d_head=d_head)
    in_specs = [pl.BlockSpec((1, S, Kc), lambda b: (b, 0, 0))]
    in_specs += [pl.BlockSpec(w.shape, lambda b: (0, 0)) for w in weights]
    out = pl.pallas_call(
        kernel,
        out_shape=jax.ShapeDtypeStruct((B, 1, 2), jnp.float32),
        grid=(B,),
        in_specs=in_specs,
        out_specs=pl.BlockSpec((1, 1, 2), lambda b: (b, 0, 0)),
        compiler_params=pltpu.CompilerParams(dimension_semantics=("parallel",)),
    )(patches2, *weights)
    return out.reshape(B, 2)


# ----------------------------------------------------------------------------
# JAX glue: im2col so stride-2 convs become GEMMs
# ----------------------------------------------------------------------------
def im2col(x_nhwc, kh, kw, stride, pad):
    x = jnp.pad(x_nhwc, ((0, 0), (pad, pad), (pad, pad), (0, 0)))
    B, H, W, C = x.shape
    out_h = (H - kh) // stride + 1
    out_w = (W - kw) // stride + 1
    patches = []
    for i in range(kh):
        for j in range(kw):
            patches.append(
                x[:, i:i + stride * out_h:stride, j:j + stride * out_w:stride, :])
    return jnp.concatenate(patches, axis=-1), out_h, out_w   # (B, oh, ow, kh*kw*C)


# ----------------------------------------------------------------------------
# Parameters (deterministic, synthetic)
# ----------------------------------------------------------------------------
def init_params():
    key = jax.random.PRNGKey(42)

    def nxt():
        nonlocal key
        key, sub = jax.random.split(key)
        return sub

    def dense(k_in, k_out):
        w = jax.random.normal(nxt(), (k_in, k_out), jnp.float32) * (1.0 / jnp.sqrt(k_in))
        b = jnp.zeros((k_out,), jnp.float32)
        return w, b

    p = {}
    # --- "resnet" stem + residual block (stand-in for resnet50) ---
    p["conv1_w"], p["conv1_b"] = dense(3 * 3 * 3, 16)     # 3x3 s2: 32 -> 16
    p["conv2_w"], p["conv2_b"] = dense(3 * 3 * 16, 24)    # 3x3 s2: 16 -> 8
    p["res_w1"], p["res_b1"] = dense(24, 24)              # 1x1 conv
    p["res_w2"], p["res_b2"] = dense(24, 24)              # 1x1 conv

    # --- TRSF (transformer) ---
    d_model, heads, d_head, d_ff = 32, 4, 8, 64
    p["embed_w"], p["embed_b"] = dense(24, d_model)
    p["pos_emb"] = jax.random.normal(nxt(), (64, d_model), jnp.float32) * 0.02
    p["ln1_g"], p["ln1_b"] = jnp.ones((d_model,)), jnp.zeros((d_model,))
    p["qkv_w"], p["qkv_b"] = dense(d_model, 3 * d_model)
    p["proj_w"], p["proj_b"] = dense(d_model, d_model)
    p["ln2_g"], p["ln2_b"] = jnp.ones((d_model,)), jnp.zeros((d_model,))
    p["mlp_w1"], p["mlp_b1"] = dense(d_model, d_ff)
    p["mlp_w2"], p["mlp_b2"] = dense(d_ff, d_model)
    p["lnf_g"], p["lnf_b"] = jnp.ones((d_model,)), jnp.zeros((d_model,))

    # --- TRN relation head / classifier (2 outputs) ---
    p["cls_w"], p["cls_b"] = dense(d_model, 2)
    p["_dims"] = (d_model, heads, d_head, d_ff)
    return p


# ----------------------------------------------------------------------------
# Forward pass
# ----------------------------------------------------------------------------
def res_trsf_trn_forward(params, images_nchw):
    p = params
    _, heads, d_head, _ = p["_dims"]
    B = images_nchw.shape[0]
    bf16 = jnp.bfloat16
    f32 = jnp.float32

    # NCHW -> NHWC
    x = jnp.transpose(images_nchw, (0, 2, 3, 1)).astype(f32)        # (B, 32, 32, 3)

    # conv1 3x3 s2 + relu: JAX im2col -> M-tiled Pallas GEMM (bf16 MXU operands)
    patches1, oh, ow = im2col(x, 3, 3, 2, 1)                         # (B, 16, 16, 27)
    c1 = pallas_matmul_bias_relu(
        patches1.reshape(B * oh * ow, -1).astype(bf16),
        p["conv1_w"].astype(bf16),
        p["conv1_b"].reshape(1, -1).astype(f32))
    c1 = c1.reshape(B, oh, ow, 16)                                   # bf16

    # conv2 im2col (JAX glue, bf16) -> everything downstream fused in ONE kernel
    patches2, oh2, ow2 = im2col(c1, 3, 3, 2, 1)                      # (B, 8, 8, 144)
    S = oh2 * ow2                                                    # 64 tokens
    patches2 = patches2.reshape(B, S, -1)

    def w2(name):                    # matmul weights as bf16
        return p[name].astype(bf16)

    def v2(name):                    # bias / LN / pos params as f32 2-D
        a = p[name].astype(f32)
        return a.reshape(1, -1) if a.ndim == 1 else a

    weights = [
        w2("conv2_w"), v2("conv2_b"),
        w2("res_w1"), v2("res_b1"), w2("res_w2"), v2("res_b2"),
        w2("embed_w"), v2("embed_b"), v2("pos_emb"),
        v2("ln1_g"), v2("ln1_b"),
        w2("qkv_w"), v2("qkv_b"), w2("proj_w"), v2("proj_b"),
        v2("ln2_g"), v2("ln2_b"),
        w2("mlp_w1"), v2("mlp_b1"), w2("mlp_w2"), v2("mlp_b2"),
        v2("lnf_g"), v2("lnf_b"),
        w2("cls_w"), v2("cls_b"),
    ]

    logits = pallas_fused_trsf_trn(patches2, weights, heads=heads, d_head=d_head)
    return logits                                                    # (B, 2)


if __name__ == "__main__":
    params = init_params()
    images = jax.random.normal(jax.random.PRNGKey(0), (2, 3, 32, 32), jnp.float32)  # NCHW
    out = jax.jit(functools.partial(res_trsf_trn_forward, params))(images)
    out = jax.block_until_ready(out)
    assert out.shape == (2, 2), out.shape
    print("KERNEL_OK")
</pallas_src>

<mosaic_0001>
module attributes {stable_mosaic.version = 11 : i64} {
  func.func @_matmul_bias_relu_kernel(%arg0: i32, %arg1: memref<512x27xbf16, #tpu.memory_space<vmem>>, %arg2: memref<27x16xbf16, #tpu.memory_space<vmem>>, %arg3: memref<1x16xf32, #tpu.memory_space<vmem>>, %arg4: memref<512x16xbf16, #tpu.memory_space<vmem>>) attributes {dimension_semantics = [#tpu.dimension_semantics<parallel>], iteration_bounds = array<i64: 1>, scalar_prefetch = 0 : i64, scratch_operands = 0 : i64, tpu.core_type = #tpu.core_type<tc>, window_params = [{transform_indices = @transform_0, window_bounds = array<i64: 512, 27>}, {pipeline_mode = #tpu.pipeline_mode<synchronous>, transform_indices = @transform_1, window_bounds = array<i64: 27, 16>}, {pipeline_mode = #tpu.pipeline_mode<synchronous>, transform_indices = @transform_2, window_bounds = array<i64: 1, 16>}, {transform_indices = @transform_3, window_bounds = array<i64: 512, 16>}]} {
    %c0 = arith.constant 0 : index
    %c0_0 = arith.constant 0 : index
    %0 = vector.load %arg1[%c0, %c0_0] : memref<512x27xbf16, #tpu.memory_space<vmem>>, vector<512x27xbf16>
    %c0_1 = arith.constant 0 : index
    %c0_2 = arith.constant 0 : index
    %1 = vector.load %arg2[%c0_1, %c0_2] : memref<27x16xbf16, #tpu.memory_space<vmem>>, vector<27x16xbf16>
    %cst = arith.constant dense<0.000000e+00> : vector<512x16xf32>
    %2 = tpu.matmul %0, %1, %cst {dimension_numbers = #tpu.dot_dimension_numbers<[1], [0], [0], [1], [0, 0, 1, 1], [], []>} : vector<512x27xbf16>, vector<27x16xbf16>, vector<512x16xf32> -> vector<512x16xf32>
    %c0_3 = arith.constant 0 : index
    %c0_4 = arith.constant 0 : index
    %3 = vector.load %arg3[%c0_3, %c0_4] : memref<1x16xf32, #tpu.memory_space<vmem>>, vector<1x16xf32>
    %4 = vector.broadcast %3 : vector<1x16xf32> to vector<512x16xf32>
    %5 = arith.addf %2, %4 : vector<512x16xf32>
    %cst_5 = arith.constant 0.000000e+00 : f32
    %6 = vector.broadcast %cst_5 : f32 to vector<512x16xf32>
    %7 = arith.maximumf %5, %6 : vector<512x16xf32>
    %8 = arith.truncf %7 : vector<512x16xf32> to vector<512x16xbf16>
    %c0_6 = arith.constant 0 : index
    %c0_7 = arith.constant 0 : index
    %9 = vector.load %arg4[%c0_6, %c0_7] : memref<512x16xbf16, #tpu.memory_space<vmem>>, vector<512x16xbf16>
    tpu.vector_store %arg4[%c0_6, %c0_7], %8 {strides = array<i32>} : memref<512x16xbf16, #tpu.memory_space<vmem>>, vector<512x16xbf16>,
    return
  }
  func.func @transform_0(%arg0: i32) -> (i32, i32) {
    %c0_i32 = arith.constant 0 : i32
    %c0_i32_0 = arith.constant 0 : i32
    return %arg0, %c0_i32 : i32, i32
  }
  func.func @transform_1(%arg0: i32) -> (i32, i32) {
    %c0_i32 = arith.constant 0 : i32
    %c0_i32_0 = arith.constant 0 : i32
    %c0_i32_1 = arith.constant 0 : i32
    return %c0_i32, %c0_i32_0 : i32, i32
  }
  func.func @transform_2(%arg0: i32) -> (i32, i32) {
    %c0_i32 = arith.constant 0 : i32
    %c0_i32_0 = arith.constant 0 : i32
    %c0_i32_1 = arith.constant 0 : i32
    return %c0_i32, %c0_i32_0 : i32, i32
  }
  func.func @transform_3(%arg0: i32) -> (i32, i32) {
    %c0_i32 = arith.constant 0 : i32
    %c0_i32_0 = arith.constant 0 : i32
    return %arg0, %c0_i32 : i32, i32
  }
}

module attributes {stable_mosaic.version = 11 : i64} {
  func.func @_fused_trsf_trn_kernel(%arg0: i32, %arg1: memref<1x64x144xbf16, #tpu.memory_space<vmem>>, %arg2: memref<144x24xbf16, #tpu.memory_space<vmem>>, %arg3: memref<1x24xf32, #tpu.memory_space<vmem>>, %arg4: memref<24x24xbf16, #tpu.memory_space<vmem>>, %arg5: memref<1x24xf32, #tpu.memory_space<vmem>>, %arg6: memref<24x24xbf16, #tpu.memory_space<vmem>>, %arg7: memref<1x24xf32, #tpu.memory_space<vmem>>, %arg8: memref<24x32xbf16, #tpu.memory_space<vmem>>, %arg9: memref<1x32xf32, #tpu.memory_space<vmem>>, %arg10: memref<64x32xf32, #tpu.memory_space<vmem>>, %arg11: memref<1x32xf32, #tpu.memory_space<vmem>>, %arg12: memref<1x32xf32, #tpu.memory_space<vmem>>, %arg13: memref<32x96xbf16, #tpu.memory_space<vmem>>, %arg14: memref<1x96xf32, #tpu.memory_space<vmem>>, %arg15: memref<32x32xbf16, #tpu.memory_space<vmem>>, %arg16: memref<1x32xf32, #tpu.memory_space<vmem>>, %arg17: memref<1x32xf32, #tpu.memory_space<vmem>>, %arg18: memref<1x32xf32, #tpu.memory_space<vmem>>, %arg19: memref<32x64xbf16, #tpu.memory_space<vmem>>, %arg20: memref<1x64xf32, #tpu.memory_space<vmem>>, %arg21: memref<64x32xbf16, #tpu.memory_space<vmem>>, %arg22: memref<1x32xf32, #tpu.memory_space<vmem>>, %arg23: memref<1x32xf32, #tpu.memory_space<vmem>>, %arg24: memref<1x32xf32, #tpu.memory_space<vmem>>, %arg25: memref<32x2xbf16, #tpu.memory_space<vmem>>, %arg26: memref<1x2xf32, #tpu.memory_space<vmem>>, %arg27: memref<1x1x2xf32, #tpu.memory_space<vmem>>) attributes {dimension_semantics = [#tpu.dimension_semantics<parallel>], iteration_bounds = array<i64: 2>, scalar_prefetch = 0 : i64, scratch_operands = 0 : i64, tpu.core_type = #tpu.core_type<tc>, window_params = [{transform_indices = @transform_0, window_bounds = array<i64: 1, 64, 144>}, {pipeline_mode = #tpu.pipeline_mode<synchronous>, transform_indices = @transform_1, window_bounds = array<i64: 144, 24>}, {pipeline_mode = #tpu.pipeline_mode<synchronous>, transform_indices = @transform_2, window_bounds = array<i64: 1, 24>}, {pipeline_mode = #tpu.pipeline_mode<synchronous>, transform_indices = @transform_3, window_bounds = array<i64: 24, 24>}, {pipeline_mode = #tpu.pipeline_mode<synchronous>, transform_indices = @transform_4, window_bounds = array<i64: 1, 24>}, {pipeline_mode = #tpu.pipeline_mode<synchronous>, transform_indices = @transform_5, window_bounds = array<i64: 24, 24>}, {pipeline_mode = #tpu.pipeline_mode<synchronous>, transform_indices = @transform_6, window_bounds = array<i64: 1, 24>}, {pipeline_mode = #tpu.pipeline_mode<synchronous>, transform_indices = @transform_7, window_bounds = array<i64: 24, 32>}, {pipeline_mode = #tpu.pipeline_mode<synchronous>, transform_indices = @transform_8, window_bounds = array<i64: 1, 32>}, {pipeline_mode = #tpu.pipeline_mode<synchronous>, transform_indices = @transform_9, window_bounds = array<i64: 64, 32>}, {pipeline_mode = #tpu.pipeline_mode<synchronous>, transform_indices = @transform_10, window_bounds = array<i64: 1, 32>}, {pipeline_mode = #tpu.pipeline_mode<synchronous>, transform_indices = @transform_11, window_bounds = array<i64: 1, 32>}, {pipeline_mode = #tpu.pipeline_mode<synchronous>, transform_indices = @transform_12, window_bounds = array<i64: 32, 96>}, {pipeline_mode = #tpu.pipeline_mode<synchronous>, transform_indices = @transform_13, window_bounds = array<i64: 1, 96>}, {pipeline_mode = #tpu.pipeline_mode<synchronous>, transform_indices = @transform_14, window_bounds = array<i64: 32, 32>}, {pipeline_mode = #tpu.pipeline_mode<synchronous>, transform_indices = @transform_15, window_bounds = array<i64: 1, 32>}, {pipeline_mode = #tpu.pipeline_mode<synchronous>, transform_indices = @transform_16, window_bounds = array<i64: 1, 32>}, {pipeline_mode = #tpu.pipeline_mode<synchronous>, transform_indices = @transform_17, window_bounds = array<i64: 1, 32>}, {pipeline_mode = #tpu.pipeline_mode<synchronous>, transform_indices = @transform_18, window_bounds = array<i64: 32, 64>}, {pipeline_mode = #tpu.pipeline_mode<synchronous>, transform_indices = @transform_19, window_bounds = array<i64: 1, 64>}, {pipeline_mode = #tpu.pipeline_mode<synchronous>, transform_indices = @transform_20, window_bounds = array<i64: 64, 32>}, {pipeline_mode = #tpu.pipeline_mode<synchronous>, transform_indices = @transform_21, window_bounds = array<i64: 1, 32>}, {pipeline_mode = #tpu.pipeline_mode<synchronous>, transform_indices = @transform_22, window_bounds = array<i64: 1, 32>}, {pipeline_mode = #tpu.pipeline_mode<synchronous>, transform_indices = @transform_23, window_bounds = array<i64: 1, 32>}, {pipeline_mode = #tpu.pipeline_mode<synchronous>, transform_indices = @transform_24, window_bounds = array<i64: 32, 2>}, {pipeline_mode = #tpu.pipeline_mode<synchronous>, transform_indices = @transform_25, window_bounds = array<i64: 1, 2>}, {transform_indices = @transform_26, window_bounds = array<i64: 1, 1, 2>}]} {
    %c0 = arith.constant 0 : index
    %c0_0 = arith.constant 0 : index
    %c0_1 = arith.constant 0 : index
    %0 = vector.load %arg1[%c0, %c0_0, %c0_1] : memref<1x64x144xbf16, #tpu.memory_space<vmem>>, vector<1x64x144xbf16>
    %1 = vector.shape_cast %0 : vector<1x64x144xbf16> to vector<64x144xbf16>
    %c0_2 = arith.constant 0 : index
    %c0_3 = arith.constant 0 : index
    %2 = vector.load %arg2[%c0_2, %c0_3] : memref<144x24xbf16, #tpu.memory_space<vmem>>, vector<144x24xbf16>
    %cst = arith.constant dense<0.000000e+00> : vector<64x24xf32>
    %3 = tpu.matmul %1, %2, %cst {dimension_numbers = #tpu.dot_dimension_numbers<[1], [0], [0], [1], [0, 0, 1, 1], [], []>} : vector<64x144xbf16>, vector<144x24xbf16>, vector<64x24xf32> -> vector<64x24xf32>
    %c0_4 = arith.constant 0 : index
    %c0_5 = arith.constant 0 : index
    %4 = vector.load %arg3[%c0_4, %c0_5] : memref<1x24xf32, #tpu.memory_space<vmem>>, vector<1x24xf32>
    %5 = vector.broadcast %4 : vector<1x24xf32> to vector<64x24xf32>
    %6 = arith.addf %3, %5 : vector<64x24xf32>
    %cst_6 = arith.constant 0.000000e+00 : f32
    %7 = vector.broadcast %cst_6 : f32 to vector<64x24xf32>
    %8 = arith.maximumf %6, %7 : vector<64x24xf32>
    %9 = arith.truncf %8 : vector<64x24xf32> to vector<64x24xbf16>
    %c0_7 = arith.constant 0 : index
    %c0_8 = arith.constant 0 : index
    %10 = vector.load %arg4[%c0_7, %c0_8] : memref<24x24xbf16, #tpu.memory_space<vmem>>, vector<24x24xbf16>
    %cst_9 = arith.constant dense<0.000000e+00> : vector<64x24xf32>
    %11 = tpu.matmul %9, %10, %cst_9 {dimension_numbers = #tpu.dot_dimension_numbers<[1], [0], [0], [1], [0, 0, 1, 1], [], []>} : vector<64x24xbf16>, vector<24x24xbf16>, vector<64x24xf32> -> vector<64x24xf32>
    %c0_10 = arith.constant 0 : index
    %c0_11 = arith.constant 0 : index
    %12 = vector.load %arg5[%c0_10, %c0_11] : memref<1x24xf32, #tpu.memory_space<vmem>>, vector<1x24xf32>
    %13 = vector.broadcast %12 : vector<1x24xf32> to vector<64x24xf32>
    %14 = arith.addf %11, %13 : vector<64x24xf32>
    %cst_12 = arith.constant 0.000000e+00 : f32
    %15 = vector.broadcast %cst_12 : f32 to vector<64x24xf32>
    %16 = arith.maximumf %14, %15 : vector<64x24xf32>
    %17 = arith.truncf %16 : vector<64x24xf32> to vector<64x24xbf16>
    %c0_13 = arith.constant 0 : index
    %c0_14 = arith.constant 0 : index
    %18 = vector.load %arg6[%c0_13, %c0_14] : memref<24x24xbf16, #tpu.memory_space<vmem>>, vector<24x24xbf16>
    %cst_15 = arith.constant dense<0.000000e+00> : vector<64x24xf32>
    %19 = tpu.matmul %17, %18, %cst_15 {dimension_numbers = #tpu.dot_dimension_numbers<[1], [0], [0], [1], [0, 0, 1, 1], [], []>} : vector<64x24xbf16>, vector<24x24xbf16>, vector<64x24xf32> -> vector<64x24xf32>
    %c0_16 = arith.constant 0 : index
    %c0_17 = arith.constant 0 : index
    %20 = vector.load %arg7[%c0_16, %c0_17] : memref<1x24xf32, #tpu.memory_space<vmem>>, vector<1x24xf32>
    %21 = vector.broadcast %20 : vector<1x24xf32> to vector<64x24xf32>
    %22 = arith.addf %19, %21 : vector<64x24xf32>
    %23 = arith.addf %8, %22 : vector<64x24xf32>
    %cst_18 = arith.constant 0.000000e+00 : f32
    %24 = vector.broadcast %cst_18 : f32 to vector<64x24xf32>
    %25 = arith.maximumf %23, %24 : vector<64x24xf32>
    %26 = arith.truncf %25 : vector<64x24xf32> to vector<64x24xbf16>
    %c0_19 = arith.constant 0 : index
    %c0_20 = arith.constant 0 : index
    %27 = vector.load %arg8[%c0_19, %c0_20] : memref<24x32xbf16, #tpu.memory_space<vmem>>, vector<24x32xbf16>
    %cst_21 = arith.constant dense<0.000000e+00> : vector<64x32xf32>
    %28 = tpu.matmul %26, %27, %cst_21 {dimension_numbers = #tpu.dot_dimension_numbers<[1], [0], [0], [1], [0, 0, 1, 1], [], []>} : vector<64x24xbf16>, vector<24x32xbf16>, vector<64x32xf32> -> vector<64x32xf32>
    %c0_22 = arith.constant 0 : index
    %c0_23 = arith.constant 0 : index
    %29 = vector.load %arg9[%c0_22, %c0_23] : memref<1x32xf32, #tpu.memory_space<vmem>>, vector<1x32xf32>
    %30 = vector.broadcast %29 : vector<1x32xf32> to vector<64x32xf32>
    %31 = arith.addf %28, %30 : vector<64x32xf32>
    %c0_24 = arith.constant 0 : index
    %c0_25 = arith.constant 0 : index
    %32 = vector.load %arg10[%c0_24, %c0_25] : memref<64x32xf32, #tpu.memory_space<vmem>>, vector<64x32xf32>
    %33 = arith.addf %31, %32 : vector<64x32xf32>
    %cst_26 = arith.constant dense<0.000000e+00> : vector<64xf32>
    %34 = vector.multi_reduction <add>, %33, %cst_26 [1] : vector<64x32xf32> to vector<64xf32>
    %35 = vector.shape_cast %34 : vector<64xf32> to vector<64x1xf32>
    %cst_27 = arith.constant 3.200000e+01 : f32
    %36 = vector.broadcast %cst_27 : f32 to vector<64x1xf32>
    %37 = arith.divf %35, %36 : vector<64x1xf32>
    %38 = vector.broadcast %37 : vector<64x1xf32> to vector<64x32xf32>
    %39 = arith.subf %33, %38 : vector<64x32xf32>
    %40 = arith.mulf %39, %39 : vector<64x32xf32>
    %cst_28 = arith.constant dense<0.000000e+00> : vector<64xf32>
    %41 = vector.multi_reduction <add>, %40, %cst_28 [1] : vector<64x32xf32> to vector<64xf32>
    %42 = vector.shape_cast %41 : vector<64xf32> to vector<64x1xf32>
    %cst_29 = arith.constant 3.200000e+01 : f32
    %43 = vector.broadcast %cst_29 : f32 to vector<64x1xf32>
    %44 = arith.divf %42, %43 : vector<64x1xf32>
    %45 = vector.broadcast %37 : vector<64x1xf32> to vector<64x32xf32>
    %46 = arith.subf %33, %45 : vector<64x32xf32>
    %cst_30 = arith.constant 9.99999974E-6 : f32
    %47 = vector.broadcast %cst_30 : f32 to vector<64x1xf32>
    %48 = arith.addf %44, %47 : vector<64x1xf32>
    %49 = math.rsqrt %48 : vector<64x1xf32>
    %50 = vector.broadcast %49 : vector<64x1xf32> to vector<64x32xf32>
    %51 = arith.mulf %46, %50 : vector<64x32xf32>
    %c0_31 = arith.constant 0 : index
    %c0_32 = arith.constant 0 : index
    %52 = vector.load %arg11[%c0_31, %c0_32] : memref<1x32xf32, #tpu.memory_space<vmem>>, vector<1x32xf32>
    %53 = vector.broadcast %52 : vector<1x32xf32> to vector<64x32xf32>
    %54 = arith.mulf %51, %53 : vector<64x32xf32>
    %c0_33 = arith.constant 0 : index
    %c0_34 = arith.constant 0 : index
    %55 = vector.load %arg12[%c0_33, %c0_34] : memref<1x32xf32, #tpu.memory_space<vmem>>, vector<1x32xf32>
    %56 = vector.broadcast %55 : vector<1x32xf32> to vector<64x32xf32>
    %57 = arith.addf %54, %56 : vector<64x32xf32>
    %58 = arith.truncf %57 : vector<64x32xf32> to vector<64x32xbf16>
    %c0_35 = arith.constant 0 : index
    %c0_36 = arith.constant 0 : index
    %59 = vector.load %arg13[%c0_35, %c0_36] : memref<32x96xbf16, #tpu.memory_space<vmem>>, vector<32x96xbf16>
    %cst_37 = arith.constant dense<0.000000e+00> : vector<64x96xf32>
    %60 = tpu.matmul %58, %59, %cst_37 {dimension_numbers = #tpu.dot_dimension_numbers<[1], [0], [0], [1], [0, 0, 1, 1], [], []>} : vector<64x32xbf16>, vector<32x96xbf16>, vector<64x96xf32> -> vector<64x96xf32>
    %c0_38 = arith.constant 0 : index
    %c0_39 = arith.constant 0 : index
    %61 = vector.load %arg14[%c0_38, %c0_39] : memref<1x96xf32, #tpu.memory_space<vmem>>, vector<1x96xf32>
    %62 = vector.broadcast %61 : vector<1x96xf32> to vector<64x96xf32>
    %63 = arith.addf %60, %62 : vector<64x96xf32>
    %64 = vector.extract_strided_slice %63 {offsets = [0, 0], sizes = [64, 32], strides = [1, 1]} : vector<64x96xf32> to vector<64x32xf32>
    %cst_40 = arith.constant 0.353553385 : f32
    %65 = vector.broadcast %cst_40 : f32 to vector<64x32xf32>
    %66 = arith.mulf %64, %65 : vector<64x32xf32>
    %67 = vector.extract_strided_slice %63 {offsets = [0, 32], sizes = [64, 32], strides = [1, 1]} : vector<64x96xf32> to vector<64x32xf32>
    %68 = vector.extract_strided_slice %63 {offsets = [0, 64], sizes = [64, 32], strides = [1, 1]} : vector<64x96xf32> to vector<64x32xf32>
    %69 = vector.extract_strided_slice %66 {offsets = [0, 0], sizes = [64, 8], strides = [1, 1]} : vector<64x32xf32> to vector<64x8xf32>
    %70 = arith.truncf %69 : vector<64x8xf32> to vector<64x8xbf16>
    %71 = vector.extract_strided_slice %67 {offsets = [0, 0], sizes = [64, 8], strides = [1, 1]} : vector<64x32xf32> to vector<64x8xf32>
    %72 = arith.truncf %71 : vector<64x8xf32> to vector<64x8xbf16>
    %73 = vector.extract_strided_slice %68 {offsets = [0, 0], sizes = [64, 8], strides = [1, 1]} : vector<64x32xf32> to vector<64x8xf32>
    %74 = arith.truncf %73 : vector<64x8xf32> to vector<64x8xbf16>
    %cst_41 = arith.constant dense<0.000000e+00> : vector<64x64xf32>
    %75 = tpu.matmul %70, %72, %cst_41 {dimension_numbers = #tpu.dot_dimension_numbers<[1], [1], [0], [0], [0, 0, 1, 0], [], []>} : vector<64x8xbf16>, vector<64x8xbf16>, vector<64x64xf32> -> vector<64x64xf32>
    %cst_42 = arith.constant dense<0xFF800000> : vector<64xf32>
    %76 = vector.multi_reduction <maximumf>, %75, %cst_42 [1] : vector<64x64xf32> to vector<64xf32>
    %77 = vector.shape_cast %76 : vector<64xf32> to vector<64x1xf32>
    %78 = vector.broadcast %77 : vector<64x1xf32> to vector<64x64xf32>
    %79 = arith.subf %75, %78 : vector<64x64xf32>
    %80 = math.exp %79 : vector<64x64xf32>
    %cst_43 = arith.constant dense<0.000000e+00> : vector<64xf32>
    %81 = vector.multi_reduction <add>, %80, %cst_43 [1] : vector<64x64xf32> to vector<64xf32>
    %82 = vector.shape_cast %81 : vector<64xf32> to vector<64x1xf32>
    %83 = tpu.reciprocal %82 {approx = true} : vector<64x1xf32> -> vector<64x1xf32>
    %84 = arith.truncf %80 : vector<64x64xf32> to vector<64x64xbf16>
    %cst_44 = arith.constant dense<0.000000e+00> : vector<64x8xf32>
    %85 = tpu.matmul %84, %74, %cst_44 {dimension_numbers = #tpu.dot_dimension_numbers<[1], [0], [0], [1], [0, 0, 1, 1], [], []>} : vector<64x64xbf16>, vector<64x8xbf16>, vector<64x8xf32> -> vector<64x8xf32>
    %86 = vector.broadcast %83 : vector<64x1xf32> to vector<64x8xf32>
    %87 = arith.mulf %85, %86 : vector<64x8xf32>
    %88 = vector.extract_strided_slice %66 {offsets = [0, 8], sizes = [64, 8], strides = [1, 1]} : vector<64x32xf32> to vector<64x8xf32>
    %89 = arith.truncf %88 : vector<64x8xf32> to vector<64x8xbf16>
    %90 = vector.extract_strided_slice %67 {offsets = [0, 8], sizes = [64, 8], strides = [1, 1]} : vector<64x32xf32> to vector<64x8xf32>
    %91 = arith.truncf %90 : vector<64x8xf32> to vector<64x8xbf16>
    %92 = vector.extract_strided_slice %68 {offsets = [0, 8], sizes = [64, 8], strides = [1, 1]} : vector<64x32xf32> to vector<64x8xf32>
    %93 = arith.truncf %92 : vector<64x8xf32> to vector<64x8xbf16>
    %cst_45 = arith.constant dense<0.000000e+00> : vector<64x64xf32>
    %94 = tpu.matmul %89, %91, %cst_45 {dimension_numbers = #tpu.dot_dimension_numbers<[1], [1], [0], [0], [0, 0, 1, 0], [], []>} : vector<64x8xbf16>, vector<64x8xbf16>, vector<64x64xf32> -> vector<64x64xf32>
    %cst_46 = arith.constant dense<0xFF800000> : vector<64xf32>
    %95 = vector.multi_reduction <maximumf>, %94, %cst_46 [1] : vector<64x64xf32> to vector<64xf32>
    %96 = vector.shape_cast %95 : vector<64xf32> to vector<64x1xf32>
    %97 = vector.broadcast %96 : vector<64x1xf32> to vector<64x64xf32>
    %98 = arith.subf %94, %97 : vector<64x64xf32>
    %99 = math.exp %98 : vector<64x64xf32>
    %cst_47 = arith.constant dense<0.000000e+00> : vector<64xf32>
    %100 = vector.multi_reduction <add>, %99, %cst_47 [1] : vector<64x64xf32> to vector<64xf32>
    %101 = vector.shape_cast %100 : vector<64xf32> to vector<64x1xf32>
    %102 = tpu.reciprocal %101 {approx = true} : vector<64x1xf32> -> vector<64x1xf32>
    %103 = arith.truncf %99 : vector<64x64xf32> to vector<64x64xbf16>
    %cst_48 = arith.constant dense<0.000000e+00> : vector<64x8xf32>
    %104 = tpu.matmul %103, %93, %cst_48 {dimension_numbers = #tpu.dot_dimension_numbers<[1], [0], [0], [1], [0, 0, 1, 1], [], []>} : vector<64x64xbf16>, vector<64x8xbf16>, vector<64x8xf32> -> vector<64x8xf32>
    %105 = vector.broadcast %102 : vector<64x1xf32> to vector<64x8xf32>
    %106 = arith.mulf %104, %105 : vector<64x8xf32>
    %107 = vector.extract_strided_slice %66 {offsets = [0, 16], sizes = [64, 8], strides = [1, 1]} : vector<64x32xf32> to vector<64x8xf32>
    %108 = arith.truncf %107 : vector<64x8xf32> to vector<64x8xbf16>
    %109 = vector.extract_strided_slice %67 {offsets = [0, 16], sizes = [64, 8], strides = [1, 1]} : vector<64x32xf32> to vector<64x8xf32>
    %110 = arith.truncf %109 : vector<64x8xf32> to vector<64x8xbf16>
    %111 = vector.extract_strided_slice %68 {offsets = [0, 16], sizes = [64, 8], strides = [1, 1]} : vector<64x32xf32> to vector<64x8xf32>
    %112 = arith.truncf %111 : vector<64x8xf32> to vector<64x8xbf16>
    %cst_49 = arith.constant dense<0.000000e+00> : vector<64x64xf32>
    %113 = tpu.matmul %108, %110, %cst_49 {dimension_numbers = #tpu.dot_dimension_numbers<[1], [1], [0], [0], [0, 0, 1, 0], [], []>} : vector<64x8xbf16>, vector<64x8xbf16>, vector<64x64xf32> -> vector<64x64xf32>
    %cst_50 = arith.constant dense<0xFF800000> : vector<64xf32>
    %114 = vector.multi_reduction <maximumf>, %113, %cst_50 [1] : vector<64x64xf32> to vector<64xf32>
    %115 = vector.shape_cast %114 : vector<64xf32> to vector<64x1xf32>
    %116 = vector.broadcast %115 : vector<64x1xf32> to vector<64x64xf32>
    %117 = arith.subf %113, %116 : vector<64x64xf32>
    %118 = math.exp %117 : vector<64x64xf32>
    %cst_51 = arith.constant dense<0.000000e+00> : vector<64xf32>
    %119 = vector.multi_reduction <add>, %118, %cst_51 [1] : vector<64x64xf32> to vector<64xf32>
    %120 = vector.shape_cast %119 : vector<64xf32> to vector<64x1xf32>
    %121 = tpu.reciprocal %120 {approx = true} : vector<64x1xf32> -> vector<64x1xf32>
    %122 = arith.truncf %118 : vector<64x64xf32> to vector<64x64xbf16>
    %cst_52 = arith.constant dense<0.000000e+00> : vector<64x8xf32>
    %123 = tpu.matmul %122, %112, %cst_52 {dimension_numbers = #tpu.dot_dimension_numbers<[1], [0], [0], [1], [0, 0, 1, 1], [], []>} : vector<64x64xbf16>, vector<64x8xbf16>, vector<64x8xf32> -> vector<64x8xf32>
    %124 = vector.broadcast %121 : vector<64x1xf32> to vector<64x8xf32>
    %125 = arith.mulf %123, %124 : vector<64x8xf32>
    %126 = vector.extract_strided_slice %66 {offsets = [0, 24], sizes = [64, 8], strides = [1, 1]} : vector<64x32xf32> to vector<64x8xf32>
    %127 = arith.truncf %126 : vector<64x8xf32> to vector<64x8xbf16>
    %128 = vector.extract_strided_slice %67 {offsets = [0, 24], sizes = [64, 8], strides = [1, 1]} : vector<64x32xf32> to vector<64x8xf32>
    %129 = arith.truncf %128 : vector<64x8xf32> to vector<64x8xbf16>
    %130 = vector.extract_strided_slice %68 {offsets = [0, 24], sizes = [64, 8], strides = [1, 1]} : vector<64x32xf32> to vector<64x8xf32>
    %131 = arith.truncf %130 : vector<64x8xf32> to vector<64x8xbf16>
    %cst_53 = arith.constant dense<0.000000e+00> : vector<64x64xf32>
    %132 = tpu.matmul %127, %129, %cst_53 {dimension_numbers = #tpu.dot_dimension_numbers<[1], [1], [0], [0], [0, 0, 1, 0], [], []>} : vector<64x8xbf16>, vector<64x8xbf16>, vector<64x64xf32> -> vector<64x64xf32>
    %cst_54 = arith.constant dense<0xFF800000> : vector<64xf32>
    %133 = vector.multi_reduction <maximumf>, %132, %cst_54 [1] : vector<64x64xf32> to vector<64xf32>
    %134 = vector.shape_cast %133 : vector<64xf32> to vector<64x1xf32>
    %135 = vector.broadcast %134 : vector<64x1xf32> to vector<64x64xf32>
    %136 = arith.subf %132, %135 : vector<64x64xf32>
    %137 = math.exp %136 : vector<64x64xf32>
    %cst_55 = arith.constant dense<0.000000e+00> : vector<64xf32>
    %138 = vector.multi_reduction <add>, %137, %cst_55 [1] : vector<64x64xf32> to vector<64xf32>
    %139 = vector.shape_cast %138 : vector<64xf32> to vector<64x1xf32>
    %140 = tpu.reciprocal %139 {approx = true} : vector<64x1xf32> -> vector<64x1xf32>
    %141 = arith.truncf %137 : vector<64x64xf32> to vector<64x64xbf16>
    %cst_56 = arith.constant dense<0.000000e+00> : vector<64x8xf32>
    %142 = tpu.matmul %141, %131, %cst_56 {dimension_numbers = #tpu.dot_dimension_numbers<[1], [0], [0], [1], [0, 0, 1, 1], [], []>} : vector<64x64xbf16>, vector<64x8xbf16>, vector<64x8xf32> -> vector<64x8xf32>
    %143 = vector.broadcast %140 : vector<64x1xf32> to vector<64x8xf32>
    %144 = arith.mulf %142, %143 : vector<64x8xf32>
    %145 = tpu.concatenate %87, %106, %125, %144 in 1 : vector<64x8xf32>, vector<64x8xf32>, vector<64x8xf32>, vector<64x8xf32> -> vector<64x32xf32>
    %146 = arith.truncf %145 : vector<64x32xf32> to vector<64x32xbf16>
    %c0_57 = arith.constant 0 : index
    %c0_58 = arith.constant 0 : index
    %147 = vector.load %arg15[%c0_57, %c0_58] : memref<32x32xbf16, #tpu.memory_space<vmem>>, vector<32x32xbf16>
    %cst_59 = arith.constant dense<0.000000e+00> : vector<64x32xf32>
    %148 = tpu.matmul %146, %147, %cst_59 {dimension_numbers = #tpu.dot_dimension_numbers<[1], [0], [0], [1], [0, 0, 1, 1], [], []>} : vector<64x32xbf16>, vector<32x32xbf16>, vector<64x32xf32> -> vector<64x32xf32>
    %c0_60 = arith.constant 0 : index
    %c0_61 = arith.constant 0 : index
    %149 = vector.load %arg16[%c0_60, %c0_61] : memref<1x32xf32, #tpu.memory_space<vmem>>, vector<1x32xf32>
    %150 = vector.broadcast %149 : vector<1x32xf32> to vector<64x32xf32>
    %151 = arith.addf %148, %150 : vector<64x32xf32>
    %152 = arith.addf %33, %151 : vector<64x32xf32>
    %cst_62 = arith.constant dense<0.000000e+00> : vector<64xf32>
    %153 = vector.multi_reduction <add>, %152, %cst_62 [1] : vector<64x32xf32> to vector<64xf32>
    %154 = vector.shape_cast %153 : vector<64xf32> to vector<64x1xf32>
    %cst_63 = arith.constant 3.200000e+01 : f32
    %155 = vector.broadcast %cst_63 : f32 to vector<64x1xf32>
    %156 = arith.divf %154, %155 : vector<64x1xf32>
    %157 = vector.broadcast %156 : vector<64x1xf32> to vector<64x32xf32>
    %158 = arith.subf %152, %157 : vector<64x32xf32>
    %159 = arith.mulf %158, %158 : vector<64x32xf32>
    %cst_64 = arith.constant dense<0.000000e+00> : vector<64xf32>
    %160 = vector.multi_reduction <add>, %159, %cst_64 [1] : vector<64x32xf32> to vector<64xf32>
    %161 = vector.shape_cast %160 : vector<64xf32> to vector<64x1xf32>
    %cst_65 = arith.constant 3.200000e+01 : f32
    %162 = vector.broadcast %cst_65 : f32 to vector<64x1xf32>
    %163 = arith.divf %161, %162 : vector<64x1xf32>
    %164 = vector.broadcast %156 : vector<64x1xf32> to vector<64x32xf32>
    %165 = arith.subf %152, %164 : vector<64x32xf32>
    %cst_66 = arith.constant 9.99999974E-6 : f32
    %166 = vector.broadcast %cst_66 : f32 to vector<64x1xf32>
    %167 = arith.addf %163, %166 : vector<64x1xf32>
    %168 = math.rsqrt %167 : vector<64x1xf32>
    %169 = vector.broadcast %168 : vector<64x1xf32> to vector<64x32xf32>
    %170 = arith.mulf %165, %169 : vector<64x32xf32>
    %c0_67 = arith.constant 0 : index
    %c0_68 = arith.constant 0 : index
    %171 = vector.load %arg17[%c0_67, %c0_68] : memref<1x32xf32, #tpu.memory_space<vmem>>, vector<1x32xf32>
    %172 = vector.broadcast %171 : vector<1x32xf32> to vector<64x32xf32>
    %173 = arith.mulf %170, %172 : vector<64x32xf32>
    %c0_69 = arith.constant 0 : index
    %c0_70 = arith.constant 0 : index
    %174 = vector.load %arg18[%c0_69, %c0_70] : memref<1x32xf32, #tpu.memory_space<vmem>>, vector<1x32xf32>
    %175 = vector.broadcast %174 : vector<1x32xf32> to vector<64x32xf32>
    %176 = arith.addf %173, %175 : vector<64x32xf32>
    %177 = arith.truncf %176 : vector<64x32xf32> to vector<64x32xbf16>
    %c0_71 = arith.constant 0 : index
    %c0_72 = arith.constant 0 : index
    %178 = vector.load %arg19[%c0_71, %c0_72] : memref<32x64xbf16, #tpu.memory_space<vmem>>, vector<32x64xbf16>
    %cst_73 = arith.constant dense<0.000000e+00> : vector<64x64xf32>
    %179 = tpu.matmul %177, %178, %cst_73 {dimension_numbers = #tpu.dot_dimension_numbers<[1], [0], [0], [1], [0, 0, 1, 1], [], []>} : vector<64x32xbf16>, vector<32x64xbf16>, vector<64x64xf32> -> vector<64x64xf32>
    %c0_74 = arith.constant 0 : index
    %c0_75 = arith.constant 0 : index
    %180 = vector.load %arg20[%c0_74, %c0_75] : memref<1x64xf32, #tpu.memory_space<vmem>>, vector<1x64xf32>
    %181 = vector.broadcast %180 : vector<1x64xf32> to vector<64x64xf32>
    %182 = arith.addf %179, %181 : vector<64x64xf32>
    %cst_76 = arith.constant 0.000000e+00 : f32
    %183 = vector.broadcast %cst_76 : f32 to vector<64x64xf32>
    %184 = arith.maximumf %182, %183 : vector<64x64xf32>
    %185 = arith.truncf %184 : vector<64x64xf32> to vector<64x64xbf16>
    %c0_77 = arith.constant 0 : index
    %c0_78 = arith.constant 0 : index
    %186 = vector.load %arg21[%c0_77, %c0_78] : memref<64x32xbf16, #tpu.memory_space<vmem>>, vector<64x32xbf16>
    %cst_79 = arith.constant dense<0.000000e+00> : vector<64x32xf32>
    %187 = tpu.matmul %185, %186, %cst_79 {dimension_numbers = #tpu.dot_dimension_numbers<[1], [0], [0], [1], [0, 0, 1, 1], [], []>} : vector<64x64xbf16>, vector<64x32xbf16>, vector<64x32xf32> -> vector<64x32xf32>
    %c0_80 = arith.constant 0 : index
    %c0_81 = arith.constant 0 : index
    %188 = vector.load %arg22[%c0_80, %c0_81] : memref<1x32xf32, #tpu.memory_space<vmem>>, vector<1x32xf32>
    %189 = vector.broadcast %188 : vector<1x32xf32> to vector<64x32xf32>
    %190 = arith.addf %187, %189 : vector<64x32xf32>
    %191 = arith.addf %152, %190 : vector<64x32xf32>
    %cst_82 = arith.constant dense<0.000000e+00> : vector<64xf32>
    %192 = vector.multi_reduction <add>, %191, %cst_82 [1] : vector<64x32xf32> to vector<64xf32>
    %193 = vector.shape_cast %192 : vector<64xf32> to vector<64x1xf32>
    %cst_83 = arith.constant 3.200000e+01 : f32
    %194 = vector.broadcast %cst_83 : f32 to vector<64x1xf32>
    %195 = arith.divf %193, %194 : vector<64x1xf32>
    %196 = vector.broadcast %195 : vector<64x1xf32> to vector<64x32xf32>
    %197 = arith.subf %191, %196 : vector<64x32xf32>
    %198 = arith.mulf %197, %197 : vector<64x32xf32>
    %cst_84 = arith.constant dense<0.000000e+00> : vector<64xf32>
    %199 = vector.multi_reduction <add>, %198, %cst_84 [1] : vector<64x32xf32> to vector<64xf32>
    %200 = vector.shape_cast %199 : vector<64xf32> to vector<64x1xf32>
    %cst_85 = arith.constant 3.200000e+01 : f32
    %201 = vector.broadcast %cst_85 : f32 to vector<64x1xf32>
    %202 = arith.divf %200, %201 : vector<64x1xf32>
    %203 = vector.broadcast %195 : vector<64x1xf32> to vector<64x32xf32>
    %204 = arith.subf %191, %203 : vector<64x32xf32>
    %cst_86 = arith.constant 9.99999974E-6 : f32
    %205 = vector.broadcast %cst_86 : f32 to vector<64x1xf32>
    %206 = arith.addf %202, %205 : vector<64x1xf32>
    %207 = math.rsqrt %206 : vector<64x1xf32>
    %208 = vector.broadcast %207 : vector<64x1xf32> to vector<64x32xf32>
    %209 = arith.mulf %204, %208 : vector<64x32xf32>
    %c0_87 = arith.constant 0 : index
    %c0_88 = arith.constant 0 : index
    %210 = vector.load %arg23[%c0_87, %c0_88] : memref<1x32xf32, #tpu.memory_space<vmem>>, vector<1x32xf32>
    %211 = vector.broadcast %210 : vector<1x32xf32> to vector<64x32xf32>
    %212 = arith.mulf %209, %211 : vector<64x32xf32>
    %c0_89 = arith.constant 0 : index
    %c0_90 = arith.constant 0 : index
    %213 = vector.load %arg24[%c0_89, %c0_90] : memref<1x32xf32, #tpu.memory_space<vmem>>, vector<1x32xf32>
    %214 = vector.broadcast %213 : vector<1x32xf32> to vector<64x32xf32>
    %215 = arith.addf %212, %214 : vector<64x32xf32>
    %216 = arith.truncf %215 : vector<64x32xf32> to vector<64x32xbf16>
    %c0_91 = arith.constant 0 : index
    %c0_92 = arith.constant 0 : index
    %217 = vector.load %arg25[%c0_91, %c0_92] : memref<32x2xbf16, #tpu.memory_space<vmem>>, vector<32x2xbf16>
    %cst_93 = arith.constant dense<0.000000e+00> : vector<64x2xf32>
    %218 = tpu.matmul %216, %217, %cst_93 {dimension_numbers = #tpu.dot_dimension_numbers<[1], [0], [0], [1], [0, 0, 1, 1], [], []>} : vector<64x32xbf16>, vector<32x2xbf16>, vector<64x2xf32> -> vector<64x2xf32>
    %c0_94 = arith.constant 0 : index
    %c0_95 = arith.constant 0 : index
    %219 = vector.load %arg26[%c0_94, %c0_95] : memref<1x2xf32, #tpu.memory_space<vmem>>, vector<1x2xf32>
    %220 = vector.broadcast %219 : vector<1x2xf32> to vector<64x2xf32>
    %221 = arith.addf %218, %220 : vector<64x2xf32>
    %cst_96 = arith.constant dense<0.000000e+00> : vector<2xf32>
    %222 = vector.multi_reduction <add>, %221, %cst_96 [0] : vector<64x2xf32> to vector<2xf32>
    %223 = vector.shape_cast %222 : vector<2xf32> to vector<1x2xf32>
    %cst_97 = arith.constant 6.400000e+01 : f32
    %224 = vector.broadcast %cst_97 : f32 to vector<1x2xf32>
    %225 = arith.divf %223, %224 : vector<1x2xf32>
    %c0_98 = arith.constant 0 : index
    %c0_99 = arith.constant 0 : index
    %c0_100 = arith.constant 0 : index
    %226 = vector.load %arg27[%c0_98, %c0_99, %c0_100] : memref<1x1x2xf32, #tpu.memory_space<vmem>>, vector<1x1x2xf32>
    %227 = vector.shape_cast %226 : vector<1x1x2xf32> to vector<1x2xf32>
    %228 = vector.shape_cast %225 : vector<1x2xf32> to vector<1x1x2xf32>
    tpu.vector_store %arg27[%c0_98, %c0_99, %c0_100], %228 {strides = array<i32>} : memref<1x1x2xf32, #tpu.memory_space<vmem>>, vector<1x1x2xf32>,
    return
  }
  func.func @transform_0(%arg0: i32) -> (i32, i32, i32) {
    %c0_i32 = arith.constant 0 : i32
    %c0_i32_0 = arith.constant 0 : i32
    %c0_i32_1 = arith.constant 0 : i32
    return %arg0, %c0_i32, %c0_i32_0 : i32, i32, i32
  }
  func.func @transform_1(%arg0: i32) -> (i32, i32) {
    %c0_i32 = arith.constant 0 : i32
    %c0_i32_0 = arith.constant 0 : i32
    %c0_i32_1 = arith.constant 0 : i32
    return %c0_i32, %c0_i32_0 : i32, i32
  }
  func.func @transform_2(%arg0: i32) -> (i32, i32) {
    %c0_i32 = arith.constant 0 : i32
    %c0_i32_0 = arith.constant 0 : i32
    %c0_i32_1 = arith.constant 0 : i32
    return %c0_i32, %c0_i32_0 : i32, i32
  }
  func.func @transform_3(%arg0: i32) -> (i32, i32) {
    %c0_i32 = arith.constant 0 : i32
    %c0_i32_0 = arith.constant 0 : i32
    %c0_i32_1 = arith.constant 0 : i32
    return %c0_i32, %c0_i32_0 : i32, i32
  }
  func.func @transform_4(%arg0: i32) -> (i32, i32) {
    %c0_i32 = arith.constant 0 : i32
    %c0_i32_0 = arith.constant 0 : i32
    %c0_i32_1 = arith.constant 0 : i32
    return %c0_i32, %c0_i32_0 : i32, i32
  }
  func.func @transform_5(%arg0: i32) -> (i32, i32) {
    %c0_i32 = arith.constant 0 : i32
    %c0_i32_0 = arith.constant 0 : i32
    %c0_i32_1 = arith.constant 0 : i32
    return %c0_i32, %c0_i32_0 : i32, i32
  }
  func.func @transform_6(%arg0: i32) -> (i32, i32) {
    %c0_i32 = arith.constant 0 : i32
    %c0_i32_0 = arith.constant 0 : i32
    %c0_i32_1 = arith.constant 0 : i32
    return %c0_i32, %c0_i32_0 : i32, i32
  }
  func.func @transform_7(%arg0: i32) -> (i32, i32) {
    %c0_i32 = arith.constant 0 : i32
    %c0_i32_0 = arith.constant 0 : i32
    %c0_i32_1 = arith.constant 0 : i32
    return %c0_i32, %c0_i32_0 : i32, i32
  }
  func.func @transform_8(%arg0: i32) -> (i32, i32) {
    %c0_i32 = arith.constant 0 : i32
    %c0_i32_0 = arith.constant 0 : i32
    %c0_i32_1 = arith.constant 0 : i32
    return %c0_i32, %c0_i32_0 : i32, i32
  }
  func.func @transform_9(%arg0: i32) -> (i32, i32) {
    %c0_i32 = arith.constant 0 : i32
    %c0_i32_0 = arith.constant 0 : i32
    %c0_i32_1 = arith.constant 0 : i32
    return %c0_i32, %c0_i32_0 : i32, i32
  }
  func.func @transform_10(%arg0: i32) -> (i32, i32) {
    %c0_i32 = arith.constant 0 : i32
    %c0_i32_0 = arith.constant 0 : i32
    %c0_i32_1 = arith.constant 0 : i32
    return %c0_i32, %c0_i32_0 : i32, i32
  }
  func.func @transform_11(%arg0: i32) -> (i32, i32) {
    %c0_i32 = arith.constant 0 : i32
    %c0_i32_0 = arith.constant 0 : i32
    %c0_i32_1 = arith.constant 0 : i32
    return %c0_i32, %c0_i32_0 : i32, i32
  }
  func.func @transform_12(%arg0: i32) -> (i32, i32) {
    %c0_i32 = arith.constant 0 : i32
    %c0_i32_0 = arith.constant 0 : i32
    %c0_i32_1 = arith.constant 0 : i32
    return %c0_i32, %c0_i32_0 : i32, i32
  }
  func.func @transform_13(%arg0: i32) -> (i32, i32) {
    %c0_i32 = arith.constant 0 : i32
    %c0_i32_0 = arith.constant 0 : i32
    %c0_i32_1 = arith.constant 0 : i32
    return %c0_i32, %c0_i32_0 : i32, i32
  }
  func.func @transform_14(%arg0: i32) -> (i32, i32) {
    %c0_i32 = arith.constant 0 : i32
    %c0_i32_0 = arith.constant 0 : i32
    %c0_i32_1 = arith.constant 0 : i32
    return %c0_i32, %c0_i32_0 : i32, i32
  }
  func.func @transform_15(%arg0: i32) -> (i32, i32) {
    %c0_i32 = arith.constant 0 : i32
    %c0_i32_0 = arith.constant 0 : i32
    %c0_i32_1 = arith.constant 0 : i32
    return %c0_i32, %c0_i32_0 : i32, i32
  }
  func.func @transform_16(%arg0: i32) -> (i32, i32) {
    %c0_i32 = arith.constant 0 : i32
    %c0_i32_0 = arith.constant 0 : i32
    %c0_i32_1 = arith.constant 0 : i32
    return %c0_i32, %c0_i32_0 : i32, i32
  }
  func.func @transform_17(%arg0: i32) -> (i32, i32) {
    %c0_i32 = arith.constant 0 : i32
    %c0_i32_0 = arith.constant 0 : i32
    %c0_i32_1 = arith.constant 0 : i32
    return %c0_i32, %c0_i32_0 : i32, i32
  }
  func.func @transform_18(%arg0: i32) -> (i32, i32) {
    %c0_i32 = arith.constant 0 : i32
    %c0_i32_0 = arith.constant 0 : i32
    %c0_i32_1 = arith.constant 0 : i32
    return %c0_i32, %c0_i32_0 : i32, i32
  }
  func.func @transform_19(%arg0: i32) -> (i32, i32) {
    %c0_i32 = arith.constant 0 : i32
    %c0_i32_0 = arith.constant 0 : i32
    %c0_i32_1 = arith.constant 0 : i32
    return %c0_i32, %c0_i32_0 : i32, i32
  }
  func.func @transform_20(%arg0: i32) -> (i32, i32) {
    %c0_i32 = arith.constant 0 : i32
    %c0_i32_0 = arith.constant 0 : i32
    %c0_i32_1 = arith.constant 0 : i32
    return %c0_i32, %c0_i32_0 : i32, i32
  }
  func.func @transform_21(%arg0: i32) -> (i32, i32) {
    %c0_i32 = arith.constant 0 : i32
    %c0_i32_0 = arith.constant 0 : i32
    %c0_i32_1 = arith.constant 0 : i32
    return %c0_i32, %c0_i32_0 : i32, i32
  }
  func.func @transform_22(%arg0: i32) -> (i32, i32) {
    %c0_i32 = arith.constant 0 : i32
    %c0_i32_0 = arith.constant 0 : i32
    %c0_i32_1 = arith.constant 0 : i32
    return %c0_i32, %c0_i32_0 : i32, i32
  }
  func.func @transform_23(%arg0: i32) -> (i32, i32) {
    %c0_i32 = arith.constant 0 : i32
    %c0_i32_0 = arith.constant 0 : i32
    %c0_i32_1 = arith.constant 0 : i32
    return %c0_i32, %c0_i32_0 : i32, i32
  }
  func.func @transform_24(%arg0: i32) -> (i32, i32) {
    %c0_i32 = arith.constant 0 : i32
    %c0_i32_0 = arith.constant 0 : i32
    %c0_i32_1 = arith.constant 0 : i32
    return %c0_i32, %c0_i32_0 : i32, i32
  }
  func.func @transform_25(%arg0: i32) -> (i32, i32) {
    %c0_i32 = arith.constant 0 : i32
    %c0_i32_0 = arith.constant 0 : i32
    %c0_i32_1 = arith.constant 0 : i32
    return %c0_i32, %c0_i32_0 : i32, i32
  }
  func.func @transform_26(%arg0: i32) -> (i32, i32, i32) {
    %c0_i32 = arith.constant 0 : i32
    %c0_i32_0 = arith.constant 0 : i32
    %c0_i32_1 = arith.constant 0 : i32
    return %arg0, %c0_i32, %c0_i32_0 : i32, i32, i32
  }
}

</mosaic_0001>

<bundles_post_ra>
// kernel: res_trsf_trn_forward.2
= control target key start
LH: loop header
LB: loop body
LE: loop exit
PB: predicated region body
PF: predicated region fallthrough
CT: control target
= control target key end

     0   :  { %vm358_vm0 = vcmask 1044480   ;;  %vm359_vm1 = vcmask 1045504   ;;  %vm261_vm2 = vcmask 220160   ;;  %v1379_v1 = vmov 65535   ;;  %s1859_s1 = inlined_call_operand.vmem [shape: bf16[27,16], index: 1, kind: input, shape index: {}]   ;;  %s1860_s0 = inlined_call_operand.vmem [shape: bf16[512,27], index: 0, kind: input, shape index: {}]   ;;  %s1861_s2 = inlined_call_operand.vmem [shape: f32[1,16], index: 2, kind: input, shape index: {}]   ;;  %s1862_s3 = inlined_call_operand.vmem [shape: bf16[512,16], index: 3, kind: output, shape index: {}]  }
   0x1   :  { %v1345_v0 = vld [vmem:[%s1859_s1] sm:$0xff]   ;;  %v360_v2 = vsel %vm358_vm0, 4294967295, %v1379_v1  ;;  %v1346_v3 = vld [vmem:[%s1859_s1 + $0x8] sm:$0x3f]   ;;  %v1351_v10 = vld [vmem:[%s1860_s0 + $0x10] sm:$0xff]   ;;  %vm974_vm3 = vcmask 125952  }
   0x2   :  { %1272 = vmatprep.subr.bf16.mxu0 %v1345_v0  ;;  %1340 = vmatprep.subr.bf16.mxu1 %v1345_v0  ;;  %v361_v4 = vsel %vm359_vm1, %v360_v2, 0  ;;  %v1347_v5 = vld [vmem:[%s1860_s0] sm:$0xff]   ;;  %v1349_v8 = vld [vmem:[%s1860_s0 + $0x8] sm:$0xff]   ;;  %v1352_v11 = vld [vmem:[%s1860_s0 + $0x90] sm:$0xff]  }
   0x3   :  { %1273 = vmatpush3.bf16.msra.mxu0 %v1345_v0  ;;  %1342 = vmatpush3.bf16.msra.mxu1 %v1345_v0  ;;  %v363_v6 = vand.u32 %v1346_v3, %v361_v4  ;;  %v1348_v7 = vld [vmem:[%s1860_s0 + $0x80] sm:$0xff]   ;;  %v1350_v9 = vld [vmem:[%s1860_s0 + $0x88] sm:$0xff]   ;;  %v1353_v12 = vld [vmem:[%s1860_s0 + $0x18] sm:$0xff]  }
   0x4   :  { %1276 = vmatprep.mubr.msk.bf16.mxu0 %vm261_vm2, %v1347_v5  ;;  %1308 = vmatprep.mubr.msk.bf16.mxu1 %vm261_vm2, %v1348_v7  ;;  %v1354_v13 = vld [vmem:[%s1860_s0 + $0x98] sm:$0xff]   ;;  %v1355_v14 = vld [vmem:[%s1860_s0 + $0x20] sm:$0xff]   ;;  %v1357_v16 = vld [vmem:[%s1860_s0 + $0x28] sm:$0xff]  }
   0x5   :  { %1274 = vmatprep.subr.bf16.mxu0 %v363_v6  ;;  %1341 = vmatprep.subr.bf16.mxu1 %v363_v6  ;;  %v1356_v15 = vld [vmem:[%s1860_s0 + $0xa0] sm:$0xff]   ;;  %v1358_v17 = vld [vmem:[%s1860_s0 + $0xa8] sm:$0xff]   ;;  %v1359_v18 = vld [vmem:[%s1860_s0 + $0x30] sm:$0xff]  }
   0x6   :  { %v1360_v19 = vld [vmem:[%s1860_s0 + $0xb0] sm:$0xff]   ;;  %v1361_v20 = vld [vmem:[%s1860_s0 + $0x38] sm:$0xff]   ;;  %v1363_v22 = vld [vmem:[%s1860_s0 + $0x40] sm:$0xff]  }
   0x7   :  { %1275 = vmatpush3.bf16.msra.mxu0 %v363_v6  ;;  %1343 = vmatpush3.bf16.msra.mxu1 %v363_v6  ;;  %v1362_v21 = vld [vmem:[%s1860_s0 + $0xb8] sm:$0xff]   ;;  %v1364_v23 = vld [vmem:[%s1860_s0 + $0xc0] sm:$0xff]   ;;  %v1365_v24 = vld [vmem:[%s1860_s0 + $0x48] sm:$0xff]  }
   0x8   :  { %v1366_v25 = vld [vmem:[%s1860_s0 + $0xc8] sm:$0xff]   ;;  %v1367_v26 = vld [vmem:[%s1860_s0 + $0x50] sm:$0xff]   ;;  %v1369_v28 = vld [vmem:[%s1860_s0 + $0x58] sm:$0xff]  }
   0x9   :  { %v1368_v27 = vld [vmem:[%s1860_s0 + $0xd0] sm:$0xff]   ;;  %v1370_v29 = vld [vmem:[%s1860_s0 + $0xd8] sm:$0xff]   ;;  %v1371_v30 = vld [vmem:[%s1860_s0 + $0x60] sm:$0xff]  }
   0xa   :  { %1277 = vmatmul.mubr.msk.bf16.vlgmr.msra.gmra.mrb[0].mxu0 %vm261_vm2, %v1349_v8  ;;  %1309 = vmatmul.mubr.msk.bf16.vlgmr.msra.gmra.mrb[0].mxu1 %vm261_vm2, %v1350_v9  ;;  %v1372_v31 = vld [vmem:[%s1860_s0 + $0xe0] sm:$0xff]   ;;  %v1373_v32 = vld [vmem:[%s1860_s0 + $0x68] sm:$0xff]   ;;  %v1375_v34 = vld [vmem:[%s1860_s0 + $0x70] sm:$0xff]  }
   0xb   :  { %1280 = vmatprep.mubr.msk.bf16.mxu0 %vm261_vm2, %v1351_v10  ;;  %1312 = vmatprep.mubr.msk.bf16.mxu1 %vm261_vm2, %v1352_v11  ;;  %v1374_v33 = vld [vmem:[%s1860_s0 + $0xe8] sm:$0xff]   ;;  %v1376_v35 = vld [vmem:[%s1860_s0 + $0xf0] sm:$0xff]   ;;  %v1377_v36 = vld [vmem:[%s1860_s0 + $0x78] sm:$0xff]  }
   0xc   :  { %v1378_v37 = vld [vmem:[%s1860_s0 + $0xf8] sm:$0xff]   ;;  %v1537_v38 = vld [vmem:[%s1861_s2] ss:$0 sm:$0xff] }
  0x12   :  { %1281 = vmatmul.mubr.msk.bf16.gmra.mrb[4].mxu0 %vm261_vm2, %v1353_v12  ;;  %1313 = vmatmul.mubr.msk.bf16.gmra.mrb[4].mxu1 %vm261_vm2, %v1354_v13 }
  0x13   :  { %1284 = vmatprep.mubr.msk.bf16.mxu0 %vm261_vm2, %v1355_v14  ;;  %1316 = vmatprep.mubr.msk.bf16.mxu1 %vm261_vm2, %v1356_v15 }
  0x1a   :  { %1285 = vmatmul.mubr.msk.bf16.gmra.mrb[8].mxu0 %vm261_vm2, %v1357_v16  ;;  %1317 = vmatmul.mubr.msk.bf16.gmra.mrb[8].mxu1 %vm261_vm2, %v1358_v17 }
  0x1b   :  { %1288 = vmatprep.mubr.msk.bf16.mxu0 %vm261_vm2, %v1359_v18  ;;  %1320 = vmatprep.mubr.msk.bf16.mxu1 %vm261_vm2, %v1360_v19 }
  0x22   :  { %1289 = vmatmul.mubr.msk.bf16.gmra.mrb[12].mxu0 %vm261_vm2, %v1361_v20  ;;  %1321 = vmatmul.mubr.msk.bf16.gmra.mrb[12].mxu1 %vm261_vm2, %v1362_v21 }
  0x23   :  { %1292 = vmatprep.mubr.msk.bf16.mxu0 %vm261_vm2, %v1363_v22  ;;  %1324 = vmatprep.mubr.msk.bf16.mxu1 %vm261_vm2, %v1364_v23 }
  0x2a   :  { %1293 = vmatmul.mubr.msk.bf16.gmra.mrb[16].mxu0 %vm261_vm2, %v1365_v24  ;;  %1325 = vmatmul.mubr.msk.bf16.gmra.mrb[16].mxu1 %vm261_vm2, %v1366_v25 }
  0x2b   :  { %1296 = vmatprep.mubr.msk.bf16.mxu0 %vm261_vm2, %v1367_v26  ;;  %1328 = vmatprep.mubr.msk.bf16.mxu1 %vm261_vm2, %v1368_v27 }
  0x32   :  { %1297 = vmatmul.mubr.msk.bf16.gmra.mrb[20].mxu0 %vm261_vm2, %v1369_v28  ;;  %1329 = vmatmul.mubr.msk.bf16.gmra.mrb[20].mxu1 %vm261_vm2, %v1370_v29 }
  0x33   :  { %1300 = vmatprep.mubr.msk.bf16.mxu0 %vm261_vm2, %v1371_v30  ;;  %1332 = vmatprep.mubr.msk.bf16.mxu1 %vm261_vm2, %v1372_v31 }
  0x3a   :  { %1301 = vmatmul.mubr.msk.bf16.gmra.mrb[24].mxu0 %vm261_vm2, %v1373_v32  ;;  %1333 = vmatmul.mubr.msk.bf16.gmra.mrb[24].mxu1 %vm261_vm2, %v1374_v33 }
  0x3b   :  { %1304 = vmatprep.mubr.msk.bf16.mxu0 %vm261_vm2, %v1375_v34  ;;  %1336 = vmatprep.mubr.msk.bf16.mxu1 %vm261_vm2, %v1376_v35 }
  0x42   :  { %1305 = vmatmul.mubr.msk.bf16.gmra.mrb[28].mxu0 %vm261_vm2, %v1377_v36  ;;  %1337 = vmatmul.mubr.msk.bf16.gmra.mrb[28].mxu1 %vm261_vm2, %v1378_v37 }
  0xdd   :  { %v1278_v39 = vpop.f32.mrb[0].mxu0  ;;  %v1310_v40 = vpop.f32.mrb[0].mxu1 }
  0xde   :  { %v408_v41 = vadd.f32 %v1278_v39, %v1537_v38  ;;  %v536_v42 = vadd.f32 %v1310_v40, %v1537_v38  ;;  %v399_v43 = vpop.f32.mrb[1].mxu0  ;;  %v527_v44 = vpop.f32.mrb[1].mxu1 }
  0xdf   :  { %v400_v45 = vadd.f32 %v1537_v38, %v399_v43  ;;  %v528_v46 = vadd.f32 %v1537_v38, %v527_v44  ;;  %v1279_v47 = vpop.f32.mrb[2].mxu0  ;;  %v1311_v48 = vpop.f32.mrb[2].mxu1 }
  0xe0   :  { %v656_v49 = vmax.f32 %v408_v41, 0.0  ;;  %v688_v50 = vmax.f32 %v536_v42, 0.0  ;;  %v411_v51 = vadd.f32 %v1279_v47, %v1537_v38  ;;  %v539_v52 = vadd.f32 %v1311_v48, %v1537_v38  ;;  %v402_v53 = vpop.f32.mrb[3].mxu0  ;;  %v530_v54 = vpop.f32.mrb[3].mxu1 }
  0xe1   :  { %v654_v55 = vmax.f32 %v400_v45, 0.0  ;;  %v686_v56 = vmax.f32 %v528_v46, 0.0  ;;  %v403_v57 = vadd.f32 %v1537_v38, %v402_v53  ;;  %v531_v58 = vadd.f32 %v1537_v38, %v530_v54 }
  0xe2   :  { %v1176_v59 = vpack.c.bf16 %v656_v49, %v656_v49  ;;  %v1208_v60 = vpack.c.bf16 %v688_v50, %v688_v50  ;;  %v657_v61 = vmax.f32 %v411_v51, 0.0  ;;  %v689_v62 = vmax.f32 %v539_v52, 0.0 }
  0xe3   :  { %v1174_v63 = vpack.c.bf16 %v654_v55, %v654_v55  ;;  %v1206_v0 = vpack.c.bf16 %v686_v56, %v686_v56  ;;  %v655_v1 = vmax.f32 %v403_v57, 0.0  ;;  %v687_v2 = vmax.f32 %v531_v58, 0.0 }
  0xe4   :  { %977 = vst.msk [vmem:[%s1862_s3 + $0x8] sm:$0xf] %vm974_vm3, %v1176_v59  ;;  %1009 = vst.msk [vmem:[%s1862_s3 + $0x88] sm:$0xf] %vm974_vm3, %v1208_v60  ;;  %v1177_v3 = vpack.c.bf16 %v657_v61, %v657_v61  ;;  %v1209_v4 = vpack.c.bf16 %v689_v62, %v689_v62 }
  0xe5   :  { %975 = vst.msk [vmem:[%s1862_s3] sm:$0xf] %vm974_vm3, %v1174_v63  ;;  %1007 = vst.msk [vmem:[%s1862_s3 + $0x80] sm:$0xf] %vm974_vm3, %v1206_v0  ;;  %v1175_v5 = vpack.c.bf16 %v655_v1, %v655_v1  ;;  %v1207_v6 = vpack.c.bf16 %v687_v2, %v687_v2  ;;  %v1282_v7 = vpop.f32.mrb[4].mxu0  ;;  %v1314_v8 = vpop.f32.mrb[4].mxu1 }
  0xe6   :  { %978 = vst.msk [vmem:[%s1862_s3 + $0xc] sm:$0xf] %vm974_vm3, %v1177_v3  ;;  %1010 = vst.msk [vmem:[%s1862_s3 + $0x8c] sm:$0xf] %vm974_vm3, %v1209_v4  ;;  %v424_v9 = vadd.f32 %v1282_v7, %v1537_v38  ;;  %v552_v10 = vadd.f32 %v1314_v8, %v1537_v38  ;;  %v415_v11 = vpop.f32.mrb[5].mxu0  ;;  %v543_v12 = vpop.f32.mrb[5].mxu1 }
  0xe7   :  { %976 = vst.msk [vmem:[%s1862_s3 + $0x4] sm:$0xf] %vm974_vm3, %v1175_v5  ;;  %1008 = vst.msk [vmem:[%s1862_s3 + $0x84] sm:$0xf] %vm974_vm3, %v1207_v6  ;;  %v416_v13 = vadd.f32 %v1537_v38, %v415_v11  ;;  %v544_v14 = vadd.f32 %v1537_v38, %v543_v12  ;;  %v1283_v15 = vpop.f32.mrb[6].mxu0  ;;  %v1315_v16 = vpop.f32.mrb[6].mxu1 }
  0xe8   :  { %v660_v17 = vmax.f32 %v424_v9, 0.0  ;;  %v692_v18 = vmax.f32 %v552_v10, 0.0  ;;  %v427_v19 = vadd.f32 %v1283_v15, %v1537_v38  ;;  %v555_v20 = vadd.f32 %v1315_v16, %v1537_v38  ;;  %v418_v21 = vpop.f32.mrb[7].mxu0  ;;  %v546_v22 = vpop.f32.mrb[7].mxu1 }
  0xe9   :  { %v658_v23 = vmax.f32 %v416_v13, 0.0  ;;  %v690_v24 = vmax.f32 %v544_v14, 0.0  ;;  %v419_v25 = vadd.f32 %v1537_v38, %v418_v21  ;;  %v547_v26 = vadd.f32 %v1537_v38, %v546_v22 }
  0xea   :  { %v1180_v27 = vpack.c.bf16 %v660_v17, %v660_v17  ;;  %v1212_v28 = vpack.c.bf16 %v692_v18, %v692_v18  ;;  %v661_v29 = vmax.f32 %v427_v19, 0.0  ;;  %v693_v30 = vmax.f32 %v555_v20, 0.0 }
  0xeb   :  { %v1178_v31 = vpack.c.bf16 %v658_v23, %v658_v23  ;;  %v1210_v32 = vpack.c.bf16 %v690_v24, %v690_v24  ;;  %v659_v33 = vmax.f32 %v419_v25, 0.0  ;;  %v691_v34 = vmax.f32 %v547_v26, 0.0 }
  0xec   :  { %981 = vst.msk [vmem:[%s1862_s3 + $0x18] sm:$0xf] %vm974_vm3, %v1180_v27  ;;  %1013 = vst.msk [vmem:[%s1862_s3 + $0x98] sm:$0xf] %vm974_vm3, %v1212_v28  ;;  %v1181_v35 = vpack.c.bf16 %v661_v29, %v661_v29  ;;  %v1213_v36 = vpack.c.bf16 %v693_v30, %v693_v30 }
  0xed   :  { %979 = vst.msk [vmem:[%s1862_s3 + $0x10] sm:$0xf] %vm974_vm3, %v1178_v31  ;;  %1011 = vst.msk [vmem:[%s1862_s3 + $0x90] sm:$0xf] %vm974_vm3, %v1210_v32  ;;  %v1179_v37 = vpack.c.bf16 %v659_v33, %v659_v33  ;;  %v1211_v39 = vpack.c.bf16 %v691_v34, %v691_v34  ;;  %v1286_v40 = vpop.f32.mrb[8].mxu0  ;;  %v1318_v41 = vpop.f32.mrb[8].mxu1 }
  0xee   :  { %982 = vst.msk [vmem:[%s1862_s3 + $0x1c] sm:$0xf] %vm974_vm3, %v1181_v35  ;;  %1014 = vst.msk [vmem:[%s1862_s3 + $0x9c] sm:$0xf] %vm974_vm3, %v1213_v36  ;;  %v440_v42 = vadd.f32 %v1286_v40, %v1537_v38  ;;  %v568_v43 = vadd.f32 %v1318_v41, %v1537_v38  ;;  %v431_v44 = vpop.f32.mrb[9].mxu0  ;;  %v559_v45 = vpop.f32.mrb[9].mxu1 }
  0xef   :  { %980 = vst.msk [vmem:[%s1862_s3 + $0x14] sm:$0xf] %vm974_vm3, %v1179_v37  ;;  %1012 = vst.msk [vmem:[%s1862_s3 + $0x94] sm:$0xf] %vm974_vm3, %v1211_v39  ;;  %v432_v46 = vadd.f32 %v1537_v38, %v431_v44  ;;  %v560_v47 = vadd.f32 %v1537_v38, %v559_v45  ;;  %v1287_v48 = vpop.f32.mrb[10].mxu0  ;;  %v1319_v49 = vpop.f32.mrb[10].mxu1 }
  0xf0   :  { %v664_v50 = vmax.f32 %v440_v42, 0.0  ;;  %v696_v51 = vmax.f32 %v568_v43, 0.0  ;;  %v443_v52 = vadd.f32 %v1287_v48, %v1537_v38  ;;  %v571_v53 = vadd.f32 %v1319_v49, %v1537_v38  ;;  %v434_v54 = vpop.f32.mrb[11].mxu0  ;;  %v562_v55 = vpop.f32.mrb[11].mxu1 }
  0xf1   :  { %v662_v56 = vmax.f32 %v432_v46, 0.0  ;;  %v694_v57 = vmax.f32 %v560_v47, 0.0  ;;  %v435_v58 = vadd.f32 %v1537_v38, %v434_v54  ;;  %v563_v59 = vadd.f32 %v1537_v38, %v562_v55 }
  0xf2   :  { %v1184_v60 = vpack.c.bf16 %v664_v50, %v664_v50  ;;  %v1216_v61 = vpack.c.bf16 %v696_v51, %v696_v51  ;;  %v665_v62 = vmax.f32 %v443_v52, 0.0  ;;  %v697_v63 = vmax.f32 %v571_v53, 0.0 }
  0xf3   :  { %v1182_v0 = vpack.c.bf16 %v662_v56, %v662_v56  ;;  %v1214_v1 = vpack.c.bf16 %v694_v57, %v694_v57  ;;  %v663_v2 = vmax.f32 %v435_v58, 0.0  ;;  %v695_v3 = vmax.f32 %v563_v59, 0.0 }
  0xf4   :  { %985 = vst.msk [vmem:[%s1862_s3 + $0x28] sm:$0xf] %vm974_vm3, %v1184_v60  ;;  %1017 = vst.msk [vmem:[%s1862_s3 + $0xa8] sm:$0xf] %vm974_vm3, %v1216_v61  ;;  %v1185_v4 = vpack.c.bf16 %v665_v62, %v665_v62  ;;  %v1217_v5 = vpack.c.bf16 %v697_v63, %v697_v63 }
  0xf5   :  { %983 = vst.msk [vmem:[%s1862_s3 + $0x20] sm:$0xf] %vm974_vm3, %v1182_v0  ;;  %1015 = vst.msk [vmem:[%s1862_s3 + $0xa0] sm:$0xf] %vm974_vm3, %v1214_v1  ;;  %v1183_v6 = vpack.c.bf16 %v663_v2, %v663_v2  ;;  %v1215_v7 = vpack.c.bf16 %v695_v3, %v695_v3  ;;  %v1290_v8 = vpop.f32.mrb[12].mxu0  ;;  %v1322_v9 = vpop.f32.mrb[12].mxu1 }
  0xf6   :  { %986 = vst.msk [vmem:[%s1862_s3 + $0x2c] sm:$0xf] %vm974_vm3, %v1185_v4  ;;  %1018 = vst.msk [vmem:[%s1862_s3 + $0xac] sm:$0xf] %vm974_vm3, %v1217_v5  ;;  %v456_v10 = vadd.f32 %v1290_v8, %v1537_v38  ;;  %v584_v11 = vadd.f32 %v1322_v9, %v1537_v38  ;;  %v447_v12 = vpop.f32.mrb[13].mxu0  ;;  %v575_v13 = vpop.f32.mrb[13].mxu1 }
  0xf7   :  { %984 = vst.msk [vmem:[%s1862_s3 + $0x24] sm:$0xf] %vm974_vm3, %v1183_v6  ;;  %1016 = vst.msk [vmem:[%s1862_s3 + $0xa4] sm:$0xf] %vm974_vm3, %v1215_v7  ;;  %v448_v14 = vadd.f32 %v1537_v38, %v447_v12  ;;  %v576_v15 = vadd.f32 %v1537_v38, %v575_v13  ;;  %v1291_v16 = vpop.f32.mrb[14].mxu0  ;;  %v1323_v17 = vpop.f32.mrb[14].mxu1 }
  0xf8   :  { %v668_v18 = vmax.f32 %v456_v10, 0.0  ;;  %v700_v19 = vmax.f32 %v584_v11, 0.0  ;;  %v459_v20 = vadd.f32 %v1291_v16, %v1537_v38  ;;  %v587_v21 = vadd.f32 %v1323_v17, %v1537_v38  ;;  %v450_v22 = vpop.f32.mrb[15].mxu0  ;;  %v578_v23 = vpop.f32.mrb[15].mxu1 }
  0xf9   :  { %v666_v24 = vmax.f32 %v448_v14, 0.0  ;;  %v698_v25 = vmax.f32 %v576_v15, 0.0  ;;  %v451_v26 = vadd.f32 %v1537_v38, %v450_v22  ;;  %v579_v27 = vadd.f32 %v1537_v38, %v578_v23 }
  0xfa   :  { %v1188_v28 = vpack.c.bf16 %v668_v18, %v668_v18  ;;  %v1220_v29 = vpack.c.bf16 %v700_v19, %v700_v19  ;;  %v669_v30 = vmax.f32 %v459_v20, 0.0  ;;  %v701_v31 = vmax.f32 %v587_v21, 0.0 }
  0xfb   :  { %v1186_v32 = vpack.c.bf16 %v666_v24, %v666_v24  ;;  %v1218_v33 = vpack.c.bf16 %v698_v25, %v698_v25  ;;  %v667_v34 = vmax.f32 %v451_v26, 0.0  ;;  %v699_v35 = vmax.f32 %v579_v27, 0.0 }
  0xfc   :  { %989 = vst.msk [vmem:[%s1862_s3 + $0x38] sm:$0xf] %vm974_vm3, %v1188_v28  ;;  %1021 = vst.msk [vmem:[%s1862_s3 + $0xb8] sm:$0xf] %vm974_vm3, %v1220_v29  ;;  %v1189_v36 = vpack.c.bf16 %v669_v30, %v669_v30  ;;  %v1221_v37 = vpack.c.bf16 %v701_v31, %v701_v31 }
  0xfd   :  { %987 = vst.msk [vmem:[%s1862_s3 + $0x30] sm:$0xf] %vm974_vm3, %v1186_v32  ;;  %1019 = vst.msk [vmem:[%s1862_s3 + $0xb0] sm:$0xf] %vm974_vm3, %v1218_v33  ;;  %v1187_v39 = vpack.c.bf16 %v667_v34, %v667_v34  ;;  %v1219_v40 = vpack.c.bf16 %v699_v35, %v699_v35  ;;  %v1294_v41 = vpop.f32.mrb[16].mxu0  ;;  %v1326_v42 = vpop.f32.mrb[16].mxu1 }
  0xfe   :  { %990 = vst.msk [vmem:[%s1862_s3 + $0x3c] sm:$0xf] %vm974_vm3, %v1189_v36  ;;  %1022 = vst.msk [vmem:[%s1862_s3 + $0xbc] sm:$0xf] %vm974_vm3, %v1221_v37  ;;  %v472_v43 = vadd.f32 %v1294_v41, %v1537_v38  ;;  %v600_v44 = vadd.f32 %v1326_v42, %v1537_v38  ;;  %v463_v45 = vpop.f32.mrb[17].mxu0  ;;  %v591_v46 = vpop.f32.mrb[17].mxu1 }
  0xff   :  { %988 = vst.msk [vmem:[%s1862_s3 + $0x34] sm:$0xf] %vm974_vm3, %v1187_v39  ;;  %1020 = vst.msk [vmem:[%s1862_s3 + $0xb4] sm:$0xf] %vm974_vm3, %v1219_v40  ;;  %v464_v47 = vadd.f32 %v1537_v38, %v463_v45  ;;  %v592_v48 = vadd.f32 %v1537_v38, %v591_v46  ;;  %v1295_v49 = vpop.f32.mrb[18].mxu0  ;;  %v1327_v50 = vpop.f32.mrb[18].mxu1 }
 0x100   :  { %v672_v51 = vmax.f32 %v472_v43, 0.0  ;;  %v704_v52 = vmax.f32 %v600_v44, 0.0  ;;  %v475_v53 = vadd.f32 %v1295_v49, %v1537_v38  ;;  %v603_v54 = vadd.f32 %v1327_v50, %v1537_v38  ;;  %v466_v55 = vpop.f32.mrb[19].mxu0  ;;  %v594_v56 = vpop.f32.mrb[19].mxu1 }
 0x101   :  { %v670_v57 = vmax.f32 %v464_v47, 0.0  ;;  %v702_v58 = vmax.f32 %v592_v48, 0.0  ;;  %v467_v59 = vadd.f32 %v1537_v38, %v466_v55  ;;  %v595_v60 = vadd.f32 %v1537_v38, %v594_v56 }
 0x102   :  { %v1192_v61 = vpack.c.bf16 %v672_v51, %v672_v51  ;;  %v1224_v62 = vpack.c.bf16 %v704_v52, %v704_v52  ;;  %v673_v63 = vmax.f32 %v475_v53, 0.0  ;;  %v705_v0 = vmax.f32 %v603_v54, 0.0 }
 0x103   :  { %v1190_v1 = vpack.c.bf16 %v670_v57, %v670_v57  ;;  %v1222_v2 = vpack.c.bf16 %v702_v58, %v702_v58  ;;  %v671_v3 = vmax.f32 %v467_v59, 0.0  ;;  %v703_v4 = vmax.f32 %v595_v60, 0.0 }
 0x104   :  { %993 = vst.msk [vmem:[%s1862_s3 + $0x48] sm:$0xf] %vm974_vm3, %v1192_v61  ;;  %1025 = vst.msk [vmem:[%s1862_s3 + $0xc8] sm:$0xf] %vm974_vm3, %v1224_v62  ;;  %v1193_v5 = vpack.c.bf16 %v673_v63, %v673_v63  ;;  %v1225_v6 = vpack.c.bf16 %v705_v0, %v705_v0 }
 0x105   :  { %991 = vst.msk [vmem:[%s1862_s3 + $0x40] sm:$0xf] %vm974_vm3, %v1190_v1  ;;  %1023 = vst.msk [vmem:[%s1862_s3 + $0xc0] sm:$0xf] %vm974_vm3, %v1222_v2  ;;  %v1191_v7 = vpack.c.bf16 %v671_v3, %v671_v3  ;;  %v1223_v8 = vpack.c.bf16 %v703_v4, %v703_v4  ;;  %v1298_v9 = vpop.f32.mrb[20].mxu0  ;;  %v1330_v10 = vpop.f32.mrb[20].mxu1 }
 0x106   :  { %994 = vst.msk [vmem:[%s1862_s3 + $0x4c] sm:$0xf] %vm974_vm3, %v1193_v5  ;;  %1026 = vst.msk [vmem:[%s1862_s3 + $0xcc] sm:$0xf] %vm974_vm3, %v1225_v6  ;;  %v488_v11 = vadd.f32 %v1298_v9, %v1537_v38  ;;  %v616_v12 = vadd.f32 %v1330_v10, %v1537_v38  ;;  %v479_v13 = vpop.f32.mrb[21].mxu0  ;;  %v607_v14 = vpop.f32.mrb[21].mxu1 }
 0x107   :  { %992 = vst.msk [vmem:[%s1862_s3 + $0x44] sm:$0xf] %vm974_vm3, %v1191_v7  ;;  %1024 = vst.msk [vmem:[%s1862_s3 + $0xc4] sm:$0xf] %vm974_vm3, %v1223_v8  ;;  %v480_v15 = vadd.f32 %v1537_v38, %v479_v13  ;;  %v608_v16 = vadd.f32 %v1537_v38, %v607_v14  ;;  %v1299_v17 = vpop.f32.mrb[22].mxu0  ;;  %v1331_v18 = vpop.f32.mrb[22].mxu1 }
 0x108   :  { %v676_v19 = vmax.f32 %v488_v11, 0.0  ;;  %v708_v20 = vmax.f32 %v616_v12, 0.0  ;;  %v491_v21 = vadd.f32 %v1299_v17, %v1537_v38  ;;  %v619_v22 = vadd.f32 %v1331_v18, %v1537_v38  ;;  %v482_v23 = vpop.f32.mrb[23].mxu0  ;;  %v610_v24 = vpop.f32.mrb[23].mxu1 }
 0x109   :  { %v674_v25 = vmax.f32 %v480_v15, 0.0  ;;  %v706_v26 = vmax.f32 %v608_v16, 0.0  ;;  %v483_v27 = vadd.f32 %v1537_v38, %v482_v23  ;;  %v611_v28 = vadd.f32 %v1537_v38, %v610_v24 }
 0x10a   :  { %v1196_v29 = vpack.c.bf16 %v676_v19, %v676_v19  ;;  %v1228_v30 = vpack.c.bf16 %v708_v20, %v708_v20  ;;  %v677_v31 = vmax.f32 %v491_v21, 0.0  ;;  %v709_v32 = vmax.f32 %v619_v22, 0.0 }
 0x10b   :  { %v1194_v33 = vpack.c.bf16 %v674_v25, %v674_v25  ;;  %v1226_v34 = vpack.c.bf16 %v706_v26, %v706_v26  ;;  %v675_v35 = vmax.f32 %v483_v27, 0.0  ;;  %v707_v36 = vmax.f32 %v611_v28, 0.0 }
 0x10c   :  { %997 = vst.msk [vmem:[%s1862_s3 + $0x58] sm:$0xf] %vm974_vm3, %v1196_v29  ;;  %1029 = vst.msk [vmem:[%s1862_s3 + $0xd8] sm:$0xf] %vm974_vm3, %v1228_v30  ;;  %v1197_v37 = vpack.c.bf16 %v677_v31, %v677_v31  ;;  %v1229_v39 = vpack.c.bf16 %v709_v32, %v709_v32 }
 0x10d   :  { %995 = vst.msk [vmem:[%s1862_s3 + $0x50] sm:$0xf] %vm974_vm3, %v1194_v33  ;;  %1027 = vst.msk [vmem:[%s1862_s3 + $0xd0] sm:$0xf] %vm974_vm3, %v1226_v34  ;;  %v1195_v40 = vpack.c.bf16 %v675_v35, %v675_v35  ;;  %v1227_v41 = vpack.c.bf16 %v707_v36, %v707_v36  ;;  %v1302_v42 = vpop.f32.mrb[24].mxu0  ;;  %v1334_v43 = vpop.f32.mrb[24].mxu1 }
 0x10e   :  { %998 = vst.msk [vmem:[%s1862_s3 + $0x5c] sm:$0xf] %vm974_vm3, %v1197_v37  ;;  %1030 = vst.msk [vmem:[%s1862_s3 + $0xdc] sm:$0xf] %vm974_vm3, %v1229_v39  ;;  %v504_v44 = vadd.f32 %v1302_v42, %v1537_v38  ;;  %v632_v45 = vadd.f32 %v1334_v43, %v1537_v38  ;;  %v495_v46 = vpop.f32.mrb[25].mxu0  ;;  %v623_v47 = vpop.f32.mrb[25].mxu1 }
 0x10f   :  { %996 = vst.msk [vmem:[%s1862_s3 + $0x54] sm:$0xf] %vm974_vm3, %v1195_v40  ;;  %1028 = vst.msk [vmem:[%s1862_s3 + $0xd4] sm:$0xf] %vm974_vm3, %v1227_v41  ;;  %v496_v48 = vadd.f32 %v1537_v38, %v495_v46  ;;  %v624_v49 = vadd.f32 %v1537_v38, %v623_v47  ;;  %v1303_v50 = vpop.f32.mrb[26].mxu0  ;;  %v1335_v51 = vpop.f32.mrb[26].mxu1 }
 0x110   :  { %v680_v52 = vmax.f32 %v504_v44, 0.0  ;;  %v712_v53 = vmax.f32 %v632_v45, 0.0  ;;  %v507_v54 = vadd.f32 %v1303_v50, %v1537_v38  ;;  %v635_v55 = vadd.f32 %v1335_v51, %v1537_v38  ;;  %v498_v56 = vpop.f32.mrb[27].mxu0  ;;  %v626_v57 = vpop.f32.mrb[27].mxu1 }
 0x111   :  { %v678_v58 = vmax.f32 %v496_v48, 0.0  ;;  %v710_v59 = vmax.f32 %v624_v49, 0.0  ;;  %v499_v60 = vadd.f32 %v1537_v38, %v498_v56  ;;  %v627_v61 = vadd.f32 %v1537_v38, %v626_v57 }
 0x112   :  { %v1200_v62 = vpack.c.bf16 %v680_v52, %v680_v52  ;;  %v1232_v63 = vpack.c.bf16 %v712_v53, %v712_v53  ;;  %v681_v0 = vmax.f32 %v507_v54, 0.0  ;;  %v713_v1 = vmax.f32 %v635_v55, 0.0 }
 0x113   :  { %v1198_v2 = vpack.c.bf16 %v678_v58, %v678_v58  ;;  %v1230_v3 = vpack.c.bf16 %v710_v59, %v710_v59  ;;  %v679_v4 = vmax.f32 %v499_v60, 0.0  ;;  %v711_v5 = vmax.f32 %v627_v61, 0.0 }
 0x114   :  { %1001 = vst.msk [vmem:[%s1862_s3 + $0x68] sm:$0xf] %vm974_vm3, %v1200_v62  ;;  %1033 = vst.msk [vmem:[%s1862_s3 + $0xe8] sm:$0xf] %vm974_vm3, %v1232_v63  ;;  %v1201_v6 = vpack.c.bf16 %v681_v0, %v681_v0  ;;  %v1233_v7 = vpack.c.bf16 %v713_v1, %v713_v1 }
 0x115   :  { %999 = vst.msk [vmem:[%s1862_s3 + $0x60] sm:$0xf] %vm974_vm3, %v1198_v2  ;;  %1031 = vst.msk [vmem:[%s1862_s3 + $0xe0] sm:$0xf] %vm974_vm3, %v1230_v3  ;;  %v1199_v8 = vpack.c.bf16 %v679_v4, %v679_v4  ;;  %v1231_v9 = vpack.c.bf16 %v711_v5, %v711_v5  ;;  %v1306_v10 = vpop.f32.mrb[28].mxu0  ;;  %v1338_v11 = vpop.f32.mrb[28].mxu1 }
 0x116   :  { %1002 = vst.msk [vmem:[%s1862_s3 + $0x6c] sm:$0xf] %vm974_vm3, %v1201_v6  ;;  %1034 = vst.msk [vmem:[%s1862_s3 + $0xec] sm:$0xf] %vm974_vm3, %v1233_v7  ;;  %v520_v12 = vadd.f32 %v1306_v10, %v1537_v38  ;;  %v648_v13 = vadd.f32 %v1338_v11, %v1537_v38  ;;  %v511_v14 = vpop.f32.mrb[29].mxu0  ;;  %v639_v15 = vpop.f32.mrb[29].mxu1 }
 0x117   :  { %1000 = vst.msk [vmem:[%s1862_s3 + $0x64] sm:$0xf] %vm974_vm3, %v1199_v8  ;;  %1032 = vst.msk [vmem:[%s1862_s3 + $0xe4] sm:$0xf] %vm974_vm3, %v1231_v9  ;;  %v512_v16 = vadd.f32 %v1537_v38, %v511_v14  ;;  %v640_v17 = vadd.f32 %v1537_v38, %v639_v15  ;;  %v1307_v18 = vpop.f32.mrb[30].mxu0  ;;  %v1339_v19 = vpop.f32.mrb[30].mxu1 }
 0x118   :  { %v684_v20 = vmax.f32 %v520_v12, 0.0  ;;  %v716_v21 = vmax.f32 %v648_v13, 0.0  ;;  %v523_v22 = vadd.f32 %v1307_v18, %v1537_v38  ;;  %v651_v23 = vadd.f32 %v1339_v19, %v1537_v38  ;;  %v514_v24 = vpop.f32.mrb[31].mxu0  ;;  %v642_v25 = vpop.f32.mrb[31].mxu1 }
 0x119   :  { %v682_v26 = vmax.f32 %v512_v16, 0.0  ;;  %v714_v27 = vmax.f32 %v640_v17, 0.0  ;;  %v515_v28 = vadd.f32 %v1537_v38, %v514_v24  ;;  %v643_v29 = vadd.f32 %v1537_v38, %v642_v25 }
 0x11a   :  { %v1204_v30 = vpack.c.bf16 %v684_v20, %v684_v20  ;;  %v1236_v31 = vpack.c.bf16 %v716_v21, %v716_v21  ;;  %v685_v32 = vmax.f32 %v523_v22, 0.0  ;;  %v717_v33 = vmax.f32 %v651_v23, 0.0 }
 0x11b   :  { %v1202_v34 = vpack.c.bf16 %v682_v26, %v682_v26  ;;  %v1234_v35 = vpack.c.bf16 %v714_v27, %v714_v27  ;;  %v683_v36 = vmax.f32 %v515_v28, 0.0  ;;  %v715_v37 = vmax.f32 %v643_v29, 0.0 }
 0x11c   :  { %1005 = vst.msk [vmem:[%s1862_s3 + $0x78] sm:$0xf] %vm974_vm3, %v1204_v30  ;;  %1037 = vst.msk [vmem:[%s1862_s3 + $0xf8] sm:$0xf] %vm974_vm3, %v1236_v31  ;;  %v1205_v39 = vpack.c.bf16 %v685_v32, %v685_v32  ;;  %v1237_v38 = vpack.c.bf16 %v717_v33, %v717_v33 }
 0x11d   :  { %1003 = vst.msk [vmem:[%s1862_s3 + $0x70] sm:$0xf] %vm974_vm3, %v1202_v34  ;;  %1035 = vst.msk [vmem:[%s1862_s3 + $0xf0] sm:$0xf] %vm974_vm3, %v1234_v35  ;;  %v1203_v40 = vpack.c.bf16 %v683_v36, %v683_v36  ;;  %v1235_v41 = vpack.c.bf16 %v715_v37, %v715_v37 }
 0x11e   :  { %1006 = vst.msk [vmem:[%s1862_s3 + $0x7c] sm:$0xf] %vm974_vm3, %v1205_v39  ;;  %1038 = vst.msk [vmem:[%s1862_s3 + $0xfc] sm:$0xf] %vm974_vm3, %v1237_v38 }
 0x11f   :  { %1004 = vst.msk [vmem:[%s1862_s3 + $0x74] sm:$0xf] %vm974_vm3, %v1203_v40  ;;  %1036 = vst.msk [vmem:[%s1862_s3 + $0xf4] sm:$0xf] %vm974_vm3, %v1235_v41 }

// kernel: res_trsf_trn_forward.3
= control target key start
LH: loop header
LB: loop body
LE: loop exit
PB: predicated region body
PF: predicated region fallthrough
CT: control target
= control target key end

     0   :  { %s5837_s0 = inlined_call_operand.vmem [shape: bf16[2,64,144], index: 0, kind: input, shape index: {}]   ;;  %s5838_s1 = inlined_call_operand.vmem [shape: bf16[144,24], index: 1, kind: input, shape index: {}]   ;;  %s5839_s2 = inlined_call_operand.vmem [shape: f32[1,24], index: 2, kind: input, shape index: {}, may-alias: {2,4,6}]   ;;  %s5840_s3 = inlined_call_operand.vmem [shape: bf16[24,24], index: 3, kind: input, shape index: {}]   ;;  %s5841_s4 = inlined_call_operand.vmem [shape: f32[1,24], index: 4, kind: input, shape index: {}, may-alias: {2,4,6}]   ;;  %s5842_s5 = inlined_call_operand.vmem [shape: bf16[24,24], index: 5, kind: input, shape index: {}]   ;;  %s5843_s6 = inlined_call_operand.vmem [shape: f32[1,24], index: 6, kind: input, shape index: {}, may-alias: {2,4,6}]   ;;  %s5844_s7 = inlined_call_operand.vmem [shape: bf16[24,32], index: 7, kind: input, shape index: {}]   ;;  %s5845_s8 = inlined_call_operand.vmem [shape: f32[1,32], index: 8, kind: input, shape index: {}, may-alias: {8,11,15,17,21,23}]   ;;  %s5846_s9 = inlined_call_operand.vmem [shape: f32[64,32], index: 9, kind: input, shape index: {}]   ;;  %s5847_s10 = inlined_call_operand.vmem [shape: f32[1,32], index: 10, kind: input, shape index: {}, may-alias: {10,16,22}]   ;;  %s5848_s11 = inlined_call_operand.vmem [shape: f32[1,32], index: 11, kind: input, shape index: {}, may-alias: {8,11,15,17,21,23}]   ;;  %s5849_s12 = inlined_call_operand.vmem [shape: bf16[32,96], index: 12, kind: input, shape index: {}]   ;;  %s5850_s13 = inlined_call_operand.vmem [shape: f32[1,96], index: 13, kind: input, shape index: {}]   ;;  %s5851_s14 = inlined_call_operand.vmem [shape: bf16[32,32], index: 14, kind: input, shape index: {}]   ;;  %s5852_s15 = inlined_call_operand.vmem [shape: f32[1,32], index: 15, kind: input, shape index: {}, may-alias: {8,11,15,17,21,23}]   ;;  %s5853_s16 = inlined_call_operand.vmem [shape: f32[1,32], index: 16, kind: input, shape index: {}, may-alias: {10,16,22}]   ;;  %s5854_s17 = inlined_call_operand.vmem [shape: f32[1,32], index: 17, kind: input, shape index: {}, may-alias: {8,11,15,17,21,23}]   ;;  %s5855_s18 = inlined_call_operand.vmem [shape: bf16[32,64], index: 18, kind: input, shape index: {}]   ;;  %s5856_s19 = inlined_call_operand.vmem [shape: f32[1,64], index: 19, kind: input, shape index: {}]   ;;  %s5857_s20 = inlined_call_operand.vmem [shape: bf16[64,32], index: 20, kind: input, shape index: {}]   ;;  %s5858_s21 = inlined_call_operand.vmem [shape: f32[1,32], index: 21, kind: input, shape index: {}, may-alias: {8,11,15,17,21,23}]   ;;  %s5859_s22 = inlined_call_operand.vmem [shape: f32[1,32], index: 22, kind: input, shape index: {}, may-alias: {10,16,22}]   ;;  %s5860_s23 = inlined_call_operand.vmem [shape: f32[1,32], index: 23, kind: input, shape index: {}, may-alias: {8,11,15,17,21,23}]   ;;  %s5861_s24 = inlined_call_operand.vmem [shape: bf16[32,2], index: 24, kind: input, shape index: {}]   ;;  %s5862_s25 = inlined_call_operand.vmem [shape: f32[1,2], index: 25, kind: input, shape index: {}]   ;;  %s5863_s26 = inlined_call_operand.hbm [shape: f32[2,1,2], index: 26, kind: output, shape index: {}]  }
   0x1   :  { %5887 = sst [smem:[#allocation19_spill]] %s5837_s0 }
   0x2   :  { %5888 = sst [smem:[#allocation20_spill]] %s5838_s1 }
   0x3   :  { %5889 = sst [smem:[#allocation21_spill]] %s5839_s2 }
   0x4   :  { %5890 = sst [smem:[#allocation22_spill]] %s5840_s3 }
   0x5   :  { %5891 = sst [smem:[#allocation23_spill]] %s5841_s4 }
   0x6   :  { %5892 = sst [smem:[#allocation24_spill]] %s5842_s5 }
   0x7   :  { %5893 = sst [smem:[#allocation25_spill]] %s5843_s6 }
   0x8   :  { %5894 = sst [smem:[#allocation26_spill]] %s5844_s7 }
   0x9   :  { %5895 = sst [smem:[#allocation27_spill]] %s5845_s8 }
   0xa   :  { %5896 = sst [smem:[#allocation28_spill]] %s5846_s9 }
   0xb   :  { %5897 = sst [smem:[#allocation29_spill]] %s5847_s10 }
   0xc   :  { %5898 = sst [smem:[#allocation30_spill]] %s5848_s11 }
   0xd   :  { %5899 = sst [smem:[#allocation31_spill]] %s5863_s26 }
   0xe   :  { %31 = vsyncpa [#allocation3], 0 }
   0xf   :  { %33 = vsyncpa [#allocation3 + $0x1], 0  ;;  %s4727_s27 = smov 0   ;;  %s4729_s3 = smov 0  }
  0x10   :  { %s4731_s7 = smov 0   ;;  %s4733_s28 = smov 0  }
  0x11 LB: > { %5900 = sst [smem:[#allocation5_spill]] %s4562_s27  ;;  %s4748_s8 = sadd.s32 4294967295, %s4574_s28   ;;  %s4574_s28 = sphi %s4733_s28, %s5941_s28   ;;  %s4570_s7 = sphi %s4731_s7, %s5943_s7   ;;  %s4566_s3 = sphi %s4729_s3, %s5945_s3   ;;  %s4562_s27 = sphi %s4727_s27, %s5944_s27  }
  0x12   : > { %5901 = sst [smem:[#allocation6_spill]] %s4570_s7  ;;  %s3690_s4 = sadd.s32 4294967294, %s4574_s28  }
  0x13   : > { %5902 = sst [smem:[#allocation7_spill]] %s4574_s28  ;;  %s4752_s29 = sadd.s32 1, %s4574_s28  }
  0x14   : > { %5903 = sst [smem:[#allocation8_spill]] %s4752_s29  ;;  %s597_s0 = sadd.s32 1, %s4570_s7 }
  0x15   : > { %s594_s9 = ssub.s32 %s4574_s28, %s4752_s29  ;;  %p607_p0 = scmp.ne.s32.totalorder %s4570_s7, %s4566_s3 }
  0x16   : > { %p595_p1 = scmp.eq.s32.totalorder %s594_s9, 0  ;;  %p608_p2 = scmp.eq.s32.totalorder %s4748_s8, 1 }
  0x17   : > { %p613_p3 = scmp.ne.s32.totalorder %s4566_s3, %s4562_s27  ;;  %p614_p4 = scmp.eq.s32.totalorder %s3690_s4, 1 }
  0x18   : > { %s4763_s30 = scalar_select %p595_p1, %s4570_s7, %s597_s0  }
  0x19   : > { %p4765_p5 = por %p608_p2, %p607_p0  ;;  %p4769_p6 = por %p614_p4, %p613_p3 }
  0x1a   : > { %5904 = sst [smem:[#allocation9_spill]] %s4763_s30  ;;  %p3693_p7 = scmp.ge.s32.totalorder %s4574_s28, 1 }
  0x1b   : > { %s5906_s5 = scalar_select %p4769_p6, 1, 0 }
  0x1c   : > { %p715_p8 = scmp.lt.s32.totalorder %s4574_s28, 3 }
  0x1d   : > { %5907 = sst [smem:[#allocation10_spill]] %s5906_s5 }
  0x1e   : > { %p716_p9 = pnand %p3693_p7, %p715_p8 }
  0x20   : > { %719 = sbr.rel (%p716_p9) target bundleno = 4905 (0x1329), region = 124 }
  0x27   : > { %s5908_s1 = sld [smem:[#allocation20_spill]]  ;;  %v4576_v1 = vmov 0   ;;  %p784_p10 = scmp.lt.s32.totalorder %s4748_s8, 1  ;;  %vm913_vm0 = vcmask 130048   ;;  %vm1035_vm1 = vcmask 1043456   ;;  %vm1022_vm2 = vcmask 195584  }
  0x28   : > { %926 = vmatprep.subr.bf16.mxu0 %v4576_v1  ;;  %s5909_s5 = sld [smem:[#allocation19_spill]]  ;;  %s5910_s29 = sld [smem:[#allocation22_spill]]  ;;  %vm1350_vm3 = vcmask 261120   ;;  %vm1618_vm4 = vcmask 64512   ;;  %vm1708_vm5 = vcmask 523264   ;;  %vm3596_vm6 = vcmask 15360  }
  0x29   : > { %s785_s9 = scalar_select %p784_p10, %s4748_s8, 1  ;;  %vm3620_vm7 = vcmask 8192  }
  0x2a   : > { %s5913_s10 = sld [smem:[#allocation21_spill]]  ;;  %s5914_s26 = sld [smem:[#allocation26_spill]] }
  0x2b   : > { %s3817_s30 = sshll.u32 %s785_s9, 6  ;;  %s5915_s0 = sld [smem:[#allocation23_spill]] }
  0x2c   : > { %s5927_s7 = sld [smem:[#allocation29_spill]]  ;;  %s5928_s11 = sld [smem:[#allocation30_spill]] }
  0x2d   : > { %v4297_v0 = vld [vmem:[%s5908_s1] sm:$0xff]   ;;  %v4298_v2 = vld [vmem:[%s5908_s1 + $0x8] sm:$0xff]   ;;  %v4299_v3 = vld [vmem:[%s5908_s1 + $0x10] sm:$0xff]   ;;  %s4579_s9 = smov 120   ;;  %s4580_s6 = smov 64  }
  0x2e   : > { %927 = vmatpush1.bf16.msra.mxu0 %v4297_v0  ;;  %s4789_s27 = scalar_lea.vmem %s5909_s5, %s3817_s30  ;;  %v4300_v4 = vld [vmem:[%s5908_s1 + $0x18] sm:$0xff]   ;;  %v4301_v6 = vld [vmem:[%s5908_s1 + $0x20] sm:$0xff]   ;;  %v4302_v7 = vld [vmem:[%s5908_s1 + $0x28] sm:$0xff]   ;;  %s5916_s30 = sld [smem:[#allocation25_spill]] }
  0x2f   : > { %928 = vmatprep.subr.bf16.mxu0 %v4576_v1  ;;  %v4308_v5 = vld [vmem:[%s4789_s27 + $0x4] ss:$8 sps:$4 sm:$0xff]   ;;  %v4303_v8 = vld [vmem:[%s5908_s1 + $0x30] sm:$0xff]   ;;  %v4304_v9 = vld [vmem:[%s5908_s1 + $0x38] sm:$0xff]   ;;  %s4583_s5 = smov 112   ;;  %s4584_s28 = smov 48  }
  0x30   : > { %3714 = vmatprep.mubr.msk.bf16.mxu0 %vm913_vm0, %v4308_v5  ;;  %v4305_v10 = vld [vmem:[%s5908_s1 + $0x40] sm:$0xff]   ;;  %v4309_v12 = vld [vmem:[%s4789_s27 + $0x14] ss:$8 sps:$4 sm:$0xff]   ;;  %v4311_v13 = vld [vmem:[%s4789_s27 + $0x10] ss:$8 sps:$4 sm:$0xff]   ;;  %s4585_s1 = smov 72  }
  0x31   : > { %v4306_v11 = vld [vmem:[%s4789_s27] ss:$8 sps:$4 sm:$0xff]   ;;  %v4312_v14 = vld [vmem:[%s4789_s27 + $0x24] ss:$8 sps:$4 sm:$0xff]   ;;  %v4315_v16 = vld [vmem:[%s4789_s27 + $0x34] ss:$8 sps:$4 sm:$0xff]  }
  0x32   : > { %929 = vmatpush1.bf16.msra.mxu0 %v4298_v2  ;;  %v4314_v15 = vld [vmem:[%s4789_s27 + $0x20] ss:$8 sps:$4 sm:$0xff]   ;;  %v4317_v17 = vld [vmem:[%s4789_s27 + $0x30] ss:$8 sps:$4 sm:$0xff]   ;;  %s5911_s27 = sld [smem:[#allocation24_spill]] }
  0x33   : > { %930 = vmatprep.subr.bf16.mxu0 %v4576_v1  ;;  %v4318_v18 = vld [vmem:[%s5910_s29] sm:$0xff]   ;;  %v4319_v19 = vld [vmem:[%s5910_s29 + $0x8] ss:$0 sps:$4 sm:$0xff]  }
  0x34   : > { %3932 = vmatprep.subr.bf16.mxu1 %v4318_v18  ;;  %v1037_v20 = vsel %vm1035_vm1, %v4319_v19, 0  ;;  %v3696_v22 = vld [vmem:[%s5913_s10] ss:$0 sm:$0xff]  ;;  %s5918_s10 = sld [smem:[#allocation28_spill]] }
  0x35   : > { %3933 = vmatpush3.bf16.msra.mxu1 %v4318_v18  ;;  %v4322_v61 = vld [vmem:[%s5914_s26] sm:$0xff]  }
  0x36   : > { %931 = vmatpush1.bf16.msra.mxu0 %v4299_v3  ;;  %4164 = vmatprep.subr.msk.bf16.mxu1 %vm1035_vm1, %v4319_v19  ;;  %v3718_v62 = vld [vmem:[%s5915_s0] ss:$0 sm:$0xff]  ;;  %s4578_s0 = smov 88  }
  0x37   : > { %932 = vmatprep.subr.bf16.mxu0 %v4576_v1 }
  0x38   : > { %s5912_s4 = smov %s5911_s27  ;;  %v4320_v21 = vld [vmem:[%s5911_s27] sm:$0xff]   ;;  %s5917_s27 = sld [smem:[#allocation27_spill]] }
  0x39   : > { %3935 = vmatpush3.bf16.msra.mxu1 %v1037_v20  ;;  %v4321_v59 = vld [vmem:[%s5912_s4 + $0x8] ss:$0 sps:$4 sm:$0xff]  }
  0x3a   : > { %933 = vmatpush1.bf16.msra.mxu0 %v4300_v4  ;;  %3944 = vmatprep.subr.bf16.mxu1 %v4320_v21  ;;  %v1148_v60 = vsel %vm1035_vm1, %v4321_v59, 0 }
  0x3b   : > { %934 = vmatprep.subr.bf16.mxu0 %v4576_v1 }
  0x3e   : > { %935 = vmatpush1.bf16.msra.mxu0 %v4301_v6 }
  0x3f   : > { %936 = vmatprep.subr.bf16.mxu0 %v4576_v1 }
  0x42   : > { %937 = vmatpush1.bf16.msra.mxu0 %v4302_v7 }
  0x43   : > { %938 = vmatprep.subr.bf16.mxu0 %v4576_v1 }
  0x46   : > { %939 = vmatpush1.bf16.msra.mxu0 %v4303_v8 }
  0x47   : > { %940 = vmatprep.subr.bf16.mxu0 %v4576_v1 }
  0x4a   : > { %941 = vmatpush1.bf16.msra.mxu0 %v4304_v9 }
  0x4b   : > { %942 = vmatprep.subr.bf16.mxu0 %v4576_v1 }
  0x4e   : > { %943 = vmatpush1.bf16.msra.mxu0 %v4305_v10 }
  0x51   : > { %959 = vmatmul.mubr.bf16.vlgmr.msra.gmra.mrb[0].mxu0 %v4306_v11 }
  0x52   : > { %3715 = vmatprep.mubr.msk.bf16.mxu0 %vm913_vm0, %v4309_v12 }
  0x59   : > { %967 = vmatmul.mubr.bf16.gmra.mrb[4].mxu0 %v4311_v13 }
  0x5a   : > { %3716 = vmatprep.mubr.msk.bf16.mxu0 %vm913_vm0, %v4312_v14 }
  0x61   : > { %975 = vmatmul.mubr.bf16.gmra.mrb[8].mxu0 %v4314_v15 }
  0x62   : > { %3717 = vmatprep.mubr.msk.bf16.mxu0 %vm913_vm0, %v4315_v16 }
  0x69   : > { %983 = vmatmul.mubr.bf16.gmra.mrb[12].mxu0 %v4317_v17 }
 0x124   : > { %v960_v23 = vpop.f32.mrb[0].mxu0 }
 0x125   : > { %v4835_v24 = vadd.f32 %v3696_v22, %v960_v23  ;;  %v962_v25 = vpop.f32.mrb[1].mxu0 }
 0x126   : > { %v963_v26 = vpop.f32.mrb[2].mxu0 }
 0x127   : > { %v4837_v27 = vadd.f32 %v3696_v22, %v963_v26  ;;  %v965_v28 = vpop.f32.mrb[3].mxu0  ;;  %v991_v29 = vmax.f32 %v4835_v24, 0.0 }
 0x129   : > { %v992_v30 = vmax.f32 %v4837_v27, 0.0 }
 0x12b   : > { %v999_v31 = vpack.c.bf16 %v992_v30, %v991_v29 }
 0x12c   : > { %v968_v32 = vpop.f32.mrb[4].mxu0 }
 0x12d   : > { %v4845_v33 = vadd.f32 %v3696_v22, %v968_v32  ;;  %v970_v34 = vpop.f32.mrb[5].mxu0  ;;  %3936 = vmatprep.mubr.msk.bf16.mxu1 %vm1022_vm2, %v999_v31  ;;  %v4323_v31 = vld [vmem:[%s5914_s26 + $0x8] ss:$0 sps:$4 sm:$0xff]  }
 0x12e   : > { %v971_v35 = vpop.f32.mrb[6].mxu0  ;;  %v1267_v32 = vsel %vm1035_vm1, %v4323_v31, 0  ;;  %v3725_v34 = vld [vmem:[%s5916_s30] ss:$0 sm:$0xff]  ;;  %s4582_s30 = smov 80  }
 0x12f   : > { %v4848_v36 = vadd.f32 %v3696_v22, %v971_v35  ;;  %v973_v37 = vpop.f32.mrb[7].mxu0  ;;  %v993_v38 = vmax.f32 %v4845_v33, 0.0 }
 0x131   : > { %v994_v39 = vmax.f32 %v4848_v36, 0.0 }
 0x133   : > { %v1000_v40 = vpack.c.bf16 %v994_v39, %v993_v38 }
 0x134   : > { %v976_v41 = vpop.f32.mrb[8].mxu0 }
 0x135   : > { %v4856_v42 = vadd.f32 %v3696_v22, %v976_v41  ;;  %v978_v43 = vpop.f32.mrb[9].mxu0  ;;  %3937 = vmatmul.mubr.msk.bf16.vlgmr.msra.gmra.mrb[0].mxu1 %vm1022_vm2, %v1000_v40 }
 0x136   : > { %v979_v44 = vpop.f32.mrb[10].mxu0  ;;  %3945 = vmatpush3.bf16.msra.mxu1 %v4320_v21 }
 0x137   : > { %v995_v45 = vmax.f32 %v4856_v42, 0.0  ;;  %v4860_v46 = vadd.f32 %v3696_v22, %v979_v44  ;;  %v981_v47 = vpop.f32.mrb[11].mxu0  ;;  %4165 = vmatprep.subr.msk.bf16.mxu1 %vm1035_vm1, %v4321_v59  ;;  %v3732_v42 = vld [vmem:[%s5917_s27] ss:$0 sm:$0xff]  ;;  %s4577_s27 = smov 96  }
 0x139   : > { %v996_v48 = vmax.f32 %v4860_v46, 0.0  ;;  %v1336_v46 = vld [vmem:[%s5918_s10 + $0x10] sm:$0xff] }
 0x13a   : > { %3947 = vmatpush3.bf16.msra.mxu1 %v1148_v60 }
 0x13b   : > { %v1001_v49 = vpack.c.bf16 %v996_v48, %v995_v45  ;;  %3956 = vmatprep.subr.bf16.mxu1 %v4322_v61 }
 0x13c   : > { %v984_v50 = vpop.f32.mrb[12].mxu0 }
 0x13d   : > { %v4867_v51 = vadd.f32 %v3696_v22, %v984_v50  ;;  %v986_v52 = vpop.f32.mrb[13].mxu0  ;;  %3940 = vmatprep.mubr.msk.bf16.mxu1 %vm1022_vm2, %v1001_v49 }
 0x13e   : > { %v987_v53 = vpop.f32.mrb[14].mxu0 }
 0x13f   : > { %v997_v54 = vmax.f32 %v4867_v51, 0.0  ;;  %v4871_v55 = vadd.f32 %v3696_v22, %v987_v53  ;;  %v989_v56 = vpop.f32.mrb[15].mxu0 }
 0x141   : > { %v998_v57 = vmax.f32 %v4871_v55, 0.0 }
 0x143   : > { %v1002_v58 = vpack.c.bf16 %v998_v57, %v997_v54 }
 0x145   : > { %3941 = vmatmul.mubr.msk.bf16.gmra.mrb[4].mxu1 %vm1022_vm2, %v1002_v58 }
 0x208   : > { %v3938_v63 = vpop.f32.mrb[0].mxu1 }
 0x209   : > { %v1082_v0 = vadd.f32 %v3938_v63, %v3718_v62  ;;  %v1073_v1 = vpop.f32.mrb[1].mxu1 }
 0x20a   : > { %v1074_v2 = vadd.f32 %v3718_v62, %v1073_v1  ;;  %v3939_v3 = vpop.f32.mrb[2].mxu1 }
 0x20b   : > { %v1085_v4 = vadd.f32 %v3939_v3, %v3718_v62  ;;  %v1076_v5 = vpop.f32.mrb[3].mxu1  ;;  %v1106_v7 = vmax.f32 %v1082_v0, 0.0 }
 0x20c   : > { %v1077_v6 = vadd.f32 %v3718_v62, %v1076_v5  ;;  %v1104_v9 = vmax.f32 %v1074_v2, 0.0 }
 0x20d   : > { %v1107_v8 = vmax.f32 %v1085_v4, 0.0 }
 0x20e   : > { %v1105_v10 = vmax.f32 %v1077_v6, 0.0 }
 0x20f   : > { %v1113_v11 = vpack.c.bf16 %v1107_v8, %v1106_v7 }
 0x210   : > { %v1112_v12 = vpack.c.bf16 %v1105_v10, %v1104_v9  ;;  %v1337_v10 = vld [vmem:[%s5918_s10 + $0x18] sm:$0xff] }
 0x212   : > { %3948 = vmatprep.mubr.msk.bf16.mxu1 %vm1022_vm2, %v1112_v12 }
 0x213   : > { %3949 = vmatmul.mubr.msk.bf16.vlgmr.msra.gmra.mrb[8].mxu1 %vm1022_vm2, %v1113_v11 }
 0x214   : > { %3957 = vmatpush3.bf16.msra.mxu1 %v4322_v61 }
 0x215   : > { %4166 = vmatprep.subr.msk.bf16.mxu1 %vm1035_vm1, %v4323_v31 }
 0x218   : > { %v3942_v13 = vpop.f32.mrb[4].mxu1  ;;  %3959 = vmatpush3.bf16.msra.mxu1 %v1267_v32 }
 0x219   : > { %v1098_v14 = vadd.f32 %v3942_v13, %v3718_v62  ;;  %v1089_v15 = vpop.f32.mrb[5].mxu1 }
 0x21a   : > { %v1090_v16 = vadd.f32 %v3718_v62, %v1089_v15  ;;  %v3943_v17 = vpop.f32.mrb[6].mxu1 }
 0x21b   : > { %v1101_v18 = vadd.f32 %v3943_v17, %v3718_v62  ;;  %v1092_v19 = vpop.f32.mrb[7].mxu1  ;;  %v1110_v21 = vmax.f32 %v1098_v14, 0.0  ;;  %v1335_v14 = vld [vmem:[%s5918_s10 + $0x8] sm:$0xff] }
 0x21c   : > { %v1093_v20 = vadd.f32 %v3718_v62, %v1092_v19  ;;  %v1108_v23 = vmax.f32 %v1090_v16, 0.0 }
 0x21d   : > { %v1111_v22 = vmax.f32 %v1101_v18, 0.0 }
 0x21e   : > { %v1109_v25 = vmax.f32 %v1093_v20, 0.0 }
 0x21f   : > { %v1115_v26 = vpack.c.bf16 %v1111_v22, %v1110_v21 }
 0x220   : > { %v1114_v28 = vpack.c.bf16 %v1109_v25, %v1108_v23 }
 0x222   : > { %3952 = vmatprep.mubr.msk.bf16.mxu1 %vm1022_vm2, %v1114_v28 }
 0x223   : > { %3953 = vmatmul.mubr.msk.bf16.gmra.mrb[12].mxu1 %vm1022_vm2, %v1115_v26  ;;  %v1338_v26 = vld [vmem:[%s5918_s10 + $0x20] sm:$0xff] }
 0x2e6   : > { %v3950_v35 = vpop.f32.mrb[8].mxu1 }
 0x2e7   : > { %v1193_v37 = vadd.f32 %v3950_v35, %v3725_v34  ;;  %v1184_v40 = vpop.f32.mrb[9].mxu1 }
 0x2e8   : > { %v1185_v41 = vadd.f32 %v3725_v34, %v1184_v40  ;;  %v3951_v43 = vpop.f32.mrb[10].mxu1 }
 0x2e9   : > { %v1217_v44 = vadd.f32 %v1193_v37, %v993_v38  ;;  %v1196_v47 = vadd.f32 %v3951_v43, %v3725_v34  ;;  %v1187_v49 = vpop.f32.mrb[11].mxu1  ;;  %v1339_v37 = vld [vmem:[%s5918_s10 + $0x28] sm:$0xff] }
 0x2ea   : > { %v1215_v50 = vadd.f32 %v1185_v41, %v991_v29  ;;  %v1188_v52 = vadd.f32 %v3725_v34, %v1187_v49 }
 0x2eb   : > { %v1218_v53 = vadd.f32 %v1196_v47, %v994_v39  ;;  %v1225_v58 = vmax.f32 %v1217_v44, 0.0  ;;  %v1341_v44 = vld [vmem:[%s5918_s10 + $0x38] sm:$0xff] }
 0x2ec   : > { %v1216_v56 = vadd.f32 %v1188_v52, %v992_v30  ;;  %v1223_v60 = vmax.f32 %v1215_v50, 0.0 }
 0x2ed   : > { %v1226_v59 = vmax.f32 %v1218_v53, 0.0 }
 0x2ee   : > { %v1224_v61 = vmax.f32 %v1216_v56, 0.0 }
 0x2ef   : > { %v1232_v62 = vpack.c.bf16 %v1226_v59, %v1225_v58 }
 0x2f0   : > { %v1231_v63 = vpack.c.bf16 %v1224_v61, %v1223_v60 }
 0x2f2   : > { %3960 = vmatprep.mubr.msk.bf16.mxu1 %vm1022_vm2, %v1231_v63 }
 0x2f3   : > { %3961 = vmatmul.mubr.msk.bf16.vlgmr.msra.gmra.mrb[16].mxu1 %vm1022_vm2, %v1232_v62 }
 0x2f6   : > { %v3954_v33 = vpop.f32.mrb[12].mxu1 }
 0x2f7   : > { %v1209_v24 = vadd.f32 %v3954_v33, %v3725_v34  ;;  %v1200_v29 = vpop.f32.mrb[13].mxu1 }
 0x2f8   : > { %v1201_v38 = vadd.f32 %v3725_v34, %v1200_v29  ;;  %v3955_v0 = vpop.f32.mrb[14].mxu1 }
 0x2f9   : > { %v1221_v36 = vadd.f32 %v1209_v24, %v997_v54  ;;  %v1212_v27 = vadd.f32 %v3955_v0, %v3725_v34  ;;  %v1203_v30 = vpop.f32.mrb[15].mxu1  ;;  %v1334_v54 = vld [vmem:[%s5918_s10] sm:$0xff] }
 0x2fa   : > { %v1219_v39 = vadd.f32 %v1201_v38, %v995_v45  ;;  %v1204_v1 = vadd.f32 %v3725_v34, %v1203_v30  ;;  %v1340_v34 = vld [vmem:[%s5918_s10 + $0x30] sm:$0xff] }
 0x2fb   : > { %v1222_v2 = vadd.f32 %v1212_v27, %v998_v57  ;;  %v1229_v4 = vmax.f32 %v1221_v36, 0.0 }
 0x2fc   : > { %v1220_v3 = vadd.f32 %v1204_v1, %v996_v48  ;;  %v1227_v6 = vmax.f32 %v1219_v39, 0.0 }
 0x2fd   : > { %v1230_v5 = vmax.f32 %v1222_v2, 0.0 }
 0x2fe   : > { %v1228_v7 = vmax.f32 %v1220_v3, 0.0 }
 0x2ff   : > { %v1234_v8 = vpack.c.bf16 %v1230_v5, %v1229_v4 }
 0x300   : > { %v1233_v9 = vpack.c.bf16 %v1228_v7, %v1227_v6 }
 0x302   : > { %3964 = vmatprep.mubr.msk.bf16.mxu1 %vm1022_vm2, %v1233_v9 }
 0x303   : > { %3965 = vmatmul.mubr.msk.bf16.gmra.mrb[20].mxu1 %vm1022_vm2, %v1234_v8 }
 0x3c6   : > { %v3962_v45 = vpop.f32.mrb[16].mxu1 }
 0x3c7   : > { %v1312_v48 = vadd.f32 %v3962_v45, %v3732_v42  ;;  %v1303_v51 = vpop.f32.mrb[17].mxu1 }
 0x3c8   : > { %v1304_v55 = vadd.f32 %v3732_v42, %v1303_v51  ;;  %v3963_v57 = vpop.f32.mrb[18].mxu1 }
 0x3c9   : > { %v4934_v11 = vadd.f32 %v1336_v46, %v1312_v48  ;;  %v1315_v12 = vadd.f32 %v3963_v57, %v3732_v42  ;;  %v1306_v13 = vpop.f32.mrb[19].mxu1 }
 0x3ca   : > { %v4939_v15 = vadd.f32 %v1334_v54, %v1304_v55  ;;  %v1307_v16 = vadd.f32 %v3732_v42, %v1306_v13 }
 0x3cb   : > { %5919 = vst [vmem:[#allocation11_spill] sm:$0xff] %v4934_v11  ;;  %v4941_v17 = vadd.f32 %v1337_v10, %v1315_v12  ;;  %v1357_v18 = vsel %vm1350_vm3, %v4934_v11, 0.0 }
 0x3cc   : > { %5920 = vst [vmem:[#allocation12_spill] sm:$0xff] %v4939_v15  ;;  %v4945_v19 = vadd.f32 %v1335_v14, %v1307_v16  ;;  %1358 = vadd.xlane.f32.xlu1 %v1357_v18  ;;  %v1351_v20 = vsel %vm1350_vm3, %v4939_v15, 0.0 }
 0x3cd   : > { %5921 = vst [vmem:[#allocation13_spill] sm:$0xff] %v4941_v17  ;;  %1352 = vadd.xlane.f32.xlu0 %v1351_v20  ;;  %v1360_v21 = vsel %vm1350_vm3, %v4941_v17, 0.0 }
 0x3ce   : > { %5922 = vst [vmem:[#allocation14_spill] sm:$0xff] %v4945_v19  ;;  %v1354_v22 = vsel %vm1350_vm3, %v4945_v19, 0.0 }
 0x3d0   : > { %1361 = vadd.xlane.f32.xlu1 %v1360_v21 }
 0x3d1   : > { %1355 = vadd.xlane.f32.xlu0 %v1354_v22 }
 0x3d6   : > { %v3966_v23 = vpop.f32.mrb[20].mxu1 }
 0x3d7   : > { %v1319_v25 = vpop.f32.mrb[21].mxu1  ;;  %v1328_v28 = vadd.f32 %v3966_v23, %v3732_v42  ;;  %v4324_v23 = vld [vmem:[%s5849_s12] sm:$0xff]  }
 0x3d8   : > { %v1320_v31 = vadd.f32 %v3732_v42, %v1319_v25  ;;  %v3967_v32 = vpop.f32.mrb[22].mxu1  ;;  %3968 = vmatprep.subr.bf16.mxu1 %v4324_v23  ;;  %v4325_v25 = vld [vmem:[%s5849_s12 + $0x8] sm:$0xff]  }
 0x3d9   : > { %v1322_v35 = vpop.f32.mrb[23].mxu1  ;;  %v1331_v41 = vadd.f32 %v3967_v32, %v3732_v42  ;;  %v4967_v47 = vadd.f32 %v1340_v34, %v1328_v28  ;;  %3969 = vmatpush3.bf16.msra.mxu1 %v4324_v23 }
 0x3da   : > { %v4962_v40 = vadd.f32 %v1338_v26, %v1320_v31  ;;  %v1323_v43 = vadd.f32 %v3732_v42, %v1322_v35  ;;  %3970 = vmatprep.subr.bf16.mxu1 %v4325_v25 }
 0x3db   : > { %5924 = vst [vmem:[#allocation16_spill] sm:$0xff] %v4967_v47  ;;  %v4973_v52 = vadd.f32 %v1341_v44, %v1331_v41  ;;  %v1369_v56 = vsel %vm1350_vm3, %v4967_v47, 0.0 }
 0x3dc   : > { %5923 = vst [vmem:[#allocation15_spill] sm:$0xff] %v4962_v40  ;;  %v4969_v49 = vadd.f32 %v1339_v37, %v1323_v43  ;;  %v1363_v50 = vsel %vm1350_vm3, %v4962_v40, 0.0 }
 0x3dd   : > { %1364 = vadd.xlane.f32.xlu0 %v1363_v50  ;;  %5926 = vst [vmem:[#allocation18_spill] sm:$0xff] %v4973_v52  ;;  %v1372_v58 = vsel %vm1350_vm3, %v4973_v52, 0.0  ;;  %3971 = vmatpush3.bf16.msra.mxu1 %v4325_v25 }
 0x3de   : > { %5925 = vst [vmem:[#allocation17_spill] sm:$0xff] %v4969_v49  ;;  %v1366_v53 = vsel %vm1350_vm3, %v4969_v49, 0.0 }
 0x3df   : > { %1367 = vadd.xlane.f32.xlu1 %v1366_v53 }
 0x3e1   : > { %1370 = vadd.xlane.f32.xlu0 %v1369_v56 }
 0x3e3   : > { %1373 = vadd.xlane.f32.xlu1 %v1372_v58 }
 0x459   : > { %v1359_v59 = vpop.xlane.xlu1 %1358 }
 0x45a   : > { %v1378_v60 = vmul.f32 0.03125, %v1359_v59  ;;  %v1353_v61 = vpop.xlane.xlu0 %1352 }
 0x45b   : > { %v1376_v62 = vmul.f32 0.03125, %v1353_v61 }
 0x45c   : > { %v4982_v63 = vsub.f32 %v4934_v11, %v1378_v60  ;;  %v3739_v60 = vld [vmem:[%s5927_s7] ss:$0 sm:$0xff]  ;;  %s4581_s7 = smov 56  }
 0x45d   : > { %v4985_v33 = vsub.f32 %v4939_v15, %v1376_v62  ;;  %v1362_v24 = vpop.xlane.xlu1 %1361 }
 0x45e   : > { %v1379_v29 = vmul.f32 0.03125, %v1362_v24  ;;  %v1356_v38 = vpop.xlane.xlu0 %1355  ;;  %v1394_v1 = vmul.f32 %v4982_v63, %v4982_v63 }
 0x45f   : > { %v1377_v0 = vmul.f32 0.03125, %v1356_v38  ;;  %v1392_v36 = vmul.f32 %v4985_v33, %v4985_v33 }
 0x460   : > { %v4990_v27 = vsub.f32 %v4941_v17, %v1379_v29  ;;  %v1406_v3 = vsel %vm1350_vm3, %v1394_v1, 0.0 }
 0x461   : > { %v4993_v30 = vsub.f32 %v4945_v19, %v1377_v0  ;;  %v1400_v39 = vsel %vm1350_vm3, %v1392_v36, 0.0 }
 0x462   : > { %1401 = vadd.xlane.f32.xlu0 %v1400_v39  ;;  %v1395_v5 = vmul.f32 %v4990_v27, %v4990_v27 }
 0x463   : > { %v1393_v2 = vmul.f32 %v4993_v30, %v4993_v30 }
 0x464   : > { %v1409_v6 = vsel %vm1350_vm3, %v1395_v5, 0.0 }
 0x465   : > { %v1403_v4 = vsel %vm1350_vm3, %v1393_v2, 0.0  ;;  %v3740_v2 = vld [vmem:[%s5928_s11] ss:$0 sm:$0xff] }
 0x466   : > { %1407 = vadd.xlane.f32.xlu0 %v1406_v3  ;;  %1404 = vadd.xlane.f32.xlu1 %v1403_v4 }
 0x46a   : > { %1410 = vadd.xlane.f32.xlu1 %v1409_v6  ;;  %v1365_v7 = vpop.xlane.xlu0 %1364 }
 0x46b   : > { %v1380_v8 = vmul.f32 0.03125, %v1365_v7 }
 0x46c   : > { %v1368_v9 = vpop.xlane.xlu1 %1367 }
 0x46d   : > { %v5006_v42 = vsub.f32 %v4962_v40, %v1380_v8  ;;  %v1381_v45 = vmul.f32 0.03125, %v1368_v9 }
 0x46e   : > { %v1371_v46 = vpop.xlane.xlu0 %1370 }
 0x46f   : > { %v5009_v48 = vsub.f32 %v4969_v49, %v1381_v45  ;;  %v1382_v51 = vmul.f32 0.03125, %v1371_v46  ;;  %v1396_v54 = vmul.f32 %v5006_v42, %v5006_v42 }
 0x470   : > { %v1374_v55 = vpop.xlane.xlu1 %1373 }
 0x471   : > { %v5014_v57 = vsub.f32 %v4967_v47, %v1382_v51  ;;  %v1383_v10 = vmul.f32 0.03125, %v1374_v55  ;;  %v1412_v12 = vsel %vm1350_vm3, %v1396_v54, 0.0  ;;  %v1397_v13 = vmul.f32 %v5009_v48, %v5009_v48 }
 0x472   : > { %1413 = vadd.xlane.f32.xlu0 %v1412_v12 }
 0x473   : > { %v5020_v14 = vsub.f32 %v4973_v52, %v1383_v10  ;;  %v1415_v16 = vsel %vm1350_vm3, %v1397_v13, 0.0  ;;  %v1398_v18 = vmul.f32 %v5014_v57, %v5014_v57 }
 0x474   : > { %1416 = vadd.xlane.f32.xlu1 %v1415_v16 }
 0x475   : > { %v1418_v20 = vsel %vm1350_vm3, %v1398_v18, 0.0  ;;  %v1399_v21 = vmul.f32 %v5020_v14, %v5020_v14 }
 0x476   : > { %1419 = vadd.xlane.f32.xlu0 %v1418_v20 }
 0x477   : > { %v1421_v22 = vsel %vm1350_vm3, %v1399_v21, 0.0 }
 0x478   : > { %1422 = vadd.xlane.f32.xlu1 %v1421_v22 }
 0x4ef   : > { %v1402_v26 = vpop.xlane.xlu0 %1401 }
 0x4f0   : > { %v1424_v28 = vmul.f32 0.03125, %v1402_v26 }
 0x4f2   : > { %v1432_v31 = vadd.f32 1e-05, %v1424_v28 }
 0x4f3   : > { %v1405_v32 = vpop.xlane.xlu1 %1404  ;;  %v1408_v34 = vpop.xlane.xlu0 %1407 }
 0x4f4   : > { %4336 = vrsqrt.f32 %v1432_v31  ;;  %v1425_v35 = vmul.f32 0.03125, %v1405_v32  ;;  %v1426_v37 = vmul.f32 0.03125, %v1408_v34 }
 0x4f6   : > { %v1433_v41 = vadd.f32 1e-05, %v1425_v35  ;;  %v1434_v43 = vadd.f32 1e-05, %v1426_v37 }
 0x4f7   : > { %v1411_v44 = vpop.xlane.xlu1 %1410 }
 0x4f8   : > { %4338 = vrsqrt.f32 %v1433_v41  ;;  %v1427_v50 = vmul.f32 0.03125, %v1411_v44 }
 0x4f9   : > { %4340 = vrsqrt.f32 %v1434_v43 }
 0x4fa   : > { %v1435_v53 = vadd.f32 1e-05, %v1427_v50 }
 0x4fc   : > { %4342 = vrsqrt.f32 %v1435_v53 }
 0x4fe   : > { %v4337_v56 = vpop.eup %4336 }
 0x4ff   : > { %v1414_v58 = vpop.xlane.xlu0 %1413  ;;  %v1448_v59 = vmul.f32 %v4337_v56, %v4985_v33 }
 0x500   : > { %v1428_v61 = vmul.f32 0.03125, %v1414_v58 }
 0x501   : > { %v1417_v62 = vpop.xlane.xlu1 %1416  ;;  %v1463_v1 = vmul.f32 %v3739_v60, %v1448_v59 }
 0x502   : > { %v4339_v24 = vpop.eup %4338  ;;  %v1436_v29 = vadd.f32 1e-05, %v1428_v61  ;;  %v1429_v38 = vmul.f32 0.03125, %v1417_v62 }
 0x503   : > { %v4341_v0 = vpop.eup %4340  ;;  %v1420_v36 = vpop.xlane.xlu0 %1419  ;;  %v1449_v39 = vmul.f32 %v4339_v24, %v4993_v30  ;;  %v1478_v30 = vadd.f32 %v3740_v2, %v1463_v1 }
 0x504   : > { %v1450_v33 = vmul.f32 %v4341_v0, %v4982_v63  ;;  %4344 = vrsqrt.f32 %v1436_v29  ;;  %v1437_v3 = vadd.f32 1e-05, %v1429_v38  ;;  %v1430_v4 = vmul.f32 0.03125, %v1420_v36 }
 0x505   : > { %v1423_v5 = vpop.xlane.xlu1 %1422  ;;  %v1464_v6 = vmul.f32 %v3739_v60, %v1449_v39 }
 0x506   : > { %v4343_v7 = vpop.eup %4342  ;;  %4346 = vrsqrt.f32 %v1437_v3  ;;  %v1438_v8 = vadd.f32 1e-05, %v1430_v4  ;;  %v1431_v9 = vmul.f32 0.03125, %v1423_v5  ;;  %v1465_v45 = vmul.f32 %v3739_v60, %v1450_v33 }
 0x507   : > { %v1451_v46 = vmul.f32 %v4343_v7, %v4990_v27  ;;  %v1479_v51 = vadd.f32 %v3740_v2, %v1464_v6 }
 0x508   : > { %4348 = vrsqrt.f32 %v1438_v8  ;;  %v1439_v54 = vadd.f32 1e-05, %v1431_v9  ;;  %v1480_v63 = vadd.f32 %v3740_v2, %v1465_v45 }
 0x509   : > { %v1466_v55 = vmul.f32 %v3739_v60, %v1451_v46  ;;  %v1486_v10 = vpack.c.bf16 %v1479_v51, %v1478_v30 }
 0x50a   : > { %4350 = vrsqrt.f32 %v1439_v54 }
 0x50b   : > { %v1481_v12 = vadd.f32 %v3740_v2, %v1466_v55  ;;  %3972 = vmatprep.mubr.msk.bf16.mxu1 %vm1350_vm3, %v1486_v10 }
 0x50d   : > { %v1487_v13 = vpack.c.bf16 %v1481_v12, %v1480_v63 }
 0x50e   : > { %v4345_v16 = vpop.eup %4344 }
 0x50f   : > { %3973 = vmatmul.mubr.msk.bf16.vlgmr.msra.gmra.mrb[24].mxu1 %vm1350_vm3, %v1487_v13  ;;  %v1452_v18 = vmul.f32 %v4345_v16, %v5006_v42 }
 0x510   : > { %v4347_v20 = vpop.eup %4346 }
 0x511   : > { %v1453_v27 = vmul.f32 %v4347_v20, %v5009_v48  ;;  %v1467_v21 = vmul.f32 %v3739_v60, %v1452_v18  ;;  %v3741_v48 = vld [vmem:[%s5850_s13] ss:$0 sm:$0xff] }
 0x512   : > { %v4349_v22 = vpop.eup %4348 }
 0x513   : > { %v1468_v23 = vmul.f32 %v3739_v60, %v1453_v27  ;;  %v1454_v25 = vmul.f32 %v4349_v22, %v5014_v57  ;;  %v1482_v28 = vadd.f32 %v3740_v2, %v1467_v21 }
 0x514   : > { %v4351_v26 = vpop.eup %4350 }
 0x515   : > { %v1483_v31 = vadd.f32 %v3740_v2, %v1468_v23  ;;  %v1455_v32 = vmul.f32 %v4351_v26, %v5020_v14  ;;  %v1469_v34 = vmul.f32 %v3739_v60, %v1454_v25 }
 0x517   : > { %v1488_v35 = vpack.c.bf16 %v1483_v31, %v1482_v28  ;;  %v1470_v37 = vmul.f32 %v3739_v60, %v1455_v32  ;;  %v1484_v41 = vadd.f32 %v3740_v2, %v1469_v34 }
 0x519   : > { %3976 = vmatprep.mubr.msk.bf16.mxu1 %vm1350_vm3, %v1488_v35  ;;  %v1485_v42 = vadd.f32 %v3740_v2, %v1470_v37 }
 0x51b   : > { %v1489_v43 = vpack.c.bf16 %v1485_v42, %v1484_v41 }
 0x51d   : > { %3977 = vmatmul.mubr.msk.bf16.gmra.mrb[28].mxu1 %vm1350_vm3, %v1489_v43 }
 0x5e2   : > { %v3974_v57 = vpop.f32.mrb[24].mxu1 }
 0x5e3   : > { %v1568_v44 = vadd.f32 %v3974_v57, %v3741_v48  ;;  %v1559_v50 = vpop.f32.mrb[25].mxu1 }
 0x5e4   : > { %v1560_v53 = vadd.f32 %v3741_v48, %v1559_v50  ;;  %v3975_v56 = vpop.f32.mrb[26].mxu1 }
 0x5e5   : > { %v1571_v14 = vadd.f32 %v3975_v56, %v3741_v48  ;;  %v1562_v58 = vpop.f32.mrb[27].mxu1  ;;  %v1592_v60 = vmul.f32 0.35355338, %v1568_v44 }
 0x5e6   : > { %v1563_v59 = vadd.f32 %v3741_v48, %v1562_v58  ;;  %v1590_v24 = vmul.f32 0.35355338, %v1560_v53 }
 0x5e7   : > { %v1593_v61 = vmul.f32 0.35355338, %v1571_v14  ;;  %v5056_v62 = vpack.c.bf16 %v1571_v14, %v1568_v44 }
 0x5e8   : > { %v1591_v29 = vmul.f32 0.35355338, %v1563_v59  ;;  %v5058_v38 = vpack.c.bf16 %v1563_v59, %v1560_v53 }
 0x5e9   : > { %v5060_v0 = vpack.c.bf16 %v1593_v61, %v1592_v60  ;;  %1612 = vrot.lane.b32.xlu1 %v5056_v62, %s4577_s27 }
 0x5ea   : > { %v5063_v36 = vpack.c.bf16 %v1591_v29, %v1590_v24  ;;  %1610 = vrot.lane.b32.xlu0 %v5058_v38, %s4577_s27 }
 0x5ec   : > { %3988 = vmatprep.mubr.msk.bf16.mxu0 %vm1618_vm4, %v5063_v36 }
 0x5ee   : > { %1902 = vrot.lane.b32.xlu0 %v5058_v38, %s4578_s0 }
 0x5f0   : > { %v3978_v39 = vpop.f32.mrb[28].mxu1 }
 0x5f1   : > { %v1584_v1 = vadd.f32 %v3978_v39, %v3741_v48  ;;  %v1575_v2 = vpop.f32.mrb[29].mxu1 }
 0x5f2   : > { %v1576_v33 = vadd.f32 %v3741_v48, %v1575_v2  ;;  %v3979_v3 = vpop.f32.mrb[30].mxu1 }
 0x5f3   : > { %v1587_v4 = vadd.f32 %v3979_v3, %v3741_v48  ;;  %v1578_v5 = vpop.f32.mrb[31].mxu1  ;;  %v1596_v7 = vmul.f32 0.35355338, %v1584_v1 }
 0x5f4   : > { %v1579_v6 = vadd.f32 %v3741_v48, %v1578_v5  ;;  %v1594_v45 = vmul.f32 0.35355338, %v1576_v33 }
 0x5f5   : > { %v1597_v8 = vmul.f32 0.35355338, %v1587_v4  ;;  %v5069_v9 = vpack.c.bf16 %v1587_v4, %v1584_v1 }
 0x5f6   : > { %v1595_v46 = vmul.f32 0.35355338, %v1579_v6  ;;  %v5071_v30 = vpack.c.bf16 %v1579_v6, %v1576_v33 }
 0x5f7   : > { %v5073_v51 = vpack.c.bf16 %v1597_v8, %v1596_v7 }
 0x5f8   : > { %v5075_v54 = vpack.c.bf16 %v1595_v46, %v1594_v45  ;;  %1906 = vrot.lane.b32.xlu0 %v5071_v30, %s4578_s0  ;;  %1614 = vrot.lane.b32.xlu1 %v5071_v30, %s4577_s27 }
 0x5fc   : > { %1894 = vrot.lane.b32.xlu0 %v5063_v36, %s4579_s9  ;;  %1616 = vrot.lane.b32.xlu1 %v5069_v9, %s4577_s27  ;;  %s4586_s27 = smov 104  }
 0x600   : > { %1904 = vrot.lane.b32.xlu1 %v5056_v62, %s4578_s0  ;;  %1898 = vrot.lane.b32.xlu0 %v5075_v54, %s4579_s9 }
 0x604   : > { %1908 = vrot.lane.b32.xlu1 %v5069_v9, %s4578_s0  ;;  %1793 = vrot.lane.b32.xlu0 %v5058_v38, %s4580_s6  ;;  %s4587_s0 = smov 40  }
 0x608   : > { %1896 = vrot.lane.b32.xlu1 %v5060_v0, %s4579_s9  ;;  %1797 = vrot.lane.b32.xlu0 %v5071_v30, %s4580_s6 }
 0x60c   : > { %1900 = vrot.lane.b32.xlu1 %v5073_v51, %s4579_s9  ;;  %2087 = vrot.lane.b32.xlu0 %v5071_v30, %s4581_s7  ;;  %s4588_s9 = smov 8  }
 0x610   : > { %1795 = vrot.lane.b32.xlu1 %v5056_v62, %s4580_s6 }
 0x614   : > { %1799 = vrot.lane.b32.xlu1 %v5069_v9, %s4580_s6  ;;  %s4589_s6 = smov 16  }
 0x618   : > { %2083 = vrot.lane.b32.xlu1 %v5058_v38, %s4581_s7 }
 0x61c   : > { %2085 = vrot.lane.b32.xlu1 %v5056_v62, %s4581_s7 }
 0x620   : > { %2089 = vrot.lane.b32.xlu1 %v5069_v9, %s4581_s7 }
 0x65b   : > { %v1613_v63 = vpop.permute.xlu1 %1612 }
 0x65c   : > { %v1611_v55 = vpop.permute.xlu0 %1610  ;;  %v1635_v12 = vsel %vm1618_vm4, %v1613_v63, 0 }
 0x65d   : > { %4167 = vmatprep.subr.msk.bf16.mxu0 %vm1618_vm4, %v1611_v55  ;;  %v1632_v10 = vsel %vm1618_vm4, %v1611_v55, 0 }
 0x65e   : > { %3981 = vmatpush3.bf16.xpose.msra.mxu0 %v1632_v10 }
 0x65f   : > { %4168 = vmatprep.subr.msk.bf16.mxu0 %vm1618_vm4, %v1613_v63 }
 0x660   : > { %v1903_v13 = vpop.permute.xlu0 %1902 }
 0x661   : > { %v1923_v32 = vsel %vm1618_vm4, %v1903_v13, 0 }
 0x666   : > { %3983 = vmatpush3.bf16.xpose.msra.mxu0 %v1635_v12 }
 0x66a   : > { %v1615_v16 = vpop.permute.xlu1 %1614  ;;  %v1907_v18 = vpop.permute.xlu0 %1906 }
 0x66b   : > { %4169 = vmatprep.subr.msk.bf16.mxu0 %vm1618_vm4, %v1615_v16  ;;  %v1638_v20 = vsel %vm1618_vm4, %v1615_v16, 0  ;;  %v1929_v48 = vsel %vm1618_vm4, %v1907_v18, 0 }
 0x66e   : > { %v1617_v27 = vpop.permute.xlu1 %1616  ;;  %3985 = vmatpush3.bf16.xpose.msra.mxu0 %v1638_v20  ;;  %v1895_v21 = vpop.permute.xlu0 %1894 }
 0x66f   : > { %4170 = vmatprep.subr.msk.bf16.mxu0 %vm1618_vm4, %v1617_v27  ;;  %v1641_v25 = vsel %vm1618_vm4, %v1617_v27, 0 }
 0x672   : > { %v1905_v22 = vpop.permute.xlu1 %1904  ;;  %v1899_v23 = vpop.permute.xlu0 %1898 }
 0x673   : > { %v1926_v41 = vsel %vm1618_vm4, %v1905_v22, 0 }
 0x676   : > { %v1909_v26 = vpop.permute.xlu1 %1908  ;;  %3987 = vmatpush3.bf16.xpose.msra.mxu0 %v1641_v25  ;;  %v1794_v28 = vpop.permute.xlu0 %1793 }
 0x677   : > { %3996 = vmatprep.subr.bf16.mxu1 %v1794_v28  ;;  %4171 = vmatprep.subr.msk.bf16.mxu0 %vm1618_vm4, %v1903_v13  ;;  %v1932_v57 = vsel %vm1618_vm4, %v1909_v26, 0 }
 0x678   : > { %3997 = vmatpush3.bf16.msra.mxu1 %v1794_v28 }
 0x67a   : > { %v1897_v31 = vpop.permute.xlu1 %1896  ;;  %v1798_v37 = vpop.permute.xlu0 %1797 }
 0x67d   : > { %3989 = vmatmul.mubr.msk.bf16.vlgmr.msra.gmra.mrb[16].mxu0 %vm1618_vm4, %v5060_v0 }
 0x67e   : > { %v1901_v34 = vpop.permute.xlu1 %1900  ;;  %3992 = vmatprep.mubr.msk.bf16.mxu0 %vm1618_vm4, %v5075_v54  ;;  %4013 = vmatpush3.bf16.xpose.msra.mxu0 %v1923_v32 }
 0x67f   : > { %4172 = vmatprep.subr.msk.bf16.mxu0 %vm1618_vm4, %v1905_v22  ;;  %v2088_v22 = vpop.permute.xlu0 %2087 }
 0x682   : > { %v1796_v35 = vpop.permute.xlu1 %1795 }
 0x683   : > { %3998 = vmatprep.subr.bf16.mxu1 %v1796_v35 }
 0x684   : > { %3999 = vmatpush3.bf16.msra.mxu1 %v1796_v35 }
 0x685   : > { %3993 = vmatmul.mubr.msk.bf16.gmra.mrb[20].mxu0 %vm1618_vm4, %v5073_v51  ;;  %4000 = vmatprep.subr.bf16.mxu1 %v1798_v37 }
 0x686   : > { %v1800_v42 = vpop.permute.xlu1 %1799  ;;  %4015 = vmatpush3.bf16.xpose.msra.mxu0 %v1926_v41  ;;  %4020 = vmatprep.mubr.msk.bf16.mxu0 %vm1618_vm4, %v1895_v21 }
 0x687   : > { %4173 = vmatprep.subr.msk.bf16.mxu0 %vm1618_vm4, %v1907_v18 }
 0x688   : > { %4001 = vmatpush3.bf16.msra.mxu1 %v1798_v37 }
 0x689   : > { %4002 = vmatprep.subr.bf16.mxu1 %v1800_v42 }
 0x68a   : > { %v5114_v43 = vpop.permute.xlu1 %2083 }
 0x68c   : > { %4003 = vmatpush3.bf16.msra.mxu1 %v1800_v42 }
 0x68d   : > { %4028 = vmatprep.subr.bf16.mxu1 %v5114_v43 }
 0x68e   : > { %4017 = vmatpush3.bf16.xpose.msra.mxu0 %v1929_v48  ;;  %v2086_v21 = vpop.permute.xlu1 %2085 }
 0x68f   : > { %4174 = vmatprep.subr.msk.bf16.mxu0 %vm1618_vm4, %v1909_v26 }
 0x696   : > { %4019 = vmatpush3.bf16.xpose.msra.mxu0 %v1932_v57 }
 0x69d   : > { %4021 = vmatmul.mubr.msk.bf16.vlgmr.msra.gmra.mrb[24].mxu0 %vm1618_vm4, %v1897_v31 }
 0x69e   : > { %4024 = vmatprep.mubr.msk.bf16.mxu0 %vm1618_vm4, %v1899_v23  ;;  %v5199_v23 = vpop.permute.xlu1 %2089 }
 0x6a5   : > { %4025 = vmatmul.mubr.msk.bf16.gmra.mrb[28].mxu0 %vm1618_vm4, %v1901_v34 }
 0x750   : > { %v5123_v44 = vpop.f32.mrb[16].mxu0 }
 0x751   : > { %v5125_v50 = vpop.f32.mrb[17].mxu0  ;;  %v1715_v53 = vsel %vm1708_vm5, %v5123_v44, -inf }
 0x752   : > { %1716 = vmax.xlane.f32.xlu0 %v1715_v53  ;;  %v5129_v56 = vpop.f32.mrb[18].mxu0  ;;  %v1709_v59 = vsel %vm1708_vm5, %v5125_v50, -inf }
 0x753   : > { %v5131_v14 = vpop.f32.mrb[19].mxu0  ;;  %v1718_v24 = vsel %vm1708_vm5, %v5129_v56, -inf }
 0x754   : > { %v1712_v58 = vsel %vm1708_vm5, %v5131_v14, -inf }
 0x755   : > { %1713 = vmax.xlane.f32.xlu1 %v1712_v58 }
 0x756   : > { %1710 = vmax.xlane.f32.xlu0 %v1709_v59 }
 0x758   : > { %v5137_v60 = vpop.f32.mrb[20].mxu0 }
 0x759   : > { %v5139_v61 = vpop.f32.mrb[21].mxu0  ;;  %v1727_v2 = vsel %vm1708_vm5, %v5137_v60, -inf }
 0x75a   : > { %1719 = vmax.xlane.f32.xlu0 %v1718_v24  ;;  %v5143_v29 = vpop.f32.mrb[22].mxu0  ;;  %v1721_v3 = vsel %vm1708_vm5, %v5139_v61, -inf }
 0x75b   : > { %v5145_v39 = vpop.f32.mrb[23].mxu0  ;;  %v1730_v1 = vsel %vm1708_vm5, %v5143_v29, -inf }
 0x75c   : > { %1731 = vmax.xlane.f32.xlu1 %v1730_v1  ;;  %v1724_v33 = vsel %vm1708_vm5, %v5145_v39, -inf }
 0x75e   : > { %1728 = vmax.xlane.f32.xlu0 %v1727_v2 }
 0x760   : > { %1725 = vmax.xlane.f32.xlu1 %v1724_v33 }
 0x762   : > { %1722 = vmax.xlane.f32.xlu0 %v1721_v3 }
 0x770   : > { %v5155_v4 = vpop.f32.mrb[24].mxu0 }
 0x771   : > { %v5157_v5 = vpop.f32.mrb[25].mxu0  ;;  %v2005_v6 = vsel %vm1708_vm5, %v5155_v4, -inf }
 0x772   : > { %2006 = vmax.xlane.f32.xlu0 %v2005_v6  ;;  %v5161_v7 = vpop.f32.mrb[26].mxu0  ;;  %v1999_v8 = vsel %vm1708_vm5, %v5157_v5, -inf }
 0x773   : > { %2000 = vmax.xlane.f32.xlu1 %v1999_v8  ;;  %v5165_v45 = vpop.f32.mrb[27].mxu0  ;;  %v2008_v55 = vsel %vm1708_vm5, %v5161_v7, -inf }
 0x774   : > { %v2002_v46 = vsel %vm1708_vm5, %v5165_v45, -inf }
 0x776   : > { %2003 = vmax.xlane.f32.xlu0 %v2002_v46 }
 0x777   : > { %2009 = vmax.xlane.f32.xlu1 %v2008_v55 }
 0x778   : > { %v5171_v10 = vpop.f32.mrb[28].mxu0 }
 0x779   : > { %v5173_v63 = vpop.f32.mrb[29].mxu0  ;;  %v2017_v12 = vsel %vm1708_vm5, %v5171_v10, -inf }
 0x77a   : > { %2018 = vmax.xlane.f32.xlu0 %v2017_v12  ;;  %v5177_v13 = vpop.f32.mrb[30].mxu0  ;;  %v2011_v18 = vsel %vm1708_vm5, %v5173_v63, -inf }
 0x77b   : > { %v5179_v16 = vpop.f32.mrb[31].mxu0  ;;  %v2020_v20 = vsel %vm1708_vm5, %v5177_v13, -inf }
 0x77c   : > { %v2014_v27 = vsel %vm1708_vm5, %v5179_v16, -inf }
 0x77e   : > { %2012 = vmax.xlane.f32.xlu0 %v2011_v18 }
 0x782   : > { %2021 = vmax.xlane.f32.xlu0 %v2020_v20 }
 0x788   : > { %2190 = vrot.lane.b32.xlu1 %v5056_v62, %s4582_s30 }
 0x78c   : > { %2192 = vrot.lane.b32.xlu1 %v5071_v30, %s4582_s30 }
 0x798   : > { %2188 = vrot.lane.b32.xlu0 %v5058_v38, %s4582_s30 }
 0x79c   : > { %2180 = vrot.lane.b32.xlu0 %v5063_v36, %s4583_s5 }
 0x7a0   : > { %2184 = vrot.lane.b32.xlu0 %v5075_v54, %s4583_s5 }
 0x7a4   : > { %2369 = vrot.lane.b32.xlu0 %v5058_v38, %s4584_s28 }
 0x7b0   : > { %2015 = vmax.xlane.f32.xlu1 %v2014_v27 }
 0x7c1   : > { %2194 = vrot.lane.b32.xlu1 %v5069_v9, %s4582_s30  ;;  %s782_s30 = sand.u32 1, %s4566_s3  }
 0x7c2   : > { %s3623_s7 = scalar_lea.sflag [#allocation3], %s782_s30 }
 0x7c5   : > { %2182 = vrot.lane.b32.xlu1 %v5060_v0, %s4583_s5 }
 0x7c9   : > { %2186 = vrot.lane.b32.xlu1 %v5073_v51, %s4583_s5  ;;  %s3814_s5 = sshll.u32 %s4748_s8, 4  ;;  %s4591_s8 = smov [#allocation2]  }
 0x7ca   : > { %s4516_s10 = sshll.u32 %s4591_s8, 4  ;;  %s4517_s10 = int_to_ptr.vmem [resolvable:$false] %s4516_s10 }
 0x7cb   : > { %s4518_s11 = scalar_lea.vmem %s4517_s10, 32 }
 0x7cd   : > { %2371 = vrot.lane.b32.xlu1 %v5056_v62, %s4584_s28 }
 0x7d1   : > { %2373 = vrot.lane.b32.xlu1 %v5071_v30, %s4584_s28 }
 0x7d5   : > { %2375 = vrot.lane.b32.xlu1 %v5069_v9, %s4584_s28  ;;  %s783_s28 = scalar_lea.vmem [#allocation2], %s782_s30 }
 0x7df   : > { %v1717_v25 = vpop.xlane.xlu0 %1716 }
 0x7e0   : > { %v1735_v28 = vsub.f32 %v5123_v44, %v1717_v25 }
 0x7e2   : > { %v1714_v26 = vpop.xlane.xlu1 %1713  ;;  %v1745_v41 = vmul.f32 1.442695, %v1735_v28 }
 0x7e3   : > { %v1734_v31 = vsub.f32 %v5131_v14, %v1714_v26  ;;  %v1711_v32 = vpop.xlane.xlu0 %1710 }
 0x7e4   : > { %v1733_v34 = vsub.f32 %v5125_v50, %v1711_v32 }
 0x7e5   : > { %v1743_v35 = vmul.f32 1.442695, %v1734_v31 }
 0x7e6   : > { %v1741_v37 = vmul.f32 1.442695, %v1733_v34 }
 0x7e7   : > { %4352 = vpow2.f32 %v1743_v35  ;;  %v1720_v42 = vpop.xlane.xlu0 %1719 }
 0x7e8   : > { %4354 = vpow2.f32 %v1741_v37  ;;  %v1736_v48 = vsub.f32 %v5129_v56, %v1720_v42 }
 0x7e9   : > { %v1732_v57 = vpop.xlane.xlu1 %1731  ;;  %4356 = vpow2.f32 %v1745_v41 }
 0x7ea   : > { %v1747_v53 = vmul.f32 1.442695, %v1736_v48  ;;  %v1740_v58 = vsub.f32 %v5143_v29, %v1732_v57 }
 0x7eb   : > { %v1729_v59 = vpop.xlane.xlu0 %1728 }
 0x7ec   : > { %4358 = vpow2.f32 %v1747_v53  ;;  %v1755_v44 = vmul.f32 1.442695, %v1740_v58  ;;  %v1739_v14 = vsub.f32 %v5137_v60, %v1729_v59 }
 0x7ed   : > { %v1726_v24 = vpop.xlane.xlu1 %1725 }
 0x7ee   : > { %v1753_v50 = vmul.f32 1.442695, %v1739_v14  ;;  %v1738_v1 = vsub.f32 %v5145_v39, %v1726_v24  ;;  %4360 = vpow2.f32 %v1755_v44 }
 0x7ef   : > { %v1723_v2 = vpop.xlane.xlu0 %1722 }
 0x7f0   : > { %4362 = vpow2.f32 %v1753_v50  ;;  %v1751_v33 = vmul.f32 1.442695, %v1738_v1  ;;  %v1737_v56 = vsub.f32 %v5139_v61, %v1723_v2 }
 0x7f1   : > { %v5209_v3 = vpop.eup %4352 }
 0x7f2   : > { %v5211_v6 = vpop.eup %4354  ;;  %v1749_v29 = vmul.f32 1.442695, %v1737_v56  ;;  %4364 = vpow2.f32 %v1751_v33 }
 0x7f3   : > { %v1789_v8 = vpack.c.bf16 %v5209_v3, %v5211_v6  ;;  %v5215_v60 = vpop.eup %4356 }
 0x7f4   : > { %4366 = vpow2.f32 %v1749_v29 }
 0x7f5   : > { %4004 = vmatprep.mubr.msk.bf16.mxu1 %vm1708_vm5, %v1789_v8 }
 0x7f6   : > { %v5218_v39 = vpop.eup %4358 }
 0x7f7   : > { %v1790_v46 = vpack.c.bf16 %v5218_v39, %v5215_v60 }
 0x7f8   : > { %v5222_v61 = vpop.eup %4360 }
 0x7f9   : > { %4005 = vmatmul.mubr.msk.bf16.vlgmr.msra.gmra.mrb[32].mxu1 %vm1708_vm5, %v1790_v46 }
 0x7fa   : > { %v5225_v55 = vpop.eup %4362  ;;  %4029 = vmatpush3.bf16.msra.mxu1 %v5114_v43 }
 0x7fb   : > { %4030 = vmatprep.subr.bf16.mxu1 %v2086_v21  ;;  %v1792_v12 = vpack.c.bf16 %v5222_v61, %v5225_v55 }
 0x7fc   : > { %v5230_v18 = vpop.eup %4364 }
 0x7fe   : > { %v5232_v20 = vpop.eup %4366  ;;  %4031 = vmatpush3.bf16.msra.mxu1 %v2086_v21 }
 0x7ff   : > { %4032 = vmatprep.subr.bf16.mxu1 %v2088_v22  ;;  %v2007_v27 = vpop.xlane.xlu0 %2006  ;;  %v1791_v25 = vpack.c.bf16 %v5230_v18, %v5232_v20 }
 0x800   : > { %v2025_v26 = vsub.f32 %v5155_v4, %v2007_v27  ;;  %v2001_v28 = vpop.xlane.xlu1 %2000 }
 0x801   : > { %v2023_v31 = vsub.f32 %v5157_v5, %v2001_v28  ;;  %4008 = vmatprep.mubr.msk.bf16.mxu1 %vm1708_vm5, %v1791_v25 }
 0x802   : > { %v2035_v43 = vmul.f32 1.442695, %v2025_v26  ;;  %4033 = vmatpush3.bf16.msra.mxu1 %v2088_v22 }
 0x803   : > { %v2031_v32 = vmul.f32 1.442695, %v2023_v31  ;;  %4009 = vmatmul.mubr.msk.bf16.gmra.mrb[36].mxu1 %vm1708_vm5, %v1792_v12  ;;  %4034 = vmatprep.subr.bf16.mxu1 %v5199_v23  ;;  %v2004_v21 = vpop.xlane.xlu0 %2003 }
 0x804   : > { %v2024_v34 = vsub.f32 %v5165_v45, %v2004_v21  ;;  %v2010_v35 = vpop.xlane.xlu1 %2009  ;;  %4368 = vpow2.f32 %v2035_v43 }
 0x805   : > { %v2026_v37 = vsub.f32 %v5161_v7, %v2010_v35  ;;  %4370 = vpow2.f32 %v2031_v32 }
 0x806   : > { %v2033_v4 = vmul.f32 1.442695, %v2024_v34  ;;  %4035 = vmatpush3.bf16.msra.mxu1 %v5199_v23 }
 0x807   : > { %v2037_v5 = vmul.f32 1.442695, %v2026_v37  ;;  %v2019_v41 = vpop.xlane.xlu0 %2018 }
 0x808   : > { %4372 = vpow2.f32 %v2033_v4  ;;  %v2029_v22 = vsub.f32 %v5171_v10, %v2019_v41  ;;  %v2191_v24 = vpop.permute.xlu1 %2190 }
 0x809   : > { %4374 = vpow2.f32 %v2037_v5  ;;  %v2212_v56 = vsel %vm1618_vm4, %v2191_v24, 0 }
 0x80a   : > { %v2043_v48 = vmul.f32 1.442695, %v2029_v22 }
 0x80b   : > { %v2013_v42 = vpop.xlane.xlu0 %2012 }
 0x80c   : > { %4376 = vpow2.f32 %v2043_v48  ;;  %v2193_v29 = vpop.permute.xlu1 %2192  ;;  %v2027_v27 = vsub.f32 %v5173_v63, %v2013_v42 }
 0x80d   : > { %v2215_v12 = vsel %vm1618_vm4, %v2193_v29, 0 }
 0x80e   : > { %v5245_v53 = vpop.eup %4368  ;;  %v2039_v25 = vmul.f32 1.442695, %v2027_v27 }
 0x80f   : > { %v2022_v57 = vpop.xlane.xlu0 %2021  ;;  %v5248_v58 = vpop.eup %4370 }
 0x810   : > { %v2030_v45 = vsub.f32 %v5177_v13, %v2022_v57 }
 0x812   : > { %v5250_v7 = vpop.eup %4372  ;;  %v2045_v59 = vmul.f32 1.442695, %v2030_v45 }
 0x813   : > { %v5252_v23 = vpop.eup %4374  ;;  %v2189_v44 = vpop.permute.xlu0 %2188  ;;  %v2079_v14 = vpack.c.bf16 %v5250_v7, %v5248_v58 }
 0x814   : > { %v2080_v10 = vpack.c.bf16 %v5252_v23, %v5245_v53  ;;  %4378 = vpow2.f32 %v2045_v59  ;;  %4175 = vmatprep.subr.msk.bf16.mxu1 %vm1618_vm4, %v2189_v44  ;;  %v2209_v13 = vsel %vm1618_vm4, %v2189_v44, 0 }
 0x815   : > { %4036 = vmatprep.mubr.msk.bf16.mxu1 %vm1708_vm5, %v2079_v14  ;;  %4380 = vpow2.f32 %v2039_v25 }
 0x816   : > { %4037 = vmatmul.mubr.msk.bf16.vlgmr.msra.gmra.mrb[40].mxu1 %vm1708_vm5, %v2080_v10  ;;  %v5263_v2 = vpop.eup %4376 }
 0x817   : > { %4045 = vmatpush3.bf16.xpose.msra.mxu1 %v2209_v13  ;;  %v2181_v50 = vpop.permute.xlu0 %2180 }
 0x818   : > { %4176 = vmatprep.subr.msk.bf16.mxu1 %vm1618_vm4, %v2191_v24 }
 0x81b   : > { %v2185_v1 = vpop.permute.xlu0 %2184 }
 0x81e   : > { %v5265_v33 = vpop.eup %4378 }
 0x81f   : > { %4047 = vmatpush3.bf16.xpose.msra.mxu1 %v2212_v56  ;;  %v2370_v8 = vpop.permute.xlu0 %2369  ;;  %v2082_v46 = vpack.c.bf16 %v5265_v33, %v5263_v2  ;;  %v5276_v35 = vpop.eup %4380 }
 0x820   : > { %4177 = vmatprep.subr.msk.bf16.mxu1 %vm1618_vm4, %v2193_v29  ;;  %4060 = vmatprep.subr.bf16.mxu0 %v2370_v8 }
 0x821   : > { %4061 = vmatpush3.bf16.msra.mxu0 %v2370_v8 }
 0x827   : > { %4049 = vmatpush3.bf16.xpose.msra.mxu1 %v2215_v12 }
 0x83d   : > { %v2016_v26 = vpop.xlane.xlu1 %2015 }
 0x83e   : > { %v2028_v28 = vsub.f32 %v5179_v16, %v2016_v26 }
 0x840   : > { %v2041_v31 = vmul.f32 1.442695, %v2028_v28 }
 0x841   : > { %v2195_v43 = vpop.permute.xlu1 %2194 }
 0x842   : > { %4382 = vpow2.f32 %v2041_v31  ;;  %4178 = vmatprep.subr.msk.bf16.mxu1 %vm1618_vm4, %v2195_v43  ;;  %v2218_v32 = vsel %vm1618_vm4, %v2195_v43, 0 }
 0x843   : > { %4051 = vmatpush3.bf16.xpose.msra.mxu1 %v2218_v32 }
 0x845   : > { %v2183_v21 = vpop.permute.xlu1 %2182 }
 0x849   : > { %v2187_v34 = vpop.permute.xlu1 %2186 }
 0x84c   : > { %v5278_v37 = vpop.eup %4382 }
 0x84d   : > { %v2372_v63 = vpop.permute.xlu1 %2371  ;;  %v2081_v4 = vpack.c.bf16 %v5278_v37, %v5276_v35 }
 0x84e   : > { %4062 = vmatprep.subr.bf16.mxu0 %v2372_v63 }
 0x84f   : > { %4040 = vmatprep.mubr.msk.bf16.mxu1 %vm1708_vm5, %v2081_v4  ;;  %4063 = vmatpush3.bf16.msra.mxu0 %v2372_v63 }
 0x850   : > { %4041 = vmatmul.mubr.msk.bf16.gmra.mrb[44].mxu1 %vm1708_vm5, %v2082_v46 }
 0x851   : > { %v2374_v16 = vpop.permute.xlu1 %2373  ;;  %4052 = vmatprep.mubr.msk.bf16.mxu1 %vm1618_vm4, %v2181_v50 }
 0x852   : > { %4064 = vmatprep.subr.bf16.mxu0 %v2374_v16 }
 0x853   : > { %4065 = vmatpush3.bf16.msra.mxu0 %v2374_v16 }
 0x855   : > { %v2376_v5 = vpop.permute.xlu1 %2375 }
 0x856   : > { %4066 = vmatprep.subr.bf16.mxu0 %v2376_v5 }
 0x857   : > { %4067 = vmatpush3.bf16.msra.mxu0 %v2376_v5 }
 0x858   : > { %4053 = vmatmul.mubr.msk.bf16.vlgmr.msra.gmra.mrb[48].mxu1 %vm1618_vm4, %v2183_v21 }
 0x859   : > { %4056 = vmatprep.mubr.msk.bf16.mxu1 %vm1618_vm4, %v2185_v1 }
 0x860   : > { %4057 = vmatmul.mubr.msk.bf16.gmra.mrb[52].mxu1 %vm1618_vm4, %v2187_v34 }
 0x8cc   : > { %v5288_v41 = vpop.f32.mrb[32].mxu1 }
 0x8cd   : > { %v5290_v22 = vpop.f32.mrb[33].mxu1 }
 0x8ce   : > { %v5292_v42 = vpop.f32.mrb[34].mxu1 }
 0x8cf   : > { %v5294_v48 = vpop.f32.mrb[35].mxu1 }
 0x8d6   : > { %v5296_v57 = vpop.f32.mrb[36].mxu1 }
 0x8d7   : > { %v5298_v45 = vpop.f32.mrb[37].mxu1 }
 0x8d8   : > { %v5300_v59 = vpop.f32.mrb[38].mxu1 }
 0x8d9   : > { %v5302_v44 = vpop.f32.mrb[39].mxu1 }
 0x8e9   : > { %v5304_v14 = vpop.f32.mrb[40].mxu1 }
 0x8ea   : > { %v5306_v10 = vpop.f32.mrb[41].mxu1 }
 0x8eb   : > { %v5308_v13 = vpop.f32.mrb[42].mxu1 }
 0x8ec   : > { %v5310_v24 = vpop.f32.mrb[43].mxu1 }
 0x923   : > { %v5312_v50 = vpop.f32.mrb[44].mxu1 }
 0x924   : > { %v5314_v1 = vpop.f32.mrb[45].mxu1 }
 0x925   : > { %v5316_v56 = vpop.f32.mrb[46].mxu1 }
 0x926   : > { %v5318_v29 = vpop.f32.mrb[47].mxu1 }
 0x92b   : > { %v4054_v8 = vpop.f32.mrb[48].mxu1 }
 0x92c   : > { %v2254_v46 = vpop.f32.mrb[49].mxu1  ;;  %v2291_v12 = vsel %vm1708_vm5, %v4054_v8, -inf }
 0x92d   : > { %2292 = vmax.xlane.f32.xlu0 %v2291_v12  ;;  %v4055_v27 = vpop.f32.mrb[50].mxu1  ;;  %v2285_v28 = vsel %vm1708_vm5, %v2254_v46, -inf }
 0x92e   : > { %v2257_v25 = vpop.f32.mrb[51].mxu1  ;;  %v2294_v32 = vsel %vm1708_vm5, %v4055_v27, -inf }
 0x92f   : > { %v2288_v26 = vsel %vm1708_vm5, %v2257_v25, -inf }
 0x930   : > { %2289 = vmax.xlane.f32.xlu1 %v2288_v26 }
 0x931   : > { %2286 = vmax.xlane.f32.xlu0 %v2285_v28 }
 0x933   : > { %v4058_v31 = vpop.f32.mrb[52].mxu1 }
 0x934   : > { %v5323_v43 = vpop.f32.mrb[53].mxu1  ;;  %v2303_v63 = vsel %vm1708_vm5, %v4058_v31, -inf }
 0x935   : > { %2295 = vmax.xlane.f32.xlu0 %v2294_v32  ;;  %v4059_v21 = vpop.f32.mrb[54].mxu1  ;;  %v2297_v4 = vsel %vm1708_vm5, %v5323_v43, -inf }
 0x936   : > { %v5326_v34 = vpop.f32.mrb[55].mxu1  ;;  %v2306_v16 = vsel %vm1708_vm5, %v4059_v21, -inf }
 0x937   : > { %v2300_v5 = vsel %vm1708_vm5, %v5326_v34, -inf }
 0x939   : > { %2304 = vmax.xlane.f32.xlu0 %v2303_v63 }
 0x93d   : > { %2298 = vmax.xlane.f32.xlu0 %v2297_v4 }
 0x941   : > { %2476 = vrot.lane.b32.xlu1 %v5056_v62, %s4585_s1  ;;  %2307 = vmax.xlane.f32.xlu0 %v2306_v16 }
 0x945   : > { %2478 = vrot.lane.b32.xlu1 %v5071_v30, %s4585_s1 }
 0x957   : > { %2474 = vrot.lane.b32.xlu0 %v5058_v38, %s4585_s1 }
 0x95b   : > { %2466 = vrot.lane.b32.xlu0 %v5063_v36, %s4586_s27 }
 0x95f   : > { %2470 = vrot.lane.b32.xlu0 %v5075_v54, %s4586_s27 }
 0x969   : > { %2301 = vmax.xlane.f32.xlu1 %v2300_v5 }
 0x97a   : > { %2480 = vrot.lane.b32.xlu1 %v5069_v9, %s4585_s1  ;;  %s4590_s1 = smov 24  }
 0x97e   : > { %2468 = vrot.lane.b32.xlu1 %v5060_v0, %s4586_s27 }
 0x982   : > { %2472 = vrot.lane.b32.xlu1 %v5073_v51, %s4586_s27 }
 0x9ba   : > { %v2293_v12 = vpop.xlane.xlu0 %2292 }
 0x9bb   : > { %v2311_v28 = vsub.f32 %v4054_v8, %v2293_v12 }
 0x9bd   : > { %v2290_v26 = vpop.xlane.xlu1 %2289  ;;  %v2321_v52 = vmul.f32 1.442695, %v2311_v28 }
 0x9be   : > { %v2310_v32 = vsub.f32 %v2257_v25, %v2290_v26  ;;  %v2287_v63 = vpop.xlane.xlu0 %2286 }
 0x9bf   : > { %v2309_v4 = vsub.f32 %v2254_v46, %v2287_v63 }
 0x9c0   : > { %v2319_v16 = vmul.f32 1.442695, %v2310_v32 }
 0x9c1   : > { %v2317_v36 = vmul.f32 1.442695, %v2309_v4 }
 0x9c2   : > { %4384 = vpow2.f32 %v2319_v16  ;;  %v2296_v54 = vpop.xlane.xlu0 %2295 }
 0x9c3   : > { %4386 = vpow2.f32 %v2317_v36  ;;  %v2312_v47 = vsub.f32 %v4055_v27, %v2296_v54 }
 0x9c4   : > { %4388 = vpow2.f32 %v2321_v52 }
 0x9c5   : > { %v2323_v5 = vmul.f32 1.442695, %v2312_v47 }
 0x9c6   : > { %v2305_v49 = vpop.xlane.xlu0 %2304 }
 0x9c7   : > { %4390 = vpow2.f32 %v2323_v5  ;;  %v2315_v0 = vsub.f32 %v4058_v31, %v2305_v49 }
 0x9c9   : > { %v2329_v8 = vmul.f32 1.442695, %v2315_v0 }
 0x9ca   : > { %v2299_v40 = vpop.xlane.xlu0 %2298 }
 0x9cb   : > { %4392 = vpow2.f32 %v2329_v8  ;;  %v2313_v54 = vsub.f32 %v5323_v43, %v2299_v40 }
 0x9cc   : > { %v5342_v51 = vpop.eup %4384 }
 0x9cd   : > { %v5344_v17 = vpop.eup %4386  ;;  %v2325_v5 = vmul.f32 1.442695, %v2313_v54 }
 0x9ce   : > { %v2308_v25 = vpop.xlane.xlu0 %2307  ;;  %v2365_v46 = vpack.c.bf16 %v5342_v51, %v5344_v17  ;;  %v5348_v26 = vpop.eup %4388 }
 0x9cf   : > { %v2316_v12 = vsub.f32 %v4059_v21, %v2308_v25  ;;  %v2477_v21 = vpop.permute.xlu1 %2476 }
 0x9d0   : > { %4068 = vmatprep.mubr.msk.bf16.mxu0 %vm1708_vm5, %v2365_v46  ;;  %v2498_v32 = vsel %vm1618_vm4, %v2477_v21, 0 }
 0x9d1   : > { %v5351_v47 = vpop.eup %4390  ;;  %v2331_v52 = vmul.f32 1.442695, %v2316_v12 }
 0x9d2   : > { %v2366_v49 = vpack.c.bf16 %v5351_v47, %v5348_v26  ;;  %v2475_v27 = vpop.permute.xlu0 %2474 }
 0x9d3   : > { %4394 = vpow2.f32 %v2331_v52  ;;  %v2495_v31 = vsel %vm1618_vm4, %v2475_v27, 0  ;;  %4179 = vmatprep.subr.msk.bf16.mxu0 %vm1618_vm4, %v2475_v27  ;;  %v2479_v4 = vpop.permute.xlu1 %2478 }
 0x9d4   : > { %4069 = vmatmul.mubr.msk.bf16.vlgmr.msra.gmra.mrb[32].mxu0 %vm1708_vm5, %v2366_v49  ;;  %v2501_v36 = vsel %vm1618_vm4, %v2479_v4, 0  ;;  %4396 = vpow2.f32 %v2325_v5 }
 0x9d5   : > { %4077 = vmatpush3.bf16.xpose.msra.mxu0 %v2495_v31  ;;  %v5359_v28 = vpop.eup %4392 }
 0x9d6   : > { %4180 = vmatprep.subr.msk.bf16.mxu0 %vm1618_vm4, %v2477_v21  ;;  %v2467_v43 = vpop.permute.xlu0 %2466 }
 0x9da   : > { %v2471_v27 = vpop.permute.xlu0 %2470 }
 0x9dd   : > { %v5362_v63 = vpop.eup %4394  ;;  %4079 = vmatpush3.bf16.xpose.msra.mxu0 %v2498_v32 }
 0x9de   : > { %4181 = vmatprep.subr.msk.bf16.mxu0 %vm1618_vm4, %v2479_v4  ;;  %v2368_v16 = vpack.c.bf16 %v5362_v63, %v5359_v28  ;;  %v5372_v52 = vpop.eup %4396 }
 0x9e5   : > { %4081 = vmatpush3.bf16.xpose.msra.mxu0 %v2501_v36 }
 0x9f6   : > { %v2302_v0 = vpop.xlane.xlu1 %2301 }
 0x9f7   : > { %v2314_v8 = vsub.f32 %v5326_v34, %v2302_v0 }
 0x9f9   : > { %v2327_v25 = vmul.f32 1.442695, %v2314_v8 }
 0x9fa   : > { %v2481_v46 = vpop.permute.xlu1 %2480 }
 0x9fb   : > { %4398 = vpow2.f32 %v2327_v25  ;;  %v2504_v12 = vsel %vm1618_vm4, %v2481_v46, 0  ;;  %4182 = vmatprep.subr.msk.bf16.mxu0 %vm1618_vm4, %v2481_v46 }
 0x9fc   : > { %4083 = vmatpush3.bf16.xpose.msra.mxu0 %v2504_v12 }
 0x9fe   : > { %v2469_v34 = vpop.permute.xlu1 %2468 }
 0xa02   : > { %v2473_v31 = vpop.permute.xlu1 %2472 }
 0xa05   : > { %v5374_v49 = vpop.eup %4398 }
 0xa06   : > { %v2367_v40 = vpack.c.bf16 %v5374_v49, %v5372_v52 }
 0xa08   : > { %4072 = vmatprep.mubr.msk.bf16.mxu0 %vm1708_vm5, %v2367_v40 }
 0xa09   : > { %4073 = vmatmul.mubr.msk.bf16.gmra.mrb[36].mxu0 %vm1708_vm5, %v2368_v16 }
 0xa0a   : > { %4084 = vmatprep.mubr.msk.bf16.mxu0 %vm1618_vm4, %v2467_v43 }
 0xa11   : > { %4085 = vmatmul.mubr.msk.bf16.vlgmr.msra.gmra.mrb[40].mxu0 %vm1618_vm4, %v2469_v34 }
 0xa12   : > { %4088 = vmatprep.mubr.msk.bf16.mxu0 %vm1618_vm4, %v2471_v27 }
 0xa19   : > { %4089 = vmatmul.mubr.msk.bf16.gmra.mrb[44].mxu0 %vm1618_vm4, %v2473_v31 }
 0xaa7   : > { %v5384_v21 = vpop.f32.mrb[32].mxu0 }
 0xaa8   : > { %v5386_v32 = vpop.f32.mrb[33].mxu0 }
 0xaa9   : > { %v5388_v4 = vpop.f32.mrb[34].mxu0 }
 0xaaa   : > { %v5390_v36 = vpop.f32.mrb[35].mxu0 }
 0xadc   : > { %v5392_v16 = vpop.f32.mrb[36].mxu0 }
 0xadd   : > { %v5394_v54 = vpop.f32.mrb[37].mxu0 }
 0xade   : > { %v5396_v5 = vpop.f32.mrb[38].mxu0 }
 0xadf   : > { %v5398_v0 = vpop.f32.mrb[39].mxu0 }
 0xae4   : > { %v4086_v8 = vpop.f32.mrb[40].mxu0 }
 0xae5   : > { %v5400_v25 = vpop.f32.mrb[41].mxu0  ;;  %v2577_v46 = vsel %vm1708_vm5, %v4086_v8, -inf }
 0xae6   : > { %2578 = vmax.xlane.f32.xlu0 %v2577_v46  ;;  %v5403_v12 = vpop.f32.mrb[42].mxu0  ;;  %v2571_v34 = vsel %vm1708_vm5, %v5400_v25, -inf }
 0xae7   : > { %v2543_v40 = vpop.f32.mrb[43].mxu0  ;;  %v2580_v19 = vsel %vm1708_vm5, %v5403_v12, -inf }
 0xae8   : > { %v2574_v43 = vsel %vm1708_vm5, %v2543_v40, -inf }
 0xae9   : > { %2575 = vmax.xlane.f32.xlu1 %v2574_v43 }
 0xaea   : > { %2572 = vmax.xlane.f32.xlu0 %v2571_v34 }
 0xaec   : > { %v5408_v27 = vpop.f32.mrb[44].mxu0 }
 0xaed   : > { %v5410_v31 = vpop.f32.mrb[45].mxu0  ;;  %v2589_v15 = vsel %vm1708_vm5, %v5408_v27, -inf }
 0xaee   : > { %2581 = vmax.xlane.f32.xlu0 %v2580_v19  ;;  %v5414_v11 = vpop.f32.mrb[46].mxu0  ;;  %v2583_v43 = vsel %vm1708_vm5, %v5410_v31, -inf }
 0xaef   : > { %v5416_v46 = vpop.f32.mrb[47].mxu0  ;;  %v2592_v19 = vsel %vm1708_vm5, %v5414_v11, -inf }
 0xaf0   : > { %v2586_v34 = vsel %vm1708_vm5, %v5416_v46, -inf }
 0xaf2   : > { %2590 = vmax.xlane.f32.xlu0 %v2589_v15  ;;  %v2047_v15 = vsel %vm1708_vm5, %v5248_v58, 0.0  ;;  %v2059_v58 = vsel %vm1708_vm5, %v5276_v35, 0.0  ;;  %v2342_v35 = vsel %vm1708_vm5, %v5351_v47, 0.0 }
 0xaf6   : > { %2584 = vmax.xlane.f32.xlu0 %v2583_v43  ;;  %v2053_v43 = vsel %vm1708_vm5, %v5245_v53, 0.0  ;;  %v2065_v53 = vsel %vm1708_vm5, %v5263_v2, 0.0  ;;  %v2062_v2 = vsel %vm1708_vm5, %v5278_v37, 0.0 }
 0xafa   : > { %2657 = vrot.lane.b32.xlu1 %v5056_v62, %s4587_s0  ;;  %v2056_v62 = vsel %vm1708_vm5, %v5252_v23, 0.0  ;;  %v2345_v23 = vsel %vm1708_vm5, %v5372_v52, 0.0 }
 0xafe   : > { %2659 = vrot.lane.b32.xlu1 %v5071_v30, %s4587_s0  ;;  %v2339_v30 = vsel %vm1708_vm5, %v5348_v26, 0.0  ;;  %v2068_v26 = vsel %vm1708_vm5, %v5265_v33, 0.0 }
 0xb0c   : > { %2655 = vrot.lane.b32.xlu0 %v5058_v38, %s4587_s0  ;;  %v2333_v38 = vsel %vm1708_vm5, %v5344_v17, 0.0  ;;  %v2050_v17 = vsel %vm1708_vm5, %v5250_v7, 0.0  ;;  %v2348_v7 = vsel %vm1708_vm5, %v5374_v49, 0.0 }
 0xb22   : > { %2593 = vmax.xlane.f32.xlu1 %v2592_v19 }
 0xb26   : > { %2587 = vmax.xlane.f32.xlu1 %v2586_v34 }
 0xb2b   : > { %2048 = vadd.xlane.f32.xlu0 %v2047_v15 }
 0xb2f   : > { %2054 = vadd.xlane.f32.xlu0 %v2053_v43 }
 0xb33   : > { %2057 = vadd.xlane.f32.xlu0 %v2056_v62 }
 0xb37   : > { %2334 = vadd.xlane.f32.xlu0 %v2333_v38  ;;  %2661 = vrot.lane.b32.xlu1 %v5069_v9, %s4587_s0  ;;  %v2336_v9 = vsel %vm1708_vm5, %v5342_v51, 0.0 }
 0xb3b   : > { %2340 = vadd.xlane.f32.xlu0 %v2339_v30 }
 0xb3f   : > { %2060 = vadd.xlane.f32.xlu0 %v2059_v58 }
 0xb43   : > { %2066 = vadd.xlane.f32.xlu0 %v2065_v53 }
 0xb47   : > { %2346 = vadd.xlane.f32.xlu0 %v2345_v23 }
 0xb5b   : > { %2051 = vadd.xlane.f32.xlu1 %v2050_v17 }
 0xb5f   : > { %2337 = vadd.xlane.f32.xlu1 %v2336_v9 }
 0xb63   : > { %2343 = vadd.xlane.f32.xlu1 %v2342_v35 }
 0xb67   : > { %2063 = vadd.xlane.f32.xlu1 %v2062_v2 }
 0xb6b   : > { %2069 = vadd.xlane.f32.xlu1 %v2068_v26 }
 0xb6f   : > { %2349 = vadd.xlane.f32.xlu1 %v2348_v7 }
 0xb73   : > { %v2579_v52 = vpop.xlane.xlu0 %2578 }
 0xb74   : > { %v2597_v19 = vsub.f32 %v4086_v8, %v2579_v52  ;;  %v2351_v52 = vsel %vm1708_vm5, %v5359_v28, 0.0 }
 0xb76   : > { %v2607_v51 = vmul.f32 1.442695, %v2597_v19  ;;  %v2576_v34 = vpop.xlane.xlu1 %2575 }
 0xb77   : > { %v2596_v15 = vsub.f32 %v2543_v40, %v2576_v34  ;;  %v2573_v43 = vpop.xlane.xlu0 %2572 }
 0xb78   : > { %4400 = vpow2.f32 %v2607_v51  ;;  %v2595_v47 = vsub.f32 %v5400_v25, %v2573_v43  ;;  %v2354_v43 = vsel %vm1708_vm5, %v5362_v63, 0.0  ;;  %v1775_v63 = vsel %vm1708_vm5, %v5225_v55, 0.0 }
 0xb79   : > { %v2605_v62 = vmul.f32 1.442695, %v2596_v15 }
 0xb7a   : > { %v2603_v37 = vmul.f32 1.442695, %v2595_v47  ;;  %v2658_v2 = vpop.permute.xlu1 %2657 }
 0xb7b   : > { %4402 = vpow2.f32 %v2605_v62  ;;  %v2582_v38 = vpop.xlane.xlu0 %2581 }
 0xb7c   : > { %4404 = vpow2.f32 %v2603_v37  ;;  %v2598_v33 = vsub.f32 %v5403_v12, %v2582_v38  ;;  %v1757_v37 = vsel %vm1708_vm5, %v5211_v6, 0.0  ;;  %v1763_v38 = vsel %vm1708_vm5, %v5215_v60, 0.0 }
 0xb7e   : > { %v2609_v30 = vmul.f32 1.442695, %v2598_v33  ;;  %v2660_v51 = vpop.permute.xlu1 %2659  ;;  %v1769_v33 = vsel %vm1708_vm5, %v5232_v20, 0.0 }
 0xb7f   : > { %v2591_v58 = vpop.xlane.xlu0 %2590 }
 0xb80   : > { %4406 = vpow2.f32 %v2609_v30  ;;  %v2601_v8 = vsub.f32 %v5408_v27, %v2591_v58 }
 0xb82   : > { %v4401_v49 = vpop.eup %4400  ;;  %v2615_v9 = vmul.f32 1.442695, %v2601_v8 }
 0xb83   : > { %v2585_v53 = vpop.xlane.xlu0 %2584  ;;  %v2625_v40 = vsel %vm1708_vm5, %v4401_v49, 0.0 }
 0xb84   : > { %v2599_v23 = vsub.f32 %v5410_v31, %v2585_v53  ;;  %2626 = vadd.xlane.f32.xlu0 %v2625_v40 }
 0xb85   : > { %v4403_v25 = vpop.eup %4402 }
 0xb86   : > { %v4405_v17 = vpop.eup %4404  ;;  %v2611_v35 = vmul.f32 1.442695, %v2599_v23  ;;  %v2622_v34 = vsel %vm1708_vm5, %v4403_v25, 0.0 }
 0xb87   : > { %v2656_v26 = vpop.permute.xlu0 %2655  ;;  %v2619_v12 = vsel %vm1708_vm5, %v4405_v17, 0.0  ;;  %v2651_v7 = vpack.c.bf16 %v4403_v25, %v4405_v17 }
 0xb88   : > { %4408 = vpow2.f32 %v2611_v35  ;;  %2620 = vadd.xlane.f32.xlu0 %v2619_v12  ;;  %4092 = vmatprep.subr.bf16.mxu1 %v2656_v26 }
 0xb89   : > { %4093 = vmatpush3.bf16.msra.mxu1 %v2656_v26  ;;  %4100 = vmatprep.mubr.msk.bf16.mxu1 %vm1708_vm5, %v2651_v7  ;;  %4410 = vpow2.f32 %v2615_v9  ;;  %v1760_v26 = vsel %vm1708_vm5, %v5209_v3, 0.0 }
 0xb8a   : > { %v4407_v27 = vpop.eup %4406  ;;  %4094 = vmatprep.subr.bf16.mxu1 %v2658_v2 }
 0xb8b   : > { %v2652_v31 = vpack.c.bf16 %v4407_v27, %v4401_v49  ;;  %v2628_v19 = vsel %vm1708_vm5, %v4407_v27, 0.0 }
 0xb8c   : > { %2352 = vadd.xlane.f32.xlu0 %v2351_v52  ;;  %2629 = vadd.xlane.f32.xlu1 %v2628_v19  ;;  %v1772_v52 = vsel %vm1708_vm5, %v5230_v18, 0.0  ;;  %v1778_v19 = vsel %vm1708_vm5, %v5222_v61, 0.0 }
 0xb8d   : > { %4095 = vmatpush3.bf16.msra.mxu1 %v2658_v2 }
 0xb8e   : > { %4096 = vmatprep.subr.bf16.mxu1 %v2660_v51 }
 0xb90   : > { %2623 = vadd.xlane.f32.xlu1 %v2622_v34 }
 0xb91   : > { %4097 = vmatpush3.bf16.msra.mxu1 %v2660_v51 }
 0xb92   : > { %v4409_v15 = vpop.eup %4408 }
 0xb93   : > { %v2631_v47 = vsel %vm1708_vm5, %v4409_v15, 0.0  ;;  %v4411_v62 = vpop.eup %4410 }
 0xb94   : > { %2355 = vadd.xlane.f32.xlu1 %v2354_v43  ;;  %2632 = vadd.xlane.f32.xlu0 %v2631_v47  ;;  %v2637_v28 = vsel %vm1708_vm5, %v4411_v62, 0.0 }
 0xb98   : > { %2638 = vadd.xlane.f32.xlu0 %v2637_v28 }
 0xb9c   : > { %1758 = vadd.xlane.f32.xlu0 %v1757_v37 }
 0xba0   : > { %1764 = vadd.xlane.f32.xlu0 %v1763_v38 }
 0xba4   : > { %1770 = vadd.xlane.f32.xlu0 %v1769_v33 }
 0xba8   : > { %1776 = vadd.xlane.f32.xlu0 %v1775_v63 }
 0xbaf   : > { %v2594_v30 = vpop.xlane.xlu1 %2593 }
 0xbb0   : > { %v2602_v58 = vsub.f32 %v5414_v11, %v2594_v30 }
 0xbb2   : > { %v2617_v49 = vmul.f32 1.442695, %v2602_v58 }
 0xbb3   : > { %v2588_v8 = vpop.xlane.xlu1 %2587 }
 0xbb4   : > { %4412 = vpow2.f32 %v2617_v49  ;;  %v2600_v6 = vsub.f32 %v5416_v46, %v2588_v8 }
 0xbb6   : > { %v2613_v53 = vmul.f32 1.442695, %v2600_v6 }
 0xbb7   : > { %v2662_v40 = vpop.permute.xlu1 %2661 }
 0xbb8   : > { %4414 = vpow2.f32 %v2613_v53  ;;  %4098 = vmatprep.subr.bf16.mxu1 %v2662_v40  ;;  %v2049_v60 = vpop.xlane.xlu0 %2048 }
 0xbb9   : > { %4099 = vmatpush3.bf16.msra.mxu1 %v2662_v40 }
 0xbbc   : > { %4101 = vmatmul.mubr.msk.bf16.vlgmr.msra.gmra.mrb[56].mxu1 %vm1708_vm5, %v2652_v31  ;;  %v2055_v20 = vpop.xlane.xlu0 %2054  ;;  %v1766_v31 = vsel %vm1708_vm5, %v5218_v39, 0.0 }
 0xbbd   : > { %4416 = vrcp.f32 %v2055_v20 }
 0xbbe   : > { %v4413_v23 = vpop.eup %4412 }
 0xbbf   : > { %v2654_v55 = vpack.c.bf16 %v4413_v23, %v4411_v62  ;;  %v2640_v46 = vsel %vm1708_vm5, %v4413_v23, 0.0 }
 0xbc0   : > { %v2058_v25 = vpop.xlane.xlu0 %2057 }
 0xbc1   : > { %4418 = vrcp.f32 %v2058_v25 }
 0xbc2   : > { %v4415_v11 = vpop.eup %4414  ;;  %4420 = vrcp.f32 %v2049_v60 }
 0xbc3   : > { %v2634_v17 = vsel %vm1708_vm5, %v4415_v11, 0.0  ;;  %v2653_v9 = vpack.c.bf16 %v4415_v11, %v4409_v15 }
 0xbc4   : > { %2635 = vadd.xlane.f32.xlu1 %v2634_v17  ;;  %v2335_v51 = vpop.xlane.xlu0 %2334 }
 0xbc5   : > { %4104 = vmatprep.mubr.msk.bf16.mxu1 %vm1708_vm5, %v2653_v9 }
 0xbc6   : > { %4105 = vmatmul.mubr.msk.bf16.gmra.mrb[60].mxu1 %vm1708_vm5, %v2654_v55 }
 0xbc7   : > { %v4417_v35 = vpop.eup %4416 }
 0xbc8   : > { %2641 = vadd.xlane.f32.xlu1 %v2640_v46  ;;  %v2174_v12 = vmul.f32 %v4417_v35, %v5304_v14  ;;  %v2341_v3 = vpop.xlane.xlu0 %2340 }
 0xbcb   : > { %v4419_v2 = vpop.eup %4418 }
 0xbcc   : > { %1761 = vadd.xlane.f32.xlu1 %v1760_v26  ;;  %v2175_v7 = vmul.f32 %v4419_v2, %v5308_v13  ;;  %v2061_v14 = vpop.xlane.xlu0 %2060  ;;  %v4421_v18 = vpop.eup %4420 }
 0xbcd   : > { %v2172_v47 = vmul.f32 %v4421_v18, %v5306_v10 }
 0xbce   : > { %v4242_v27 = vpack.i.bf16 %v2175_v7, %v2174_v12 }
 0xbd0   : > { %1767 = vadd.xlane.f32.xlu1 %v1766_v31  ;;  %v2067_v15 = vpop.xlane.xlu0 %2066 }
 0xbd4   : > { %1773 = vadd.xlane.f32.xlu1 %v1772_v52  ;;  %v2347_v33 = vpop.xlane.xlu0 %2346 }
 0xbd8   : > { %1779 = vadd.xlane.f32.xlu1 %v1778_v19 }
 0xbe8   : > { %v2052_v34 = vpop.xlane.xlu1 %2051 }
 0xbe9   : > { %4422 = vrcp.f32 %v2052_v34  ;;  %4243 = vrot.lane.b32.xlu1 %v4242_v27, %s4588_s9 }
 0xbea   : > { %4424 = vrcp.f32 %v2335_v51 }
 0xbec   : > { %v2338_v39 = vpop.xlane.xlu1 %2337 }
 0xbed   : > { %4426 = vrcp.f32 %v2338_v39 }
 0xbee   : > { %4428 = vrcp.f32 %v2341_v3 }
 0xbf0   : > { %v2344_v13 = vpop.xlane.xlu1 %2343 }
 0xbf1   : > { %4430 = vrcp.f32 %v2344_v13 }
 0xbf2   : > { %4432 = vrcp.f32 %v2061_v14 }
 0xbf3   : > { %v4423_v43 = vpop.eup %4422 }
 0xbf4   : > { %v2064_v61 = vpop.xlane.xlu1 %2063  ;;  %v2173_v62 = vmul.f32 %v4423_v43, %v5310_v24  ;;  %v4425_v28 = vpop.eup %4424 }
 0xbf5   : > { %4434 = vrcp.f32 %v2064_v61  ;;  %v2458_v30 = vmul.f32 %v4425_v28, %v5386_v32 }
 0xbf6   : > { %v4237_v37 = vpack.i.bf16 %v2173_v62, %v2172_v47  ;;  %4436 = vrcp.f32 %v2067_v15 }
 0xbf7   : > { %v4427_v38 = vpop.eup %4426 }
 0xbf8   : > { %v2070_v63 = vpop.xlane.xlu1 %2069  ;;  %4238 = vrot.lane.b32.xlu0 %v4237_v37, %s4588_s9  ;;  %v2459_v58 = vmul.f32 %v4427_v38, %v5390_v36  ;;  %v4429_v49 = vpop.eup %4428 }
 0xbf9   : > { %4438 = vrcp.f32 %v2070_v63  ;;  %v2460_v24 = vmul.f32 %v4429_v49, %v5384_v21 }
 0xbfa   : > { %v4247_v8 = vpack.i.bf16 %v2459_v58, %v2458_v30  ;;  %4440 = vrcp.f32 %v2347_v33 }
 0xbfb   : > { %v4431_v6 = vpop.eup %4430 }
 0xbfc   : > { %v2350_v10 = vpop.xlane.xlu1 %2349  ;;  %4248 = vrot.lane.b32.xlu1 %v4247_v8, %s4589_s6  ;;  %v2461_v53 = vmul.f32 %v4431_v6, %v5388_v4  ;;  %v4433_v40 = vpop.eup %4432 }
 0xbfd   : > { %4442 = vrcp.f32 %v2350_v10  ;;  %v2176_v32 = vmul.f32 %v4433_v40, %v5314_v1 }
 0xbfe   : > { %v4252_v60 = vpack.i.bf16 %v2461_v53, %v2460_v24 }
 0xbff   : > { %v4435_v20 = vpop.eup %4434 }
 0xc00   : > { %4253 = vrot.lane.b32.xlu1 %v4252_v60, %s4589_s6  ;;  %v2177_v36 = vmul.f32 %v4435_v20, %v5318_v29  ;;  %v4437_v23 = vpop.eup %4436 }
 0xc01   : > { %v2178_v11 = vmul.f32 %v4437_v23, %v5312_v50  ;;  %v4326_v50 = vld [vmem:[%s5851_s14] sm:$0xff]  }
 0xc02   : > { %v4257_v55 = vpack.i.bf16 %v2177_v36, %v2176_v32  ;;  %4108 = vmatprep.subr.bf16.mxu1 %v4326_v50 }
 0xc03   : > { %v4439_v25 = vpop.eup %4438  ;;  %4109 = vmatpush3.bf16.msra.mxu1 %v4326_v50 }
 0xc04   : > { %4258 = vrot.lane.b32.xlu0 %v4257_v55, %s4588_s9  ;;  %v2179_v21 = vmul.f32 %v4439_v25, %v5316_v56  ;;  %v4441_v4 = vpop.eup %4440  ;;  %v4327_v56 = vld [vmem:[%s5851_s14 + $0x8] sm:$0xff]  }
 0xc05   : > { %v2462_v46 = vmul.f32 %v4441_v4, %v5394_v54  ;;  %4110 = vmatprep.subr.bf16.mxu1 %v4327_v56 }
 0xc06   : > { %v4262_v17 = vpack.i.bf16 %v2179_v21, %v2178_v11 }
 0xc07   : > { %v4443_v9 = vpop.eup %4442  ;;  %4111 = vmatpush3.bf16.msra.mxu1 %v4327_v56 }
 0xc08   : > { %4263 = vrot.lane.b32.xlu1 %v4262_v17, %s4588_s9  ;;  %v2463_v1 = vmul.f32 %v4443_v9, %v5398_v0  ;;  %s5937_s9 = sld [smem:[#allocation31_spill]] }
 0xc0a   : > { %v4277_v35 = vpack.i.bf16 %v2463_v1, %v2462_v46 }
 0xc11   : > { %v2627_v29 = vpop.xlane.xlu0 %2626 }
 0xc15   : > { %v2621_v2 = vpop.xlane.xlu0 %2620 }
 0xc19   : > { %v2630_v26 = vpop.xlane.xlu1 %2629  ;;  %v2353_v12 = vpop.xlane.xlu0 %2352 }
 0xc1a   : > { %4444 = vrcp.f32 %v2353_v12 }
 0xc1d   : > { %v2624_v7 = vpop.xlane.xlu1 %2623 }
 0xc21   : > { %v2356_v27 = vpop.xlane.xlu1 %2355  ;;  %v2633_v51 = vpop.xlane.xlu0 %2632 }
 0xc22   : > { %4446 = vrcp.f32 %v2356_v27 }
 0xc23   : > { %4448 = vrcp.f32 %v2627_v29 }
 0xc24   : > { %v4445_v54 = vpop.eup %4444  ;;  %4450 = vrcp.f32 %v2621_v2 }
 0xc25   : > { %v2464_v31 = vmul.f32 %v4445_v54, %v5392_v16  ;;  %4452 = vrcp.f32 %v2630_v26  ;;  %v2639_v34 = vpop.xlane.xlu0 %2638 }
 0xc26   : > { %4454 = vrcp.f32 %v2624_v7 }
 0xc27   : > { %4456 = vrcp.f32 %v2633_v51 }
 0xc28   : > { %4458 = vrcp.f32 %v2639_v34 }
 0xc29   : > { %v1759_v11 = vpop.xlane.xlu0 %1758 }
 0xc2c   : > { %v4447_v0 = vpop.eup %4446 }
 0xc2d   : > { %v2465_v52 = vmul.f32 %v4447_v0, %v5396_v5  ;;  %v4449_v39 = vpop.eup %4448  ;;  %v1765_v4 = vpop.xlane.xlu0 %1764 }
 0xc2e   : > { %v4451_v18 = vpop.eup %4450 }
 0xc2f   : > { %v4282_v19 = vpack.i.bf16 %v2465_v52, %v2464_v31  ;;  %v4453_v43 = vpop.eup %4452 }
 0xc30   : > { %v4455_v61 = vpop.eup %4454 }
 0xc31   : > { %v4457_v63 = vpop.eup %4456  ;;  %v1771_v9 = vpop.xlane.xlu0 %1770 }
 0xc32   : > { %v4459_v58 = vpop.eup %4458 }
 0xc35   : > { %v1777_v1 = vpop.xlane.xlu0 %1776 }
 0xc51   : > { %v2636_v3 = vpop.xlane.xlu1 %2635 }
 0xc55   : > { %v2642_v14 = vpop.xlane.xlu1 %2641 }
 0xc56   : > { %4460 = vrcp.f32 %v2642_v14 }
 0xc57   : > { %4462 = vrcp.f32 %v2636_v3 }
 0xc59   : > { %v1762_v23 = vpop.xlane.xlu1 %1761 }
 0xc5d   : > { %v1768_v55 = vpop.xlane.xlu1 %1767 }
 0xc5e   : > { %4464 = vrcp.f32 %v1768_v55 }
 0xc5f   : > { %4466 = vrcp.f32 %v1759_v11 }
 0xc60   : > { %v4461_v8 = vpop.eup %4460  ;;  %4468 = vrcp.f32 %v1765_v4 }
 0xc61   : > { %v4463_v10 = vpop.eup %4462  ;;  %v1774_v25 = vpop.xlane.xlu1 %1773  ;;  %4470 = vrcp.f32 %v1762_v23 }
 0xc62   : > { %4472 = vrcp.f32 %v1771_v9 }
 0xc63   : > { %4474 = vrcp.f32 %v1777_v1 }
 0xc64   : > { %4476 = vrcp.f32 %v1774_v25 }
 0xc65   : > { %v1780_v21 = vpop.xlane.xlu1 %1779 }
 0xc66   : > { %4478 = vrcp.f32 %v1780_v21 }
 0xc68   : > { %v4465_v29 = vpop.eup %4464 }
 0xc69   : > { %v4244_v17 = vpop.permute.xlu1 %4243  ;;  %v4467_v26 = vpop.eup %4466  ;;  %v1885_v27 = vmul.f32 %v4465_v29, %v5292_v42 }
 0xc6a   : > { %v4239_v2 = vpop.permute.xlu0 %4238  ;;  %v4469_v12 = vpop.eup %4468  ;;  %v4246_v50 = vunpack.i.h.bf16 %v4244_v17  ;;  %v4245_v56 = vunpack.i.l.bf16 %v4244_v17  ;;  %v1882_v34 = vmul.f32 %v4467_v26, %v5290_v22 }
 0xc6b   : > { %v4471_v7 = vpop.eup %4470  ;;  %v4241_v0 = vunpack.i.h.bf16 %v4239_v2  ;;  %v4240_v31 = vunpack.i.l.bf16 %v4239_v2 }
 0xc6c   : > { %v1883_v14 = vmul.f32 %v4471_v7, %v5294_v48 }
 0xc6e   : > { %v4249_v46 = vpop.permute.xlu1 %4248 }
 0xc76   : > { %v4259_v52 = vpop.permute.xlu0 %4258 }
 0xc8f   : > { %v4102_v13 = vpop.f32.mrb[56].mxu1 }
 0xc90   : > { %v2713_v15 = vpop.f32.mrb[57].mxu1  ;;  %v2746_v5 = vmul.f32 %v4449_v39, %v4102_v13  ;;  %v4251_v39 = vunpack.i.h.bf16 %v4249_v46  ;;  %v4250_v13 = vunpack.i.l.bf16 %v4249_v46 }
 0xc91   : > { %v4103_v16 = vpop.f32.mrb[58].mxu1  ;;  %v2744_v28 = vmul.f32 %v4451_v18, %v2713_v15  ;;  %v2851_v18 = vsel %vm1618_vm4, %v1885_v27, %v4246_v50 }
 0xc92   : > { %v2747_v47 = vmul.f32 %v4453_v43, %v4103_v16  ;;  %v2716_v62 = vpop.f32.mrb[59].mxu1  ;;  %v2849_v43 = vsel %vm1618_vm4, %v1883_v14, %v4241_v0  ;;  %v2848_v16 = vsel %vm1618_vm4, %v1882_v34, %v4240_v31 }
 0xc93   : > { %v2745_v37 = vmul.f32 %v4455_v61, %v2716_v62 }
 0xc94   : > { %v4267_v38 = vpack.i.bf16 %v2747_v47, %v2746_v5 }
 0xc95   : > { %v4272_v33 = vpack.i.bf16 %v2745_v37, %v2744_v28  ;;  %v4473_v28 = vpop.eup %4472  ;;  %v2856_v37 = vsel %vm913_vm0, %v2848_v16, %v4250_v13 }
 0xc96   : > { %4268 = vrot.lane.b32.xlu1 %v4267_v38, %s4590_s1  ;;  %v2857_v38 = vsel %vm913_vm0, %v2849_v43, %v4251_v39  ;;  %v1886_v23 = vmul.f32 %v4473_v28, %v5298_v45 }
 0xc97   : > { %4273 = vrot.lane.b32.xlu0 %v4272_v33, %s4590_s1 }
 0xc99   : > { %v4106_v30 = vpop.f32.mrb[60].mxu1 }
 0xc9a   : > { %v2729_v49 = vpop.f32.mrb[61].mxu1  ;;  %4283 = vrot.lane.b32.xlu1 %v4282_v19, %s4589_s6  ;;  %v2750_v24 = vmul.f32 %v4459_v58, %v4106_v30  ;;  %v1884_v19 = vmul.f32 %v4469_v12, %v5288_v41  ;;  %v4475_v30 = vpop.eup %4474 }
 0xc9b   : > { %v4107_v6 = vpop.f32.mrb[62].mxu1  ;;  %4278 = vrot.lane.b32.xlu0 %v4277_v35, %s4589_s6  ;;  %v2748_v60 = vmul.f32 %v4457_v63, %v2729_v49  ;;  %v4254_v35 = vpop.permute.xlu1 %4253  ;;  %v1888_v4 = vmul.f32 %v4475_v30, %v5296_v57  ;;  %s5795_s6 = scalar_lea.hbm %s5937_s9, %s3814_s5 }
 0xc9c   : > { %v2751_v53 = vmul.f32 %v4461_v8, %v4107_v6  ;;  %v2732_v40 = vpop.f32.mrb[63].mxu1  ;;  %v4256_v51 = vunpack.i.h.bf16 %v4254_v35  ;;  %v4255_v3 = vunpack.i.l.bf16 %v4254_v35  ;;  %v2850_v42 = vsel %vm1618_vm4, %v1884_v19, %v4245_v56  ;;  %v4477_v6 = vpop.eup %4476 }
 0xc9d   : > { %v2749_v20 = vmul.f32 %v4463_v10, %v2732_v40  ;;  %v4261_v40 = vunpack.i.h.bf16 %v4259_v52  ;;  %v1887_v55 = vmul.f32 %v4477_v6, %v5302_v44  ;;  %v5933_v6 = vld [vmem:[#allocation15_spill] sm:$0xff] }
 0xc9e   : > { %v4292_v32 = vpack.i.bf16 %v2751_v53, %v2750_v24  ;;  %v2859_v47 = vsel %vm913_vm0, %v2851_v18, %v4256_v51  ;;  %v2858_v22 = vsel %vm913_vm0, %v2850_v42, %v4255_v3  ;;  %v4479_v53 = vpop.eup %4478  ;;  %v3780_v51 = vld [vmem:[%s5852_s15] ss:$0 sm:$0xff]  ;;  %v5929_v42 = vld [vmem:[#allocation12_spill] sm:$0xff] }
 0xc9f   : > { %v4287_v36 = vpack.i.bf16 %v2749_v20, %v2748_v60  ;;  %v4264_v54 = vpop.permute.xlu1 %4263  ;;  %v4260_v60 = vunpack.i.l.bf16 %v4259_v52  ;;  %v1889_v21 = vmul.f32 %v4479_v53, %v5300_v59  ;;  %v2853_v46 = vsel %vm1618_vm4, %v1887_v55, %v4261_v40  ;;  %v5934_v40 = vld [vmem:[#allocation17_spill] sm:$0xff] }
 0xca0   : > { %4293 = vrot.lane.b32.xlu1 %v4292_v32, %s4590_s1  ;;  %v4266_v32 = vunpack.i.h.bf16 %v4264_v54 }
 0xca1   : > { %4288 = vrot.lane.b32.xlu0 %v4287_v36, %s4590_s1  ;;  %v4265_v36 = vunpack.i.l.bf16 %v4264_v54  ;;  %v2852_v1 = vsel %vm1618_vm4, %v1886_v23, %v4260_v60  ;;  %s3635_s1 = sshll.u32 %s783_s28, 4  ;;  %s5797_s1 = int_to_ptr.vmem [resolvable:$true] %s3635_s1 }
 0xca2   : > { %v2855_v29 = vsel %vm1618_vm4, %v1889_v21, %v4266_v32  ;;  %s4512_s4 = scalar_lea.vmem %s5797_s1, 16  ;;  %p4519_p0 = scmp.lt.s32.totalorder %s5797_s1, %s4517_s10 }
 0xca3   : > { %v2854_v45 = vsel %vm1618_vm4, %v1888_v4, %v4265_v36  ;;  %v5936_v36 = vld [vmem:[#allocation18_spill] sm:$0xff]  ;;  %p4513_p11 = scmp.ne.s32.totalorder %s5797_s1, %s4512_s4  ;;  %p4520_p1 = scmp.lt.s32.totalorder %s4518_s11, %s4512_s4 }
 0xca5   : > { %p4514_p12 = pnand %p4513_p11, %p4765_p5  ;;  %p4521_p2 = por %p4520_p1, %p4519_p0 }
 0xca7   : > { %p4515_p13 = pneg %p4514_p12 }
 0xca9   : > { %p4522_p3 = pnand %p4521_p2, %p4515_p13 }
 0xd08   : > { %v4269_v15 = vpop.permute.xlu1 %4268 }
 0xd09   : > { %v4271_v61 = vunpack.i.h.bf16 %v4269_v15  ;;  %v4270_v5 = vunpack.i.l.bf16 %v4269_v15  ;;  %v4274_v41 = vpop.permute.xlu0 %4273 }
 0xd0a   : > { %v4276_v62 = vunpack.i.h.bf16 %v4274_v41  ;;  %v4275_v48 = vunpack.i.l.bf16 %v4274_v41  ;;  %v5931_v41 = vld [vmem:[#allocation14_spill] sm:$0xff] }
 0xd0b   : > { %v2867_v33 = vsel %vm1022_vm2, %v2859_v47, %v4271_v61  ;;  %v2866_v63 = vsel %vm1022_vm2, %v2858_v22, %v4270_v5  ;;  %v5930_v61 = vld [vmem:[#allocation11_spill] sm:$0xff] }
 0xd0c   : > { %v2873_v58 = vpack.c.bf16 %v2867_v33, %v2866_v63  ;;  %v2864_v49 = vsel %vm1022_vm2, %v2856_v37, %v4275_v48  ;;  %v2865_v8 = vsel %vm1022_vm2, %v2857_v38, %v4276_v62  ;;  %v4284_v24 = vpop.permute.xlu1 %4283  ;;  %v5932_v48 = vld [vmem:[#allocation13_spill] sm:$0xff] }
 0xd0d   : > { %v2872_v10 = vpack.c.bf16 %v2865_v8, %v2864_v49  ;;  %v4279_v20 = vpop.permute.xlu0 %4278  ;;  %v4286_v25 = vunpack.i.h.bf16 %v4284_v24  ;;  %v4285_v11 = vunpack.i.l.bf16 %v4284_v24 }
 0xd0e   : > { %v4281_v17 = vunpack.i.h.bf16 %v4279_v20  ;;  %v4280_v9 = vunpack.i.l.bf16 %v4279_v20  ;;  %v5935_v20 = vld [vmem:[#allocation16_spill] sm:$0xff] }
 0xd0f   : > { %4112 = vmatprep.mubr.msk.bf16.mxu1 %vm1350_vm3, %v2872_v10  ;;  %v2863_v12 = vsel %vm913_vm0, %v2855_v29, %v4286_v25  ;;  %v2862_v59 = vsel %vm913_vm0, %v2854_v45, %v4285_v11 }
 0xd10   : > { %4113 = vmatmul.mubr.msk.bf16.vlgmr.msra.gmra.mrb[64].mxu1 %vm1350_vm3, %v2873_v58  ;;  %v2860_v27 = vsel %vm913_vm0, %v2852_v1, %v4280_v9  ;;  %v2861_v50 = vsel %vm913_vm0, %v2853_v46, %v4281_v17 }
 0xd12   : > { %v4294_v35 = vpop.permute.xlu1 %4293 }
 0xd13   : > { %v4296_v44 = vunpack.i.h.bf16 %v4294_v35  ;;  %v4295_v2 = vunpack.i.l.bf16 %v4294_v35  ;;  %v4289_v26 = vpop.permute.xlu0 %4288 }
 0xd14   : > { %v4291_v7 = vunpack.i.h.bf16 %v4289_v26  ;;  %v4290_v57 = vunpack.i.l.bf16 %v4289_v26 }
 0xd15   : > { %v2871_v56 = vsel %vm1022_vm2, %v2863_v12, %v4296_v44  ;;  %v2870_v54 = vsel %vm1022_vm2, %v2862_v59, %v4295_v2 }
 0xd16   : > { %v2875_v0 = vpack.c.bf16 %v2871_v56, %v2870_v54  ;;  %v2868_v31 = vsel %vm1022_vm2, %v2860_v27, %v4290_v57  ;;  %v2869_v52 = vsel %vm1022_vm2, %v2861_v50, %v4291_v7 }
 0xd17   : > { %v2874_v19 = vpack.c.bf16 %v2869_v52, %v2868_v31 }
 0xd19   : > { %4116 = vmatprep.mubr.msk.bf16.mxu1 %vm1350_vm3, %v2874_v19 }
 0xd1a   : > { %4117 = vmatmul.mubr.msk.bf16.gmra.mrb[68].mxu1 %vm1350_vm3, %v2875_v0 }
 0xde3   : > { %v4114_v3 = vpop.f32.mrb[64].mxu1 }
 0xde4   : > { %v2945_v34 = vpop.f32.mrb[65].mxu1  ;;  %v2954_v14 = vadd.f32 %v4114_v3, %v3780_v51 }
 0xde5   : > { %v2946_v39 = vadd.f32 %v3780_v51, %v2945_v34  ;;  %v4115_v13 = vpop.f32.mrb[66].mxu1 }
 0xde6   : > { %v2948_v18 = vpop.f32.mrb[67].mxu1  ;;  %v2957_v16 = vadd.f32 %v4115_v13, %v3780_v51  ;;  %v5569_v5 = vadd.f32 %v2954_v14, %v5930_v61 }
 0xde7   : > { %v5566_v15 = vadd.f32 %v2946_v39, %v5929_v42  ;;  %v2949_v43 = vadd.f32 %v3780_v51, %v2948_v18 }
 0xde8   : > { %v5579_v28 = vadd.f32 %v2957_v16, %v5932_v48  ;;  %v2990_v38 = vsel %vm1350_vm3, %v5569_v5, 0.0 }
 0xde9   : > { %v5572_v47 = vadd.f32 %v2949_v43, %v5931_v41  ;;  %v2984_v22 = vsel %vm1350_vm3, %v5566_v15, 0.0 }
 0xdea   : > { %2985 = vadd.xlane.f32.xlu0 %v2984_v22  ;;  %v2993_v49 = vsel %vm1350_vm3, %v5579_v28, 0.0 }
 0xdeb   : > { %v2987_v62 = vsel %vm1350_vm3, %v5572_v47, 0.0 }
 0xdec   : > { %2988 = vadd.xlane.f32.xlu1 %v2987_v62 }
 0xded   : > { %v4118_v37 = vpop.f32.mrb[68].mxu1 }
 0xdee   : > { %v2961_v33 = vpop.f32.mrb[69].mxu1  ;;  %2991 = vadd.xlane.f32.xlu0 %v2990_v38  ;;  %v2970_v8 = vadd.f32 %v4118_v37, %v3780_v51 }
 0xdef   : > { %v2962_v63 = vadd.f32 %v3780_v51, %v2961_v33  ;;  %v4119_v30 = vpop.f32.mrb[70].mxu1  ;;  %v4328_v33 = vld [vmem:[%s5855_s18] sm:$0xff]  }
 0xdf0   : > { %v2964_v58 = vpop.f32.mrb[71].mxu1  ;;  %v2973_v24 = vadd.f32 %v4119_v30, %v3780_v51  ;;  %v5592_v32 = vadd.f32 %v2970_v8, %v5935_v20  ;;  %4120 = vmatprep.subr.bf16.mxu0 %v4328_v33  ;;  %v4330_v30 = vld [vmem:[%s5857_s20] sm:$0xff]  }
 0xdf1   : > { %v5586_v10 = vadd.f32 %v2962_v63, %v5933_v6  ;;  %v2965_v53 = vadd.f32 %v3780_v51, %v2964_v58  ;;  %4121 = vmatpush3.bf16.msra.mxu0 %v4328_v33  ;;  %v4329_v63 = vld [vmem:[%s5855_s18 + $0x8] sm:$0xff]   ;;  %4132 = vmatprep.subr.bf16.mxu1 %v4330_v30 }
 0xdf2   : > { %2994 = vadd.xlane.f32.xlu0 %v2993_v49  ;;  %v5595_v23 = vadd.f32 %v2973_v24, %v5936_v36  ;;  %v3002_v21 = vsel %vm1350_vm3, %v5592_v32, 0.0  ;;  %4122 = vmatprep.subr.bf16.mxu0 %v4329_v63  ;;  %v4331_v58 = vld [vmem:[%s5857_s20 + $0x8] sm:$0xff]  }
 0xdf3   : > { %v5589_v60 = vadd.f32 %v2965_v53, %v5934_v40  ;;  %v2996_v25 = vsel %vm1350_vm3, %v5586_v10, 0.0  ;;  %4133 = vmatpush3.bf16.msra.mxu1 %v4330_v30 }
 0xdf4   : > { %v3005_v11 = vsel %vm1350_vm3, %v5595_v23, 0.0  ;;  %4134 = vmatprep.subr.bf16.mxu1 %v4331_v58 }
 0xdf5   : > { %v2999_v55 = vsel %vm1350_vm3, %v5589_v60, 0.0  ;;  %4123 = vmatpush3.bf16.msra.mxu0 %v4329_v63 }
 0xdf6   : > { %3000 = vadd.xlane.f32.xlu1 %v2999_v55  ;;  %2997 = vadd.xlane.f32.xlu0 %v2996_v25 }
 0xdf7   : > { %4135 = vmatpush3.bf16.msra.mxu1 %v4331_v58 }
 0xdfa   : > { %3006 = vadd.xlane.f32.xlu1 %v3005_v11  ;;  %3003 = vadd.xlane.f32.xlu0 %v3002_v21 }
 0xe77   : > { %v2986_v4 = vpop.xlane.xlu0 %2985 }
 0xe78   : > { %v3008_v17 = vmul.f32 0.03125, %v2986_v4 }
 0xe79   : > { %v2989_v9 = vpop.xlane.xlu1 %2988 }
 0xe7a   : > { %v5606_v46 = vsub.f32 %v5566_v15, %v3008_v17  ;;  %v3009_v1 = vmul.f32 0.03125, %v2989_v9 }
 0xe7b   : > { %v2992_v35 = vpop.xlane.xlu0 %2991 }
 0xe7c   : > { %v5609_v29 = vsub.f32 %v5572_v47, %v3009_v1  ;;  %v3010_v45 = vmul.f32 0.03125, %v2992_v35  ;;  %v3024_v44 = vmul.f32 %v5606_v46, %v5606_v46 }
 0xe7e   : > { %v5614_v2 = vsub.f32 %v5569_v5, %v3010_v45  ;;  %v3032_v26 = vsel %vm1350_vm3, %v3024_v44, 0.0  ;;  %v3025_v12 = vmul.f32 %v5609_v29, %v5609_v29  ;;  %v3787_v45 = vld [vmem:[%s5853_s16] ss:$0 sm:$0xff] }
 0xe7f   : > { %3033 = vadd.xlane.f32.xlu0 %v3032_v26  ;;  %v2995_v59 = vpop.xlane.xlu0 %2994 }
 0xe80   : > { %v3011_v7 = vmul.f32 0.03125, %v2995_v59  ;;  %v3035_v57 = vsel %vm1350_vm3, %v3025_v12, 0.0  ;;  %v3026_v27 = vmul.f32 %v5614_v2, %v5614_v2 }
 0xe81   : > { %3036 = vadd.xlane.f32.xlu1 %v3035_v57 }
 0xe82   : > { %v5623_v50 = vsub.f32 %v5579_v28, %v3011_v7  ;;  %v3038_v56 = vsel %vm1350_vm3, %v3026_v27, 0.0 }
 0xe83   : > { %v3001_v54 = vpop.xlane.xlu1 %3000  ;;  %3039 = vadd.xlane.f32.xlu0 %v3038_v56  ;;  %v2998_v0 = vpop.xlane.xlu0 %2997 }
 0xe84   : > { %v3013_v31 = vmul.f32 0.03125, %v3001_v54  ;;  %v3012_v52 = vmul.f32 0.03125, %v2998_v0  ;;  %v3027_v19 = vmul.f32 %v5623_v50, %v5623_v50 }
 0xe86   : > { %v5629_v51 = vsub.f32 %v5589_v60, %v3013_v31  ;;  %v5632_v3 = vsub.f32 %v5586_v10, %v3012_v52  ;;  %v3041_v34 = vsel %vm1350_vm3, %v3027_v19, 0.0  ;;  %v3788_v52 = vld [vmem:[%s5854_s17] ss:$0 sm:$0xff] }
 0xe87   : > { %v3007_v14 = vpop.xlane.xlu1 %3006  ;;  %3042 = vadd.xlane.f32.xlu1 %v3041_v34  ;;  %v3004_v39 = vpop.xlane.xlu0 %3003 }
 0xe88   : > { %v3015_v13 = vmul.f32 0.03125, %v3007_v14  ;;  %v3014_v18 = vmul.f32 0.03125, %v3004_v39  ;;  %v3029_v42 = vmul.f32 %v5629_v51, %v5629_v51  ;;  %v3028_v43 = vmul.f32 %v5632_v3, %v5632_v3 }
 0xe8a   : > { %v5640_v16 = vsub.f32 %v5595_v23, %v3015_v13  ;;  %v5643_v61 = vsub.f32 %v5592_v32, %v3014_v18  ;;  %v3047_v41 = vsel %vm1350_vm3, %v3029_v42, 0.0  ;;  %v3044_v22 = vsel %vm1350_vm3, %v3028_v43, 0.0 }
 0xe8b   : > { %3048 = vadd.xlane.f32.xlu1 %v3047_v41  ;;  %3045 = vadd.xlane.f32.xlu0 %v3044_v22 }
 0xe8c   : > { %v3031_v62 = vmul.f32 %v5640_v16, %v5640_v16  ;;  %v3030_v48 = vmul.f32 %v5643_v61, %v5643_v61 }
 0xe8e   : > { %v3053_v37 = vsel %vm1350_vm3, %v3031_v62, 0.0  ;;  %v3050_v38 = vsel %vm1350_vm3, %v3030_v48, 0.0 }
 0xe8f   : > { %3054 = vadd.xlane.f32.xlu1 %v3053_v37  ;;  %3051 = vadd.xlane.f32.xlu0 %v3050_v38 }
 0xf0c   : > { %v3034_v49 = vpop.xlane.xlu0 %3033 }
 0xf0d   : > { %v3056_v8 = vmul.f32 0.03125, %v3034_v49 }
 0xf0e   : > { %v3037_v6 = vpop.xlane.xlu1 %3036 }
 0xf0f   : > { %v3064_v24 = vadd.f32 1e-05, %v3056_v8  ;;  %v3057_v53 = vmul.f32 0.03125, %v3037_v6 }
 0xf10   : > { %v3040_v40 = vpop.xlane.xlu0 %3039 }
 0xf11   : > { %4480 = vrsqrt.f32 %v3064_v24  ;;  %v3065_v20 = vadd.f32 1e-05, %v3057_v53  ;;  %v3058_v36 = vmul.f32 0.03125, %v3040_v40 }
 0xf13   : > { %4482 = vrsqrt.f32 %v3065_v20  ;;  %v3066_v55 = vadd.f32 1e-05, %v3058_v36 }
 0xf14   : > { %v3043_v25 = vpop.xlane.xlu1 %3042 }
 0xf15   : > { %4484 = vrsqrt.f32 %v3066_v55  ;;  %v3059_v11 = vmul.f32 0.03125, %v3043_v25  ;;  %v3789_v55 = vld [vmem:[%s5856_s19] ss:$0 sm:$0xff] }
 0xf17   : > { %v3067_v21 = vadd.f32 1e-05, %v3059_v11 }
 0xf18   : > { %v3049_v4 = vpop.xlane.xlu1 %3048  ;;  %v3046_v17 = vpop.xlane.xlu0 %3045 }
 0xf19   : > { %4486 = vrsqrt.f32 %v3067_v21  ;;  %v3061_v9 = vmul.f32 0.03125, %v3049_v4  ;;  %v3060_v1 = vmul.f32 0.03125, %v3046_v17 }
 0xf1b   : > { %v4481_v35 = vpop.eup %4480  ;;  %v3069_v44 = vadd.f32 1e-05, %v3061_v9  ;;  %v3068_v26 = vadd.f32 1e-05, %v3060_v1 }
 0xf1c   : > { %v3080_v12 = vmul.f32 %v4481_v35, %v5606_v46  ;;  %v3055_v59 = vpop.xlane.xlu1 %3054  ;;  %v3052_v7 = vpop.xlane.xlu0 %3051 }
 0xf1d   : > { %v4483_v57 = vpop.eup %4482  ;;  %4488 = vrsqrt.f32 %v3069_v44  ;;  %v3063_v27 = vmul.f32 0.03125, %v3055_v59  ;;  %v3062_v56 = vmul.f32 0.03125, %v3052_v7 }
 0xf1e   : > { %v3081_v54 = vmul.f32 %v4483_v57, %v5609_v29  ;;  %4490 = vrsqrt.f32 %v3068_v26  ;;  %v3095_v0 = vmul.f32 %v3787_v45, %v3080_v12 }
 0xf1f   : > { %v4485_v31 = vpop.eup %4484  ;;  %v3071_v19 = vadd.f32 1e-05, %v3063_v27  ;;  %v3070_v34 = vadd.f32 1e-05, %v3062_v56 }
 0xf20   : > { %v3082_v14 = vmul.f32 %v4485_v31, %v5614_v2  ;;  %v3096_v46 = vmul.f32 %v3787_v45, %v3081_v54  ;;  %v3110_v39 = vadd.f32 %v3788_v52, %v3095_v0 }
 0xf21   : > { %4492 = vrsqrt.f32 %v3071_v19 }
 0xf22   : > { %4494 = vrsqrt.f32 %v3070_v34  ;;  %v3111_v13 = vadd.f32 %v3788_v52, %v3096_v46  ;;  %v3097_v42 = vmul.f32 %v3787_v45, %v3082_v14 }
 0xf23   : > { %v4487_v18 = vpop.eup %4486 }
 0xf24   : > { %v3083_v29 = vmul.f32 %v4487_v18, %v5623_v50  ;;  %v3118_v43 = vpack.c.bf16 %v3111_v13, %v3110_v39  ;;  %v3112_v48 = vadd.f32 %v3788_v52, %v3097_v42  ;;  %v3796_v42 = vld [vmem:[%s5858_s21] ss:$0 sm:$0xff] }
 0xf26   : > { %v3098_v41 = vmul.f32 %v3787_v45, %v3083_v29  ;;  %4124 = vmatprep.mubr.msk.bf16.mxu0 %vm1350_vm3, %v3118_v43 }
 0xf27   : > { %v4489_v22 = vpop.eup %4488 }
 0xf28   : > { %v4491_v62 = vpop.eup %4490  ;;  %v3113_v37 = vadd.f32 %v3788_v52, %v3098_v41  ;;  %v3085_v38 = vmul.f32 %v4489_v22, %v5629_v51 }
 0xf29   : > { %v3084_v2 = vmul.f32 %v4491_v62, %v5632_v3 }
 0xf2a   : > { %v3119_v33 = vpack.c.bf16 %v3113_v37, %v3112_v48  ;;  %v3100_v63 = vmul.f32 %v3787_v45, %v3085_v38 }
 0xf2b   : > { %v4493_v30 = vpop.eup %4492  ;;  %v3099_v58 = vmul.f32 %v3787_v45, %v3084_v2 }
 0xf2c   : > { %v4495_v49 = vpop.eup %4494  ;;  %v3087_v8 = vmul.f32 %v4493_v30, %v5640_v16  ;;  %4125 = vmatmul.mubr.msk.bf16.vlgmr.msra.gmra.mrb[48].mxu0 %vm1350_vm3, %v3119_v33  ;;  %v3115_v50 = vadd.f32 %v3788_v52, %v3100_v63  ;;  %v4332_v16 = vld [vmem:[%s5857_s20 + $0x10] sm:$0xff]  }
 0xf2d   : > { %v3086_v6 = vmul.f32 %v4495_v49, %v5643_v61  ;;  %v3114_v24 = vadd.f32 %v3788_v52, %v3099_v58  ;;  %4136 = vmatprep.subr.bf16.mxu1 %v4332_v16  ;;  %v4333_v61 = vld [vmem:[%s5857_s20 + $0x18] sm:$0xff]  }
 0xf2e   : > { %v3102_v53 = vmul.f32 %v3787_v45, %v3087_v8  ;;  %4137 = vmatpush3.bf16.msra.mxu1 %v4332_v16 }
 0xf2f   : > { %v3120_v40 = vpack.c.bf16 %v3115_v50, %v3114_v24  ;;  %v3101_v20 = vmul.f32 %v3787_v45, %v3086_v6  ;;  %4138 = vmatprep.subr.bf16.mxu1 %v4333_v61 }
 0xf30   : > { %v3117_v36 = vadd.f32 %v3788_v52, %v3102_v53 }
 0xf31   : > { %4128 = vmatprep.mubr.msk.bf16.mxu0 %vm1350_vm3, %v3120_v40  ;;  %v3116_v51 = vadd.f32 %v3788_v52, %v3101_v20 }
 0xf32   : > { %4139 = vmatpush3.bf16.msra.mxu1 %v4333_v61 }
 0xf33   : > { %v3121_v3 = vpack.c.bf16 %v3117_v36, %v3116_v51 }
 0xf35   : > { %4129 = vmatmul.mubr.msk.bf16.gmra.mrb[52].mxu0 %vm1350_vm3, %v3121_v3 }
 0xfff   : > { %v4126_v25 = vpop.f32.mrb[48].mxu0 }
0x1000   : > { %v3200_v11 = vadd.f32 %v4126_v25, %v3789_v55  ;;  %v3191_v21 = vpop.f32.mrb[49].mxu0 }
0x1001   : > { %v3192_v4 = vadd.f32 %v3789_v55, %v3191_v21  ;;  %v4127_v17 = vpop.f32.mrb[50].mxu0 }
0x1002   : > { %v3203_v9 = vadd.f32 %v4127_v17, %v3789_v55  ;;  %v3194_v1 = vpop.f32.mrb[51].mxu0  ;;  %v3224_v45 = vmax.f32 %v3200_v11, 0.0 }
0x1003   : > { %v3195_v35 = vadd.f32 %v3789_v55, %v3194_v1  ;;  %v3222_v26 = vmax.f32 %v3192_v4, 0.0 }
0x1004   : > { %v3225_v44 = vmax.f32 %v3203_v9, 0.0 }
0x1005   : > { %v3223_v12 = vmax.f32 %v3195_v35, 0.0 }
0x1006   : > { %v3231_v59 = vpack.c.bf16 %v3225_v44, %v3224_v45 }
0x1007   : > { %v3230_v7 = vpack.c.bf16 %v3223_v12, %v3222_v26 }
0x1008   : > { %v4130_v57 = vpop.f32.mrb[52].mxu0 }
0x1009   : > { %v3216_v27 = vadd.f32 %v4130_v57, %v3789_v55  ;;  %v3207_v56 = vpop.f32.mrb[53].mxu0  ;;  %4140 = vmatprep.mubr.msk.bf16.mxu1 %vm1708_vm5, %v3230_v7 }
0x100a   : > { %v3208_v54 = vadd.f32 %v3789_v55, %v3207_v56  ;;  %v4131_v0 = vpop.f32.mrb[54].mxu0  ;;  %4141 = vmatmul.mubr.msk.bf16.vlgmr.msra.gmra.mrb[72].mxu1 %vm1708_vm5, %v3231_v59 }
0x100b   : > { %v3219_v31 = vadd.f32 %v4131_v0, %v3789_v55  ;;  %v3210_v52 = vpop.f32.mrb[55].mxu0  ;;  %v3228_v34 = vmax.f32 %v3216_v27, 0.0 }
0x100c   : > { %v3211_v19 = vadd.f32 %v3789_v55, %v3210_v52  ;;  %v3226_v46 = vmax.f32 %v3208_v54, 0.0 }
0x100d   : > { %v3229_v14 = vmax.f32 %v3219_v31, 0.0 }
0x100e   : > { %v3227_v39 = vmax.f32 %v3211_v19, 0.0 }
0x100f   : > { %v3233_v13 = vpack.c.bf16 %v3229_v14, %v3228_v34 }
0x1010   : > { %v3232_v18 = vpack.c.bf16 %v3227_v39, %v3226_v46 }
0x1012   : > { %4144 = vmatprep.mubr.msk.bf16.mxu1 %vm1708_vm5, %v3232_v18 }
0x1013   : > { %4145 = vmatmul.mubr.msk.bf16.gmra.mrb[76].mxu1 %vm1708_vm5, %v3233_v13 }
0x10dd   : > { %v4142_v29 = vpop.f32.mrb[72].mxu1 }
0x10de   : > { %v3319_v43 = vpop.f32.mrb[73].mxu1  ;;  %v3328_v41 = vadd.f32 %v4142_v29, %v3796_v42 }
0x10df   : > { %v3320_v22 = vadd.f32 %v3796_v42, %v3319_v43  ;;  %v4143_v62 = vpop.f32.mrb[74].mxu1 }
0x10e0   : > { %v3322_v48 = vpop.f32.mrb[75].mxu1  ;;  %v3331_v38 = vadd.f32 %v4143_v62, %v3796_v42  ;;  %v3352_v33 = vadd.f32 %v3328_v41, %v5569_v5 }
0x10e1   : > { %v3350_v37 = vadd.f32 %v3320_v22, %v5566_v15  ;;  %v3323_v2 = vadd.f32 %v3796_v42, %v3322_v48 }
0x10e2   : > { %v3353_v58 = vadd.f32 %v3331_v38, %v5579_v28  ;;  %v3364_v6 = vsel %vm1350_vm3, %v3352_v33, 0.0 }
0x10e3   : > { %v3351_v63 = vadd.f32 %v3323_v2, %v5572_v47  ;;  %v3358_v30 = vsel %vm1350_vm3, %v3350_v37, 0.0  ;;  %v4334_v2 = vld [vmem:[%s5861_s24] sm:$0xff]  }
0x10e4   : > { %3359 = vadd.xlane.f32.xlu0 %v3358_v30  ;;  %v3367_v5 = vsel %vm1350_vm3, %v3353_v58, 0.0  ;;  %4148 = vmatprep.subr.bf16.mxu0 %v4334_v2 }
0x10e5   : > { %v3361_v49 = vsel %vm1350_vm3, %v3351_v63, 0.0  ;;  %4160 = vmatprep.subr.bf16.mxu1 %v4334_v2  ;;  %4149 = vmatpush3.bf16.msra.mxu0 %v4334_v2 }
0x10e6   : > { %v4146_v8 = vpop.f32.mrb[76].mxu1  ;;  %3362 = vadd.xlane.f32.xlu1 %v3361_v49  ;;  %4162 = vmatpush3.bf16.msra.mxu1 %v4334_v2 }
0x10e7   : > { %v3335_v50 = vpop.f32.mrb[77].mxu1  ;;  %v3344_v24 = vadd.f32 %v4146_v8, %v3796_v42 }
0x10e8   : > { %v3336_v15 = vadd.f32 %v3796_v42, %v3335_v50  ;;  %v4147_v53 = vpop.f32.mrb[78].mxu1  ;;  %3365 = vadd.xlane.f32.xlu0 %v3364_v6 }
0x10e9   : > { %v3338_v40 = vpop.f32.mrb[79].mxu1  ;;  %v3347_v20 = vadd.f32 %v4147_v53, %v3796_v42  ;;  %v3356_v28 = vadd.f32 %v3344_v24, %v5592_v32 }
0x10ea   : > { %v3354_v47 = vadd.f32 %v3336_v15, %v5586_v10  ;;  %v3339_v36 = vadd.f32 %v3796_v42, %v3338_v40  ;;  %3368 = vadd.xlane.f32.xlu1 %v3367_v5 }
0x10eb   : > { %v3357_v16 = vadd.f32 %v3347_v20, %v5595_v23  ;;  %v3376_v55 = vsel %vm1350_vm3, %v3356_v28, 0.0 }
0x10ec   : > { %v3355_v51 = vadd.f32 %v3339_v36, %v5589_v60  ;;  %v3370_v3 = vsel %vm1350_vm3, %v3354_v47, 0.0 }
0x10ed   : > { %3371 = vadd.xlane.f32.xlu0 %v3370_v3  ;;  %v3379_v10 = vsel %vm1350_vm3, %v3357_v16, 0.0 }
0x10ee   : > { %v3373_v61 = vsel %vm1350_vm3, %v3355_v51, 0.0 }
0x10ef   : > { %3374 = vadd.xlane.f32.xlu1 %v3373_v61 }
0x10f1   : > { %3377 = vadd.xlane.f32.xlu0 %v3376_v55 }
0x10f3   : > { %3380 = vadd.xlane.f32.xlu1 %v3379_v10  ;;  %v3805_v10 = vld [vmem:[%s5859_s22] ss:$0 sm:$0xff] }
0x1171   : > { %v3360_v25 = vpop.xlane.xlu0 %3359 }
0x1172   : > { %v3382_v11 = vmul.f32 0.03125, %v3360_v25 }
0x1173   : > { %v3363_v21 = vpop.xlane.xlu1 %3362 }
0x1174   : > { %v5715_v32 = vsub.f32 %v3350_v37, %v3382_v11  ;;  %v3383_v60 = vmul.f32 0.03125, %v3363_v21 }
0x1175   : > { %v3366_v4 = vpop.xlane.xlu0 %3365 }
0x1176   : > { %v5717_v17 = vsub.f32 %v3351_v63, %v3383_v60  ;;  %v3384_v9 = vmul.f32 0.03125, %v3366_v4  ;;  %v3398_v23 = vmul.f32 %v5715_v32, %v5715_v32 }
0x1177   : > { %v3369_v1 = vpop.xlane.xlu1 %3368 }
0x1178   : > { %v5721_v35 = vsub.f32 %v3352_v33, %v3384_v9  ;;  %v3385_v45 = vmul.f32 0.03125, %v3369_v1  ;;  %v3406_v44 = vsel %vm1350_vm3, %v3398_v23, 0.0  ;;  %v3399_v26 = vmul.f32 %v5717_v17, %v5717_v17  ;;  %v4335_v33 = vld [vmem:[%s5861_s24 + $0x8] sm:$0xff]  }
0x1179   : > { %3407 = vadd.xlane.f32.xlu0 %v3406_v44  ;;  %4150 = vmatprep.subr.bf16.mxu0 %v4335_v33  ;;  %v3806_v44 = vld [vmem:[%s5860_s23] ss:$0 sm:$0xff] }
0x117a   : > { %v5726_v12 = vsub.f32 %v3353_v58, %v3385_v45  ;;  %v3372_v59 = vpop.xlane.xlu0 %3371  ;;  %v3409_v7 = vsel %vm1350_vm3, %v3399_v26, 0.0  ;;  %v3400_v57 = vmul.f32 %v5721_v35, %v5721_v35  ;;  %4161 = vmatprep.subr.bf16.mxu1 %v4335_v33  ;;  %4151 = vmatpush3.bf16.msra.mxu0 %v4335_v33 }
0x117b   : > { %v3386_v27 = vmul.f32 0.03125, %v3372_v59  ;;  %3410 = vadd.xlane.f32.xlu1 %v3409_v7  ;;  %4163 = vmatpush3.bf16.msra.mxu1 %v4335_v33 }
0x117c   : > { %v3375_v56 = vpop.xlane.xlu1 %3374  ;;  %v3412_v54 = vsel %vm1350_vm3, %v3400_v57, 0.0  ;;  %v3401_v0 = vmul.f32 %v5726_v12, %v5726_v12 }
0x117d   : > { %v5734_v31 = vsub.f32 %v3354_v47, %v3386_v27  ;;  %v3387_v52 = vmul.f32 0.03125, %v3375_v56  ;;  %3413 = vadd.xlane.f32.xlu0 %v3412_v54 }
0x117e   : > { %v3378_v19 = vpop.xlane.xlu0 %3377  ;;  %v3415_v34 = vsel %vm1350_vm3, %v3401_v0, 0.0 }
0x117f   : > { %v5737_v14 = vsub.f32 %v3355_v51, %v3387_v52  ;;  %v3388_v46 = vmul.f32 0.03125, %v3378_v19  ;;  %3416 = vadd.xlane.f32.xlu1 %v3415_v34  ;;  %v3402_v39 = vmul.f32 %v5734_v31, %v5734_v31 }
0x1180   : > { %v3381_v13 = vpop.xlane.xlu1 %3380 }
0x1181   : > { %v5741_v18 = vsub.f32 %v3356_v28, %v3388_v46  ;;  %v3389_v42 = vmul.f32 0.03125, %v3381_v13  ;;  %v3418_v29 = vsel %vm1350_vm3, %v3402_v39, 0.0  ;;  %v3403_v43 = vmul.f32 %v5737_v14, %v5737_v14 }
0x1182   : > { %3419 = vadd.xlane.f32.xlu0 %v3418_v29 }
0x1183   : > { %v5746_v41 = vsub.f32 %v3357_v16, %v3389_v42  ;;  %v3421_v22 = vsel %vm1350_vm3, %v3403_v43, 0.0  ;;  %v3404_v62 = vmul.f32 %v5741_v18, %v5741_v18 }
0x1184   : > { %3422 = vadd.xlane.f32.xlu1 %v3421_v22 }
0x1185   : > { %v3424_v48 = vsel %vm1350_vm3, %v3404_v62, 0.0  ;;  %v3405_v37 = vmul.f32 %v5746_v41, %v5746_v41 }
0x1186   : > { %3425 = vadd.xlane.f32.xlu0 %v3424_v48 }
0x1187   : > { %v3427_v38 = vsel %vm1350_vm3, %v3405_v37, 0.0 }
0x1188   : > { %3428 = vadd.xlane.f32.xlu1 %v3427_v38 }
0x1206   : > { %v3408_v63 = vpop.xlane.xlu0 %3407 }
0x1207   : > { %v3430_v30 = vmul.f32 0.03125, %v3408_v63 }
0x1208   : > { %v3411_v58 = vpop.xlane.xlu1 %3410 }
0x1209   : > { %v3438_v49 = vadd.f32 1e-05, %v3430_v30  ;;  %v3431_v8 = vmul.f32 0.03125, %v3411_v58 }
0x120a   : > { %v3414_v50 = vpop.xlane.xlu0 %3413 }
0x120b   : > { %4496 = vrsqrt.f32 %v3438_v49  ;;  %v3439_v6 = vadd.f32 1e-05, %v3431_v8  ;;  %v3432_v24 = vmul.f32 0.03125, %v3414_v50 }
0x120c   : > { %v3417_v15 = vpop.xlane.xlu1 %3416 }
0x120d   : > { %4498 = vrsqrt.f32 %v3439_v6  ;;  %v3440_v53 = vadd.f32 1e-05, %v3432_v24  ;;  %v3433_v40 = vmul.f32 0.03125, %v3417_v15 }
0x120f   : > { %4500 = vrsqrt.f32 %v3440_v53  ;;  %v3441_v5 = vadd.f32 1e-05, %v3433_v40  ;;  %v3420_v47 = vpop.xlane.xlu0 %3419 }
0x1210   : > { %v3434_v20 = vmul.f32 0.03125, %v3420_v47 }
0x1211   : > { %4502 = vrsqrt.f32 %v3441_v5  ;;  %v3423_v36 = vpop.xlane.xlu1 %3422 }
0x1212   : > { %v3442_v28 = vadd.f32 1e-05, %v3434_v20  ;;  %v3435_v51 = vmul.f32 0.03125, %v3423_v36 }
0x1213   : > { %v3426_v3 = vpop.xlane.xlu0 %3425 }
0x1214   : > { %4504 = vrsqrt.f32 %v3442_v28  ;;  %v3443_v16 = vadd.f32 1e-05, %v3435_v51  ;;  %v3436_v61 = vmul.f32 0.03125, %v3426_v3 }
0x1215   : > { %v4497_v55 = vpop.eup %4496  ;;  %v3429_v25 = vpop.xlane.xlu1 %3428 }
0x1216   : > { %v3454_v11 = vmul.f32 %v4497_v55, %v5715_v32  ;;  %4506 = vrsqrt.f32 %v3443_v16  ;;  %v3444_v21 = vadd.f32 1e-05, %v3436_v61  ;;  %v3437_v60 = vmul.f32 0.03125, %v3429_v25 }
0x1217   : > { %v4499_v4 = vpop.eup %4498 }
0x1218   : > { %v3455_v9 = vmul.f32 %v4499_v4, %v5717_v17  ;;  %4508 = vrsqrt.f32 %v3444_v21  ;;  %v3445_v23 = vadd.f32 1e-05, %v3437_v60  ;;  %v3469_v1 = vmul.f32 %v3805_v10, %v3454_v11 }
0x1219   : > { %v4501_v45 = vpop.eup %4500 }
0x121a   : > { %v3456_v26 = vmul.f32 %v4501_v45, %v5721_v35  ;;  %4510 = vrsqrt.f32 %v3445_v23  ;;  %v3470_v59 = vmul.f32 %v3805_v10, %v3455_v9  ;;  %v3484_v27 = vadd.f32 %v3806_v44, %v3469_v1 }
0x121b   : > { %v4503_v7 = vpop.eup %4502 }
0x121c   : > { %v3471_v32 = vmul.f32 %v3805_v10, %v3456_v26  ;;  %v3457_v57 = vmul.f32 %v4503_v7, %v5726_v12  ;;  %v3485_v56 = vadd.f32 %v3806_v44, %v3470_v59 }
0x121e   : > { %v4505_v54 = vpop.eup %4504  ;;  %v3472_v17 = vmul.f32 %v3805_v10, %v3457_v57  ;;  %v3492_v0 = vpack.c.bf16 %v3485_v56, %v3484_v27  ;;  %v3486_v34 = vadd.f32 %v3806_v44, %v3471_v32 }
0x121f   : > { %v3458_v52 = vmul.f32 %v4505_v54, %v5734_v31 }
0x1220   : > { %v4507_v19 = vpop.eup %4506  ;;  %v3487_v46 = vadd.f32 %v3806_v44, %v3472_v17  ;;  %4152 = vmatprep.mubr.msk.bf16.mxu0 %vm1350_vm3, %v3492_v0 }
0x1221   : > { %v3459_v35 = vmul.f32 %v4507_v19, %v5737_v14  ;;  %v3473_v39 = vmul.f32 %v3805_v10, %v3458_v52 }
0x1222   : > { %v4509_v13 = vpop.eup %4508  ;;  %v3493_v42 = vpack.c.bf16 %v3487_v46, %v3486_v34 }
0x1223   : > { %v3460_v29 = vmul.f32 %v4509_v13, %v5741_v18  ;;  %v3474_v12 = vmul.f32 %v3805_v10, %v3459_v35  ;;  %v3488_v31 = vadd.f32 %v3806_v44, %v3473_v39  ;;  %v3807_v18 = vld [vmem:[%s5862_s25] ss:$0 sm:$0xff] }
0x1224   : > { %v4511_v43 = vpop.eup %4510  ;;  %4153 = vmatmul.mubr.msk.bf16.vlgmr.msra.gmra.mrb[56].mxu0 %vm1350_vm3, %v3493_v42 }
0x1225   : > { %v3475_v22 = vmul.f32 %v3805_v10, %v3460_v29  ;;  %v3461_v62 = vmul.f32 %v4511_v43, %v5746_v41  ;;  %v3489_v48 = vadd.f32 %v3806_v44, %v3474_v12 }
0x1227   : > { %v3476_v37 = vmul.f32 %v3805_v10, %v3461_v62  ;;  %v3494_v38 = vpack.c.bf16 %v3489_v48, %v3488_v31  ;;  %v3490_v2 = vadd.f32 %v3806_v44, %v3475_v22 }
0x1229   : > { %v3491_v33 = vadd.f32 %v3806_v44, %v3476_v37  ;;  %4156 = vmatprep.mubr.msk.bf16.mxu1 %vm1350_vm3, %v3494_v38 }
0x122b   : > { %v3495_v14 = vpack.c.bf16 %v3491_v33, %v3490_v2 }
0x122d   : > { %4157 = vmatmul.mubr.msk.bf16.vlgmr.msra.gmra.mrb[80].mxu1 %vm1350_vm3, %v3495_v14 }
0x12f7   : > { %v4154_v63 = vpop.f32.mrb[56].mxu0 }
0x12f8   : > { %v3565_v30 = vpop.f32.mrb[57].mxu0  ;;  %v3574_v8 = vadd.f32 %v4154_v63, %v3807_v18 }
0x12f9   : > { %v3566_v58 = vadd.f32 %v3807_v18, %v3565_v30  ;;  %v4155_v49 = vpop.f32.mrb[58].mxu0 }
0x12fa   : > { %v3568_v41 = vpop.f32.mrb[59].mxu0  ;;  %v3577_v24 = vadd.f32 %v4155_v49, %v3807_v18  ;;  %v3600_v40 = vsel %vm3596_vm6, %v3574_v8, 0.0 }
0x12fb   : > { %v3569_v50 = vadd.f32 %v3807_v18, %v3568_v41  ;;  %v3597_v6 = vsel %vm3596_vm6, %v3566_v58, 0.0 }
0x12fc   : > { %v3602_v20 = vsel %vm3596_vm6, %v3577_v24, 0.0 }
0x12fd   : > { %v3598_v15 = vsel %vm3596_vm6, %v3569_v50, 0.0 }
0x12fe   : > { %v3599_v53 = vadd.f32 %v3598_v15, %v3597_v6 }
0x1300   : > { %v3601_v5 = vadd.f32 %v3600_v40, %v3599_v53  ;;  %v4158_v47 = vpop.f32.mrb[80].mxu1 }
0x1301   : > { %v3581_v36 = vpop.f32.mrb[81].mxu1  ;;  %v3590_v61 = vadd.f32 %v4158_v47, %v3807_v18 }
0x1302   : > { %v3582_v28 = vadd.f32 %v3807_v18, %v3581_v36  ;;  %v3603_v51 = vadd.f32 %v3602_v20, %v3601_v5  ;;  %v4159_v3 = vpop.f32.mrb[82].mxu1 }
0x1303   : > { %v3584_v16 = vpop.f32.mrb[83].mxu1  ;;  %v3593_v11 = vadd.f32 %v4159_v3, %v3807_v18  ;;  %v3608_v4 = vsel %vm3596_vm6, %v3590_v61, 0.0 }
0x1304   : > { %v3604_v55 = vsel %vm3596_vm6, %v3582_v28, 0.0  ;;  %v3585_v10 = vadd.f32 %v3807_v18, %v3584_v16 }
0x1305   : > { %v3605_v25 = vadd.f32 %v3604_v55, %v3603_v51  ;;  %v3610_v23 = vsel %vm3596_vm6, %v3593_v11, 0.0 }
0x1306   : > { %v3606_v21 = vsel %vm3596_vm6, %v3585_v10, 0.0 }
0x1307   : > { %v3607_v60 = vadd.f32 %v3606_v21, %v3605_v25 }
0x1309   : > { %v3609_v9 = vadd.f32 %v3608_v4, %v3607_v60 }
0x130b   : > { %v3611_v1 = vadd.f32 %v3610_v23, %v3609_v9 }
0x130d   : > { %v3612_v45 = vrot.slane %v3611_v1, 4 }
0x130f   : > { %v3613_v44 = vadd.f32 %v3612_v45, %v3611_v1 }
0x1311   : > { %v3614_v26 = vrot.slane %v3613_v44, 2 }
0x1313   : > { %v3615_v59 = vadd.f32 %v3614_v26, %v3613_v44 }
0x1315   : > { %v3616_v7 = vrot.slane %v3615_v59, 1 }
0x1317   : > { %v3617_v32 = vadd.f32 %v3616_v7, %v3615_v59 }
0x1319   : > { %v3619_v57 = vmul.f32 0.015625, %v3617_v32 }
0x131b   : > { %3621 = vst.msk [vmem:[%s783_s28] sm:$0x1] %vm3620_vm7, %v3619_v57 }
0x131c   : > { %4525 = shalt.err (!%p4522_p3)
}
0x131d   : > { %s4526_s30 = scalar_lea.hbm %s5795_s6, 16  ;;  %s4530_s27 = scalar_lea.hbm %s5937_s9, 32 }
0x131e   : > { %p4527_p4 = scmp.ne.s32.totalorder %s5795_s6, %s4526_s30  ;;  %p4531_p9 = scmp.lt.u32.totalorder %s5795_s6, %s5937_s9 }
0x131f   : > { %p4532_p10 = scmp.lt.u32.totalorder %s4530_s27, %s4526_s30  ;;  %p4534_p12 = scmp.lt.u32.totalorder %s4526_s30, %s5795_s6 }
0x1320   : > { %p4528_p7 = pnand %p4527_p4, %p4765_p5 }
0x1321   : > { %p4533_p11 = por %p4532_p10, %p4531_p9 }
0x1322   : > { %p4529_p8 = pneg %p4528_p7 }
0x1323   : > { %p4535_p13 = por %p4534_p12, %p4533_p11 }
0x1325   : > { %p4536_p0 = pnand %p4535_p13, %p4529_p8 }
0x1327   : > { %4539 = shalt.err (!%p4536_p0)
}
0x1328   : > { %4183 = dma.vmem_to_hbm [thread:$0]  (%p4765_p5), %s5797_s1, 16, %s5795_s6, %s3623_s7  }
0x1329 PF: > { %s5938_s11 = sld [smem:[#allocation7_spill]]  ;;  %s5939_s4 = sld [smem:[#allocation5_spill]] }
0x132f   : > { %p4189_p1 = scmp.ge.s32.totalorder %s5938_s11, 2  ;;  %s3647_s5 = sand.u32 1, %s5939_s4  }
0x1330   : > { %s3648_s28 = scalar_lea.sflag [#allocation3], %s3647_s5 }
0x1331   : > { %p4186_p2 = pnand %p4189_p1, %p4769_p6 }
0x1333   : > { %4557 = dma.done.wait (!%p4186_p2), %s3648_s28, 16  }
0x1334   : > { %4559 = vsyncadd (!%p4186_p2), %s3648_s28, 4294967280  ;;  %s5941_s28 = sld [smem:[#allocation8_spill]]  ;;  %s5942_s30 = sld [smem:[#allocation6_spill]] }
0x1335   : > { %s5943_s7 = sld [smem:[#allocation9_spill]]  ;;  %s5944_s27 = smov %s4566_s3 }
0x133a   : > { %p36_p3 = scmp.ge.s32.totalorder %s5941_s28, 4   ;;  %s5945_s3 = smov %s5942_s30 }
0x133c   :  { %38 = sbr.rel (!%p36_p3) target bundleno = 17 (0x11), region = 159 }
0x1343   :  { %3652 = vsyncpa [#allocation3], 1 }
0x1344   :  { %3654 = vsyncpa [#allocation3 + $0x1], 1 }

</bundles_post_ra>
